<compile_context>
chip_gen: v5e
topology: v5e:2x2
jax: 0.10.0
libtpu: 0.0.40
codegen_flags: <defaults>
</compile_context>

<pallas_src>
import jax
import jax.numpy as jnp
from jax.experimental import pallas as pl
from jax.experimental.pallas import tpu as pltpu


def lstm_head_kernel(xg0_ref, add_ref, wbig_ref, fcw_ref, fcb_ref, o_ref):
    T, B, _ = add_ref.shape
    Hp = fcw_ref.shape[1]

    fcw = fcw_ref[...]            # (1, Hp)   loop-invariant
    fcb = fcb_ref[...]            # (1, 1)

    # ---- prologue (t = 0): h1_{-1} = c1_{-1} = 0, so layer-1 gates are just
    # the input projection (b1 already folded in).  Pure EUP/VPU, no matmul.
    # Layer-1 gate layout here is [i, f, o | g] (sigmoid slab + tanh slab).
    g0 = xg0_ref[...]                                   # (B, 4Hp)
    s0 = jax.nn.sigmoid(g0[:, :3 * Hp])
    g0t = jnp.tanh(g0[:, 3 * Hp:])
    c1 = s0[:, :Hp] * g0t                               # f*0 + i*g
    h1 = s0[:, 2 * Hp:3 * Hp] * jnp.tanh(c1)
    h2 = jnp.zeros((B, Hp), jnp.float32)
    c2 = jnp.zeros((B, Hp), jnp.float32)

    def step(t, carry):
        # Wavefront invariant: carry = (h1_t, c1_t, h2_{t-1}, c2_{t-1}).
        # One fused MXU push computes layer-2 gates for step t and layer-1
        # gates for step t+1.  Combined gate column layout (each Hp wide):
        #   [ i1 f1 o1 | i2 f2 o2 | g1 | g2 ]
        h1, c1, h2, c2 = carry
        lhs = jnp.concatenate([h1, h2], axis=-1).astype(jnp.bfloat16)   # (B, 2Hp)
        # Weight ref is read at use-site: it stays VMEM-resident and streams
        # straight to the MXU (it cannot live in the register file anyway).
        g = jnp.dot(lhs, wbig_ref[...],
                    preferred_element_type=jnp.float32) + add_ref[t]    # (B, 8Hp)
        s = jax.nn.sigmoid(g[:, :6 * Hp])     # one contiguous sigmoid slab
        th = jnp.tanh(g[:, 6 * Hp:])          # one contiguous tanh slab
        i1, f1, o1 = s[:, :Hp], s[:, Hp:2 * Hp], s[:, 2 * Hp:3 * Hp]
        i2, f2, o2 = s[:, 3 * Hp:4 * Hp], s[:, 4 * Hp:5 * Hp], s[:, 5 * Hp:6 * Hp]
        g1, g2 = th[:, :Hp], th[:, Hp:]
        # layer-2 state at step t (uses previous c2)
        c2 = f2 * c2 + i2 * g2
        h2 = o2 * jnp.tanh(c2)
        # layer-1 state at step t+1 (uses c1_t)
        c1 = f1 * c1 + i1 * g1
        h1 = o1 * jnp.tanh(c1)
        return (h1, c1, h2, c2)

    # Fully unrolled: T = 8 steps, no loop bookkeeping, LLO sees everything.
    h1, c1, h2, c2 = jax.lax.fori_loop(0, T, step, (h1, c1, h2, c2),
                                       unroll=True)

    # fc head on the final layer-2 hidden state: VPU multiply + lane reduction
    # (padded lanes are zero, so they contribute nothing).
    o_ref[...] = jnp.sum(h2 * fcw, axis=-1, keepdims=True) + fcb


def rnn_model_forward(x, params):
    """x: (B, T, input_size) float32 (batch_first, like the PyTorch module)."""
    B, T, I = x.shape
    H = params["whh1"].shape[0]
    Hp = max(128, ((H + 127) // 128) * 128)      # lane-aligned hidden width
    f32 = jnp.float32

    def pad_cols(a):
        return jnp.pad(a, [(0, 0)] * (a.ndim - 1) + [(0, Hp - H)])

    def pad_rows(a):
        return jnp.pad(a, ((0, Hp - H), (0, 0)))

    def gate_blocks(a):
        # (..., 4H) -> 4 x (..., Hp) in PyTorch gate order (i, f, g, o),
        # each block zero-padded to Hp lanes.
        return [pad_cols(a[..., g * H:(g + 1) * H]) for g in range(4)]

    # ---- layer-1 input projection, hoisted out of the recurrence ----------
    xg1 = x.reshape(B * T, I) @ params["wih1"] + params["b1"]       # (B*T, 4H)
    xi, xf, xg, xo = gate_blocks(xg1)                               # (B*T, Hp)
    xg1p = jnp.concatenate([xi, xf, xo, xg], axis=-1)               # [i f o | g]
    xg1p = xg1p.reshape(B, T, 4 * Hp).transpose(1, 0, 2)            # (T, B, 4Hp)
    xg0 = xg1p[0]                                                   # prologue

    # Per-step additive term for the fused dot, column layout
    # [i1 f1 o1 | i2 f2 o2 | g1 | g2]: layer-1 part at loop index t holds
    # xg1_{t+1} (zeros at t = T-1, result discarded); layer-2 part holds b2.
    xnext = jnp.concatenate([xg1p[1:], jnp.zeros((1, B, 4 * Hp), f32)], axis=0)
    b2i, b2f, b2g, b2o = gate_blocks(params["b2"])                  # (1, Hp)
    b2sig = jnp.broadcast_to(jnp.concatenate([b2i, b2f, b2o], -1), (T, B, 3 * Hp))
    b2tanh = jnp.broadcast_to(b2g, (T, B, Hp))
    add = jnp.concatenate(
        [xnext[..., :3 * Hp], b2sig, xnext[..., 3 * Hp:], b2tanh], axis=-1)

    # ---- fused recurrent weight  (2Hp, 8Hp), bf16 MXU operand --------------
    #   rows 0:Hp   <- h1_t        rows Hp:2Hp <- h2_{t-1}
    h1i, h1f, h1g, h1o = gate_blocks(pad_rows(params["whh1"]))      # (Hp, Hp)
    i2i, i2f, i2g, i2o = gate_blocks(pad_rows(params["wih2"]))
    h2i, h2f, h2g, h2o = gate_blocks(pad_rows(params["whh2"]))
    z = jnp.zeros((Hp, Hp), f32)
    col = lambda top, bot: jnp.concatenate([top, bot], axis=0)      # (2Hp, Hp)
    wbig = jnp.concatenate([
        col(h1i, z), col(h1f, z), col(h1o, z),          # layer-1 sigmoid gates
        col(i2i, h2i), col(i2f, h2f), col(i2o, h2o),    # layer-2 sigmoid gates
        col(h1g, z), col(i2g, h2g),                      # tanh gates (g1, g2)
    ], axis=1).astype(jnp.bfloat16)                      # (2Hp, 8Hp)

    fcw_row = jnp.pad(params["fcw"].T, ((0, 0), (0, Hp - H)))       # (1, Hp)
    fcb = params["fcb"]                                             # (1, 1)

    # Single kernel invocation; every operand is a full-array VMEM block
    # (total footprint < 1 MiB, fits scoped VMEM on v5e/v6e/v7x with room to
    # spare for the hoisted XLA input-projection fusion).
    out = pl.pallas_call(
        lstm_head_kernel,
        out_shape=jax.ShapeDtypeStruct((B, 1), jnp.float32),
        compiler_params=pltpu.CompilerParams(vmem_limit_bytes=8 * 1024 * 1024),
    )(xg0, add, wbig, fcw_row, fcb)
    return out


def init_params(key, input_size=1, hidden_size=64):
    H = hidden_size
    k = 1.0 / jnp.sqrt(jnp.float32(H))
    keys = jax.random.split(key, 10)
    u = lambda kk, shape: jax.random.uniform(kk, shape, jnp.float32, -k, k)
    # Stored transposed relative to PyTorch (PyTorch W_ih is (4H, in)).
    return {
        "wih1": u(keys[0], (input_size, 4 * H)),
        "whh1": u(keys[1], (H, 4 * H)),
        "b1":   u(keys[2], (1, 4 * H)) + u(keys[3], (1, 4 * H)),  # b_ih + b_hh
        "wih2": u(keys[4], (H, 4 * H)),
        "whh2": u(keys[5], (H, 4 * H)),
        "b2":   u(keys[6], (1, 4 * H)) + u(keys[7], (1, 4 * H)),
        "fcw":  u(keys[8], (H, 1)),
        "fcb":  u(keys[9], (1, 1)),
    }


def ref_forward(x, p):
    """Pure-JAX f32 reference (semantics of the PyTorch forward)."""
    B, T, I = x.shape
    H = p["whh1"].shape[0]

    def cell(x_in, h, c, wih, whh, b):
        g = x_in @ wih + h @ whh + b
        i = jax.nn.sigmoid(g[:, :H])
        f = jax.nn.sigmoid(g[:, H:2 * H])
        gg = jnp.tanh(g[:, 2 * H:3 * H])
        o = jax.nn.sigmoid(g[:, 3 * H:])
        c_new = f * c + i * gg
        return o * jnp.tanh(c_new), c_new

    def step(carry, x_t):
        h1, c1, h2, c2 = carry
        h1, c1 = cell(x_t, h1, c1, p["wih1"], p["whh1"], p["b1"])
        h2, c2 = cell(h1, h2, c2, p["wih2"], p["whh2"], p["b2"])
        return (h1, c1, h2, c2), None

    init = tuple(jnp.zeros((B, H), jnp.float32) for _ in range(4))
    (h1, c1, h2, c2), _ = jax.lax.scan(step, init, jnp.transpose(x, (1, 0, 2)))
    return h2 @ p["fcw"] + p["fcb"]


if __name__ == "__main__":
    B, T, I, H = 2, 8, 1, 64
    key = jax.random.PRNGKey(0)
    kx, kp = jax.random.split(key)
    x = jax.random.normal(kx, (B, T, I), jnp.float32)
    params = init_params(kp, input_size=I, hidden_size=H)

    fwd = jax.jit(rnn_model_forward)
    out = jax.block_until_ready(fwd(x, params))
    ref = jax.block_until_ready(ref_forward(x, params))
    assert out.shape == (B, 1)
    # bf16 MXU operands (f32 accumulation / activations) -> ~1e-2 tolerance
    # vs. the all-f32 reference.
    assert jnp.allclose(out, ref, atol=2e-2, rtol=2e-2), (out, ref)
    print("KERNEL_OK")
</pallas_src>

<mosaic_0001>
module attributes {stable_mosaic.version = 11 : i64} {
  func.func @lstm_head_kernel(%arg0: memref<2x512xf32, #tpu.memory_space<vmem>>, %arg1: memref<8x2x1024xf32, #tpu.memory_space<vmem>>, %arg2: memref<256x1024xbf16, #tpu.memory_space<vmem>>, %arg3: memref<1x128xf32, #tpu.memory_space<vmem>>, %arg4: memref<1x1xf32, #tpu.memory_space<vmem>>, %arg5: memref<2x1xf32, #tpu.memory_space<vmem>>) attributes {dimension_semantics = [], scalar_prefetch = 0 : i64, scratch_operands = 0 : i64, tpu.core_type = #tpu.core_type<tc>} {
    %c0 = arith.constant 0 : index
    %c0_0 = arith.constant 0 : index
    %0 = vector.load %arg3[%c0, %c0_0] : memref<1x128xf32, #tpu.memory_space<vmem>>, vector<1x128xf32>
    %c0_1 = arith.constant 0 : index
    %c0_2 = arith.constant 0 : index
    %1 = vector.load %arg4[%c0_1, %c0_2] : memref<1x1xf32, #tpu.memory_space<vmem>>, vector<1x1xf32>
    %c0_3 = arith.constant 0 : index
    %c0_4 = arith.constant 0 : index
    %2 = vector.load %arg0[%c0_3, %c0_4] : memref<2x512xf32, #tpu.memory_space<vmem>>, vector<2x512xf32>
    %3 = vector.extract_strided_slice %2 {offsets = [0, 0], sizes = [2, 384], strides = [1, 1]} : vector<2x512xf32> to vector<2x384xf32>
    %4 = arith.negf %3 : vector<2x384xf32>
    %5 = math.exp %4 : vector<2x384xf32>
    %cst = arith.constant 1.000000e+00 : f32
    %6 = vector.broadcast %cst : f32 to vector<2x384xf32>
    %7 = arith.addf %6, %5 : vector<2x384xf32>
    %8 = arith.divf %6, %7 : vector<2x384xf32>
    %9 = vector.extract_strided_slice %2 {offsets = [0, 384], sizes = [2, 128], strides = [1, 1]} : vector<2x512xf32> to vector<2x128xf32>
    %10 = math.tanh %9 : vector<2x128xf32>
    %11 = vector.extract_strided_slice %8 {offsets = [0, 0], sizes = [2, 128], strides = [1, 1]} : vector<2x384xf32> to vector<2x128xf32>
    %12 = arith.mulf %11, %10 : vector<2x128xf32>
    %13 = vector.extract_strided_slice %8 {offsets = [0, 256], sizes = [2, 128], strides = [1, 1]} : vector<2x384xf32> to vector<2x128xf32>
    %14 = math.tanh %12 : vector<2x128xf32>
    %15 = arith.mulf %13, %14 : vector<2x128xf32>
    %cst_5 = arith.constant 0.000000e+00 : f32
    %16 = vector.broadcast %cst_5 : f32 to vector<2x128xf32>
    %cst_6 = arith.constant 0.000000e+00 : f32
    %17 = vector.broadcast %cst_6 : f32 to vector<2x128xf32>
    %c0_i32 = arith.constant 0 : i32
    %18 = tpu.concatenate %15, %16 in 1 : vector<2x128xf32>, vector<2x128xf32> -> vector<2x256xf32>
    %19 = arith.truncf %18 : vector<2x256xf32> to vector<2x256xbf16>
    %c0_7 = arith.constant 0 : index
    %c0_8 = arith.constant 0 : index
    %20 = vector.load %arg2[%c0_7, %c0_8] : memref<256x1024xbf16, #tpu.memory_space<vmem>>, vector<256x1024xbf16>
    %cst_9 = arith.constant dense<0.000000e+00> : vector<2x1024xf32>
    %21 = tpu.matmul %19, %20, %cst_9 {dimension_numbers = #tpu.dot_dimension_numbers<[1], [0], [0], [1], [0, 0, 1, 1], [], []>} : vector<2x256xbf16>, vector<256x1024xbf16>, vector<2x1024xf32> -> vector<2x1024xf32>
    %22 = arith.index_cast %c0_i32 : i32 to index
    %c0_10 = arith.constant 0 : index
    %c0_11 = arith.constant 0 : index
    %23 = vector.load %arg1[%22, %c0_10, %c0_11] : memref<8x2x1024xf32, #tpu.memory_space<vmem>>, vector<1x2x1024xf32>
    %24 = vector.shape_cast %23 : vector<1x2x1024xf32> to vector<2x1024xf32>
    %25 = arith.addf %21, %24 : vector<2x1024xf32>
    %26 = vector.extract_strided_slice %25 {offsets = [0, 0], sizes = [2, 768], strides = [1, 1]} : vector<2x1024xf32> to vector<2x768xf32>
    %27 = arith.negf %26 : vector<2x768xf32>
    %28 = math.exp %27 : vector<2x768xf32>
    %cst_12 = arith.constant 1.000000e+00 : f32
    %29 = vector.broadcast %cst_12 : f32 to vector<2x768xf32>
    %30 = arith.addf %29, %28 : vector<2x768xf32>
    %31 = arith.divf %29, %30 : vector<2x768xf32>
    %32 = vector.extract_strided_slice %25 {offsets = [0, 768], sizes = [2, 256], strides = [1, 1]} : vector<2x1024xf32> to vector<2x256xf32>
    %33 = math.tanh %32 : vector<2x256xf32>
    %34 = vector.extract_strided_slice %31 {offsets = [0, 0], sizes = [2, 128], strides = [1, 1]} : vector<2x768xf32> to vector<2x128xf32>
    %35 = vector.extract_strided_slice %31 {offsets = [0, 128], sizes = [2, 128], strides = [1, 1]} : vector<2x768xf32> to vector<2x128xf32>
    %36 = vector.extract_strided_slice %31 {offsets = [0, 256], sizes = [2, 128], strides = [1, 1]} : vector<2x768xf32> to vector<2x128xf32>
    %37 = vector.extract_strided_slice %31 {offsets = [0, 384], sizes = [2, 128], strides = [1, 1]} : vector<2x768xf32> to vector<2x128xf32>
    %38 = vector.extract_strided_slice %31 {offsets = [0, 512], sizes = [2, 128], strides = [1, 1]} : vector<2x768xf32> to vector<2x128xf32>
    %39 = vector.extract_strided_slice %31 {offsets = [0, 640], sizes = [2, 128], strides = [1, 1]} : vector<2x768xf32> to vector<2x128xf32>
    %40 = vector.extract_strided_slice %33 {offsets = [0, 0], sizes = [2, 128], strides = [1, 1]} : vector<2x256xf32> to vector<2x128xf32>
    %41 = vector.extract_strided_slice %33 {offsets = [0, 128], sizes = [2, 128], strides = [1, 1]} : vector<2x256xf32> to vector<2x128xf32>
    %42 = arith.mulf %38, %17 : vector<2x128xf32>
    %43 = arith.mulf %37, %41 : vector<2x128xf32>
    %44 = arith.addf %42, %43 : vector<2x128xf32>
    %45 = math.tanh %44 : vector<2x128xf32>
    %46 = arith.mulf %39, %45 : vector<2x128xf32>
    %47 = arith.mulf %35, %12 : vector<2x128xf32>
    %48 = arith.mulf %34, %40 : vector<2x128xf32>
    %49 = arith.addf %47, %48 : vector<2x128xf32>
    %50 = math.tanh %49 : vector<2x128xf32>
    %51 = arith.mulf %36, %50 : vector<2x128xf32>
    %c1_i32 = arith.constant 1 : i32
    %52 = tpu.concatenate %51, %46 in 1 : vector<2x128xf32>, vector<2x128xf32> -> vector<2x256xf32>
    %53 = arith.truncf %52 : vector<2x256xf32> to vector<2x256xbf16>
    %c0_13 = arith.constant 0 : index
    %c0_14 = arith.constant 0 : index
    %54 = vector.load %arg2[%c0_13, %c0_14] : memref<256x1024xbf16, #tpu.memory_space<vmem>>, vector<256x1024xbf16>
    %cst_15 = arith.constant dense<0.000000e+00> : vector<2x1024xf32>
    %55 = tpu.matmul %53, %54, %cst_15 {dimension_numbers = #tpu.dot_dimension_numbers<[1], [0], [0], [1], [0, 0, 1, 1], [], []>} : vector<2x256xbf16>, vector<256x1024xbf16>, vector<2x1024xf32> -> vector<2x1024xf32>
    %56 = arith.index_cast %c1_i32 : i32 to index
    %c0_16 = arith.constant 0 : index
    %c0_17 = arith.constant 0 : index
    %57 = vector.load %arg1[%56, %c0_16, %c0_17] : memref<8x2x1024xf32, #tpu.memory_space<vmem>>, vector<1x2x1024xf32>
    %58 = vector.shape_cast %57 : vector<1x2x1024xf32> to vector<2x1024xf32>
    %59 = arith.addf %55, %58 : vector<2x1024xf32>
    %60 = vector.extract_strided_slice %59 {offsets = [0, 0], sizes = [2, 768], strides = [1, 1]} : vector<2x1024xf32> to vector<2x768xf32>
    %61 = arith.negf %60 : vector<2x768xf32>
    %62 = math.exp %61 : vector<2x768xf32>
    %cst_18 = arith.constant 1.000000e+00 : f32
    %63 = vector.broadcast %cst_18 : f32 to vector<2x768xf32>
    %64 = arith.addf %63, %62 : vector<2x768xf32>
    %65 = arith.divf %63, %64 : vector<2x768xf32>
    %66 = vector.extract_strided_slice %59 {offsets = [0, 768], sizes = [2, 256], strides = [1, 1]} : vector<2x1024xf32> to vector<2x256xf32>
    %67 = math.tanh %66 : vector<2x256xf32>
    %68 = vector.extract_strided_slice %65 {offsets = [0, 0], sizes = [2, 128], strides = [1, 1]} : vector<2x768xf32> to vector<2x128xf32>
    %69 = vector.extract_strided_slice %65 {offsets = [0, 128], sizes = [2, 128], strides = [1, 1]} : vector<2x768xf32> to vector<2x128xf32>
    %70 = vector.extract_strided_slice %65 {offsets = [0, 256], sizes = [2, 128], strides = [1, 1]} : vector<2x768xf32> to vector<2x128xf32>
    %71 = vector.extract_strided_slice %65 {offsets = [0, 384], sizes = [2, 128], strides = [1, 1]} : vector<2x768xf32> to vector<2x128xf32>
    %72 = vector.extract_strided_slice %65 {offsets = [0, 512], sizes = [2, 128], strides = [1, 1]} : vector<2x768xf32> to vector<2x128xf32>
    %73 = vector.extract_strided_slice %65 {offsets = [0, 640], sizes = [2, 128], strides = [1, 1]} : vector<2x768xf32> to vector<2x128xf32>
    %74 = vector.extract_strided_slice %67 {offsets = [0, 0], sizes = [2, 128], strides = [1, 1]} : vector<2x256xf32> to vector<2x128xf32>
    %75 = vector.extract_strided_slice %67 {offsets = [0, 128], sizes = [2, 128], strides = [1, 1]} : vector<2x256xf32> to vector<2x128xf32>
    %76 = arith.mulf %72, %44 : vector<2x128xf32>
    %77 = arith.mulf %71, %75 : vector<2x128xf32>
    %78 = arith.addf %76, %77 : vector<2x128xf32>
    %79 = math.tanh %78 : vector<2x128xf32>
    %80 = arith.mulf %73, %79 : vector<2x128xf32>
    %81 = arith.mulf %69, %49 : vector<2x128xf32>
    %82 = arith.mulf %68, %74 : vector<2x128xf32>
    %83 = arith.addf %81, %82 : vector<2x128xf32>
    %84 = math.tanh %83 : vector<2x128xf32>
    %85 = arith.mulf %70, %84 : vector<2x128xf32>
    %c2_i32 = arith.constant 2 : i32
    %86 = tpu.concatenate %85, %80 in 1 : vector<2x128xf32>, vector<2x128xf32> -> vector<2x256xf32>
    %87 = arith.truncf %86 : vector<2x256xf32> to vector<2x256xbf16>
    %c0_19 = arith.constant 0 : index
    %c0_20 = arith.constant 0 : index
    %88 = vector.load %arg2[%c0_19, %c0_20] : memref<256x1024xbf16, #tpu.memory_space<vmem>>, vector<256x1024xbf16>
    %cst_21 = arith.constant dense<0.000000e+00> : vector<2x1024xf32>
    %89 = tpu.matmul %87, %88, %cst_21 {dimension_numbers = #tpu.dot_dimension_numbers<[1], [0], [0], [1], [0, 0, 1, 1], [], []>} : vector<2x256xbf16>, vector<256x1024xbf16>, vector<2x1024xf32> -> vector<2x1024xf32>
    %90 = arith.index_cast %c2_i32 : i32 to index
    %c0_22 = arith.constant 0 : index
    %c0_23 = arith.constant 0 : index
    %91 = vector.load %arg1[%90, %c0_22, %c0_23] : memref<8x2x1024xf32, #tpu.memory_space<vmem>>, vector<1x2x1024xf32>
    %92 = vector.shape_cast %91 : vector<1x2x1024xf32> to vector<2x1024xf32>
    %93 = arith.addf %89, %92 : vector<2x1024xf32>
    %94 = vector.extract_strided_slice %93 {offsets = [0, 0], sizes = [2, 768], strides = [1, 1]} : vector<2x1024xf32> to vector<2x768xf32>
    %95 = arith.negf %94 : vector<2x768xf32>
    %96 = math.exp %95 : vector<2x768xf32>
    %cst_24 = arith.constant 1.000000e+00 : f32
    %97 = vector.broadcast %cst_24 : f32 to vector<2x768xf32>
    %98 = arith.addf %97, %96 : vector<2x768xf32>
    %99 = arith.divf %97, %98 : vector<2x768xf32>
    %100 = vector.extract_strided_slice %93 {offsets = [0, 768], sizes = [2, 256], strides = [1, 1]} : vector<2x1024xf32> to vector<2x256xf32>
    %101 = math.tanh %100 : vector<2x256xf32>
    %102 = vector.extract_strided_slice %99 {offsets = [0, 0], sizes = [2, 128], strides = [1, 1]} : vector<2x768xf32> to vector<2x128xf32>
    %103 = vector.extract_strided_slice %99 {offsets = [0, 128], sizes = [2, 128], strides = [1, 1]} : vector<2x768xf32> to vector<2x128xf32>
    %104 = vector.extract_strided_slice %99 {offsets = [0, 256], sizes = [2, 128], strides = [1, 1]} : vector<2x768xf32> to vector<2x128xf32>
    %105 = vector.extract_strided_slice %99 {offsets = [0, 384], sizes = [2, 128], strides = [1, 1]} : vector<2x768xf32> to vector<2x128xf32>
    %106 = vector.extract_strided_slice %99 {offsets = [0, 512], sizes = [2, 128], strides = [1, 1]} : vector<2x768xf32> to vector<2x128xf32>
    %107 = vector.extract_strided_slice %99 {offsets = [0, 640], sizes = [2, 128], strides = [1, 1]} : vector<2x768xf32> to vector<2x128xf32>
    %108 = vector.extract_strided_slice %101 {offsets = [0, 0], sizes = [2, 128], strides = [1, 1]} : vector<2x256xf32> to vector<2x128xf32>
    %109 = vector.extract_strided_slice %101 {offsets = [0, 128], sizes = [2, 128], strides = [1, 1]} : vector<2x256xf32> to vector<2x128xf32>
    %110 = arith.mulf %106, %78 : vector<2x128xf32>
    %111 = arith.mulf %105, %109 : vector<2x128xf32>
    %112 = arith.addf %110, %111 : vector<2x128xf32>
    %113 = math.tanh %112 : vector<2x128xf32>
    %114 = arith.mulf %107, %113 : vector<2x128xf32>
    %115 = arith.mulf %103, %83 : vector<2x128xf32>
    %116 = arith.mulf %102, %108 : vector<2x128xf32>
    %117 = arith.addf %115, %116 : vector<2x128xf32>
    %118 = math.tanh %117 : vector<2x128xf32>
    %119 = arith.mulf %104, %118 : vector<2x128xf32>
    %c3_i32 = arith.constant 3 : i32
    %120 = tpu.concatenate %119, %114 in 1 : vector<2x128xf32>, vector<2x128xf32> -> vector<2x256xf32>
    %121 = arith.truncf %120 : vector<2x256xf32> to vector<2x256xbf16>
    %c0_25 = arith.constant 0 : index
    %c0_26 = arith.constant 0 : index
    %122 = vector.load %arg2[%c0_25, %c0_26] : memref<256x1024xbf16, #tpu.memory_space<vmem>>, vector<256x1024xbf16>
    %cst_27 = arith.constant dense<0.000000e+00> : vector<2x1024xf32>
    %123 = tpu.matmul %121, %122, %cst_27 {dimension_numbers = #tpu.dot_dimension_numbers<[1], [0], [0], [1], [0, 0, 1, 1], [], []>} : vector<2x256xbf16>, vector<256x1024xbf16>, vector<2x1024xf32> -> vector<2x1024xf32>
    %124 = arith.index_cast %c3_i32 : i32 to index
    %c0_28 = arith.constant 0 : index
    %c0_29 = arith.constant 0 : index
    %125 = vector.load %arg1[%124, %c0_28, %c0_29] : memref<8x2x1024xf32, #tpu.memory_space<vmem>>, vector<1x2x1024xf32>
    %126 = vector.shape_cast %125 : vector<1x2x1024xf32> to vector<2x1024xf32>
    %127 = arith.addf %123, %126 : vector<2x1024xf32>
    %128 = vector.extract_strided_slice %127 {offsets = [0, 0], sizes = [2, 768], strides = [1, 1]} : vector<2x1024xf32> to vector<2x768xf32>
    %129 = arith.negf %128 : vector<2x768xf32>
    %130 = math.exp %129 : vector<2x768xf32>
    %cst_30 = arith.constant 1.000000e+00 : f32
    %131 = vector.broadcast %cst_30 : f32 to vector<2x768xf32>
    %132 = arith.addf %131, %130 : vector<2x768xf32>
    %133 = arith.divf %131, %132 : vector<2x768xf32>
    %134 = vector.extract_strided_slice %127 {offsets = [0, 768], sizes = [2, 256], strides = [1, 1]} : vector<2x1024xf32> to vector<2x256xf32>
    %135 = math.tanh %134 : vector<2x256xf32>
    %136 = vector.extract_strided_slice %133 {offsets = [0, 0], sizes = [2, 128], strides = [1, 1]} : vector<2x768xf32> to vector<2x128xf32>
    %137 = vector.extract_strided_slice %133 {offsets = [0, 128], sizes = [2, 128], strides = [1, 1]} : vector<2x768xf32> to vector<2x128xf32>
    %138 = vector.extract_strided_slice %133 {offsets = [0, 256], sizes = [2, 128], strides = [1, 1]} : vector<2x768xf32> to vector<2x128xf32>
    %139 = vector.extract_strided_slice %133 {offsets = [0, 384], sizes = [2, 128], strides = [1, 1]} : vector<2x768xf32> to vector<2x128xf32>
    %140 = vector.extract_strided_slice %133 {offsets = [0, 512], sizes = [2, 128], strides = [1, 1]} : vector<2x768xf32> to vector<2x128xf32>
    %141 = vector.extract_strided_slice %133 {offsets = [0, 640], sizes = [2, 128], strides = [1, 1]} : vector<2x768xf32> to vector<2x128xf32>
    %142 = vector.extract_strided_slice %135 {offsets = [0, 0], sizes = [2, 128], strides = [1, 1]} : vector<2x256xf32> to vector<2x128xf32>
    %143 = vector.extract_strided_slice %135 {offsets = [0, 128], sizes = [2, 128], strides = [1, 1]} : vector<2x256xf32> to vector<2x128xf32>
    %144 = arith.mulf %140, %112 : vector<2x128xf32>
    %145 = arith.mulf %139, %143 : vector<2x128xf32>
    %146 = arith.addf %144, %145 : vector<2x128xf32>
    %147 = math.tanh %146 : vector<2x128xf32>
    %148 = arith.mulf %141, %147 : vector<2x128xf32>
    %149 = arith.mulf %137, %117 : vector<2x128xf32>
    %150 = arith.mulf %136, %142 : vector<2x128xf32>
    %151 = arith.addf %149, %150 : vector<2x128xf32>
    %152 = math.tanh %151 : vector<2x128xf32>
    %153 = arith.mulf %138, %152 : vector<2x128xf32>
    %c4_i32 = arith.constant 4 : i32
    %154 = tpu.concatenate %153, %148 in 1 : vector<2x128xf32>, vector<2x128xf32> -> vector<2x256xf32>
    %155 = arith.truncf %154 : vector<2x256xf32> to vector<2x256xbf16>
    %c0_31 = arith.constant 0 : index
    %c0_32 = arith.constant 0 : index
    %156 = vector.load %arg2[%c0_31, %c0_32] : memref<256x1024xbf16, #tpu.memory_space<vmem>>, vector<256x1024xbf16>
    %cst_33 = arith.constant dense<0.000000e+00> : vector<2x1024xf32>
    %157 = tpu.matmul %155, %156, %cst_33 {dimension_numbers = #tpu.dot_dimension_numbers<[1], [0], [0], [1], [0, 0, 1, 1], [], []>} : vector<2x256xbf16>, vector<256x1024xbf16>, vector<2x1024xf32> -> vector<2x1024xf32>
    %158 = arith.index_cast %c4_i32 : i32 to index
    %c0_34 = arith.constant 0 : index
    %c0_35 = arith.constant 0 : index
    %159 = vector.load %arg1[%158, %c0_34, %c0_35] : memref<8x2x1024xf32, #tpu.memory_space<vmem>>, vector<1x2x1024xf32>
    %160 = vector.shape_cast %159 : vector<1x2x1024xf32> to vector<2x1024xf32>
    %161 = arith.addf %157, %160 : vector<2x1024xf32>
    %162 = vector.extract_strided_slice %161 {offsets = [0, 0], sizes = [2, 768], strides = [1, 1]} : vector<2x1024xf32> to vector<2x768xf32>
    %163 = arith.negf %162 : vector<2x768xf32>
    %164 = math.exp %163 : vector<2x768xf32>
    %cst_36 = arith.constant 1.000000e+00 : f32
    %165 = vector.broadcast %cst_36 : f32 to vector<2x768xf32>
    %166 = arith.addf %165, %164 : vector<2x768xf32>
    %167 = arith.divf %165, %166 : vector<2x768xf32>
    %168 = vector.extract_strided_slice %161 {offsets = [0, 768], sizes = [2, 256], strides = [1, 1]} : vector<2x1024xf32> to vector<2x256xf32>
    %169 = math.tanh %168 : vector<2x256xf32>
    %170 = vector.extract_strided_slice %167 {offsets = [0, 0], sizes = [2, 128], strides = [1, 1]} : vector<2x768xf32> to vector<2x128xf32>
    %171 = vector.extract_strided_slice %167 {offsets = [0, 128], sizes = [2, 128], strides = [1, 1]} : vector<2x768xf32> to vector<2x128xf32>
    %172 = vector.extract_strided_slice %167 {offsets = [0, 256], sizes = [2, 128], strides = [1, 1]} : vector<2x768xf32> to vector<2x128xf32>
    %173 = vector.extract_strided_slice %167 {offsets = [0, 384], sizes = [2, 128], strides = [1, 1]} : vector<2x768xf32> to vector<2x128xf32>
    %174 = vector.extract_strided_slice %167 {offsets = [0, 512], sizes = [2, 128], strides = [1, 1]} : vector<2x768xf32> to vector<2x128xf32>
    %175 = vector.extract_strided_slice %167 {offsets = [0, 640], sizes = [2, 128], strides = [1, 1]} : vector<2x768xf32> to vector<2x128xf32>
    %176 = vector.extract_strided_slice %169 {offsets = [0, 0], sizes = [2, 128], strides = [1, 1]} : vector<2x256xf32> to vector<2x128xf32>
    %177 = vector.extract_strided_slice %169 {offsets = [0, 128], sizes = [2, 128], strides = [1, 1]} : vector<2x256xf32> to vector<2x128xf32>
    %178 = arith.mulf %174, %146 : vector<2x128xf32>
    %179 = arith.mulf %173, %177 : vector<2x128xf32>
    %180 = arith.addf %178, %179 : vector<2x128xf32>
    %181 = math.tanh %180 : vector<2x128xf32>
    %182 = arith.mulf %175, %181 : vector<2x128xf32>
    %183 = arith.mulf %171, %151 : vector<2x128xf32>
    %184 = arith.mulf %170, %176 : vector<2x128xf32>
    %185 = arith.addf %183, %184 : vector<2x128xf32>
    %186 = math.tanh %185 : vector<2x128xf32>
    %187 = arith.mulf %172, %186 : vector<2x128xf32>
    %c5_i32 = arith.constant 5 : i32
    %188 = tpu.concatenate %187, %182 in 1 : vector<2x128xf32>, vector<2x128xf32> -> vector<2x256xf32>
    %189 = arith.truncf %188 : vector<2x256xf32> to vector<2x256xbf16>
    %c0_37 = arith.constant 0 : index
    %c0_38 = arith.constant 0 : index
    %190 = vector.load %arg2[%c0_37, %c0_38] : memref<256x1024xbf16, #tpu.memory_space<vmem>>, vector<256x1024xbf16>
    %cst_39 = arith.constant dense<0.000000e+00> : vector<2x1024xf32>
    %191 = tpu.matmul %189, %190, %cst_39 {dimension_numbers = #tpu.dot_dimension_numbers<[1], [0], [0], [1], [0, 0, 1, 1], [], []>} : vector<2x256xbf16>, vector<256x1024xbf16>, vector<2x1024xf32> -> vector<2x1024xf32>
    %192 = arith.index_cast %c5_i32 : i32 to index
    %c0_40 = arith.constant 0 : index
    %c0_41 = arith.constant 0 : index
    %193 = vector.load %arg1[%192, %c0_40, %c0_41] : memref<8x2x1024xf32, #tpu.memory_space<vmem>>, vector<1x2x1024xf32>
    %194 = vector.shape_cast %193 : vector<1x2x1024xf32> to vector<2x1024xf32>
    %195 = arith.addf %191, %194 : vector<2x1024xf32>
    %196 = vector.extract_strided_slice %195 {offsets = [0, 0], sizes = [2, 768], strides = [1, 1]} : vector<2x1024xf32> to vector<2x768xf32>
    %197 = arith.negf %196 : vector<2x768xf32>
    %198 = math.exp %197 : vector<2x768xf32>
    %cst_42 = arith.constant 1.000000e+00 : f32
    %199 = vector.broadcast %cst_42 : f32 to vector<2x768xf32>
    %200 = arith.addf %199, %198 : vector<2x768xf32>
    %201 = arith.divf %199, %200 : vector<2x768xf32>
    %202 = vector.extract_strided_slice %195 {offsets = [0, 768], sizes = [2, 256], strides = [1, 1]} : vector<2x1024xf32> to vector<2x256xf32>
    %203 = math.tanh %202 : vector<2x256xf32>
    %204 = vector.extract_strided_slice %201 {offsets = [0, 0], sizes = [2, 128], strides = [1, 1]} : vector<2x768xf32> to vector<2x128xf32>
    %205 = vector.extract_strided_slice %201 {offsets = [0, 128], sizes = [2, 128], strides = [1, 1]} : vector<2x768xf32> to vector<2x128xf32>
    %206 = vector.extract_strided_slice %201 {offsets = [0, 256], sizes = [2, 128], strides = [1, 1]} : vector<2x768xf32> to vector<2x128xf32>
    %207 = vector.extract_strided_slice %201 {offsets = [0, 384], sizes = [2, 128], strides = [1, 1]} : vector<2x768xf32> to vector<2x128xf32>
    %208 = vector.extract_strided_slice %201 {offsets = [0, 512], sizes = [2, 128], strides = [1, 1]} : vector<2x768xf32> to vector<2x128xf32>
    %209 = vector.extract_strided_slice %201 {offsets = [0, 640], sizes = [2, 128], strides = [1, 1]} : vector<2x768xf32> to vector<2x128xf32>
    %210 = vector.extract_strided_slice %203 {offsets = [0, 0], sizes = [2, 128], strides = [1, 1]} : vector<2x256xf32> to vector<2x128xf32>
    %211 = vector.extract_strided_slice %203 {offsets = [0, 128], sizes = [2, 128], strides = [1, 1]} : vector<2x256xf32> to vector<2x128xf32>
    %212 = arith.mulf %208, %180 : vector<2x128xf32>
    %213 = arith.mulf %207, %211 : vector<2x128xf32>
    %214 = arith.addf %212, %213 : vector<2x128xf32>
    %215 = math.tanh %214 : vector<2x128xf32>
    %216 = arith.mulf %209, %215 : vector<2x128xf32>
    %217 = arith.mulf %205, %185 : vector<2x128xf32>
    %218 = arith.mulf %204, %210 : vector<2x128xf32>
    %219 = arith.addf %217, %218 : vector<2x128xf32>
    %220 = math.tanh %219 : vector<2x128xf32>
    %221 = arith.mulf %206, %220 : vector<2x128xf32>
    %c6_i32 = arith.constant 6 : i32
    %222 = tpu.concatenate %221, %216 in 1 : vector<2x128xf32>, vector<2x128xf32> -> vector<2x256xf32>
    %223 = arith.truncf %222 : vector<2x256xf32> to vector<2x256xbf16>
    %c0_43 = arith.constant 0 : index
    %c0_44 = arith.constant 0 : index
    %224 = vector.load %arg2[%c0_43, %c0_44] : memref<256x1024xbf16, #tpu.memory_space<vmem>>, vector<256x1024xbf16>
    %cst_45 = arith.constant dense<0.000000e+00> : vector<2x1024xf32>
    %225 = tpu.matmul %223, %224, %cst_45 {dimension_numbers = #tpu.dot_dimension_numbers<[1], [0], [0], [1], [0, 0, 1, 1], [], []>} : vector<2x256xbf16>, vector<256x1024xbf16>, vector<2x1024xf32> -> vector<2x1024xf32>
    %226 = arith.index_cast %c6_i32 : i32 to index
    %c0_46 = arith.constant 0 : index
    %c0_47 = arith.constant 0 : index
    %227 = vector.load %arg1[%226, %c0_46, %c0_47] : memref<8x2x1024xf32, #tpu.memory_space<vmem>>, vector<1x2x1024xf32>
    %228 = vector.shape_cast %227 : vector<1x2x1024xf32> to vector<2x1024xf32>
    %229 = arith.addf %225, %228 : vector<2x1024xf32>
    %230 = vector.extract_strided_slice %229 {offsets = [0, 0], sizes = [2, 768], strides = [1, 1]} : vector<2x1024xf32> to vector<2x768xf32>
    %231 = arith.negf %230 : vector<2x768xf32>
    %232 = math.exp %231 : vector<2x768xf32>
    %cst_48 = arith.constant 1.000000e+00 : f32
    %233 = vector.broadcast %cst_48 : f32 to vector<2x768xf32>
    %234 = arith.addf %233, %232 : vector<2x768xf32>
    %235 = arith.divf %233, %234 : vector<2x768xf32>
    %236 = vector.extract_strided_slice %229 {offsets = [0, 768], sizes = [2, 256], strides = [1, 1]} : vector<2x1024xf32> to vector<2x256xf32>
    %237 = math.tanh %236 : vector<2x256xf32>
    %238 = vector.extract_strided_slice %235 {offsets = [0, 0], sizes = [2, 128], strides = [1, 1]} : vector<2x768xf32> to vector<2x128xf32>
    %239 = vector.extract_strided_slice %235 {offsets = [0, 128], sizes = [2, 128], strides = [1, 1]} : vector<2x768xf32> to vector<2x128xf32>
    %240 = vector.extract_strided_slice %235 {offsets = [0, 256], sizes = [2, 128], strides = [1, 1]} : vector<2x768xf32> to vector<2x128xf32>
    %241 = vector.extract_strided_slice %235 {offsets = [0, 384], sizes = [2, 128], strides = [1, 1]} : vector<2x768xf32> to vector<2x128xf32>
    %242 = vector.extract_strided_slice %235 {offsets = [0, 512], sizes = [2, 128], strides = [1, 1]} : vector<2x768xf32> to vector<2x128xf32>
    %243 = vector.extract_strided_slice %235 {offsets = [0, 640], sizes = [2, 128], strides = [1, 1]} : vector<2x768xf32> to vector<2x128xf32>
    %244 = vector.extract_strided_slice %237 {offsets = [0, 0], sizes = [2, 128], strides = [1, 1]} : vector<2x256xf32> to vector<2x128xf32>
    %245 = vector.extract_strided_slice %237 {offsets = [0, 128], sizes = [2, 128], strides = [1, 1]} : vector<2x256xf32> to vector<2x128xf32>
    %246 = arith.mulf %242, %214 : vector<2x128xf32>
    %247 = arith.mulf %241, %245 : vector<2x128xf32>
    %248 = arith.addf %246, %247 : vector<2x128xf32>
    %249 = math.tanh %248 : vector<2x128xf32>
    %250 = arith.mulf %243, %249 : vector<2x128xf32>
    %251 = arith.mulf %239, %219 : vector<2x128xf32>
    %252 = arith.mulf %238, %244 : vector<2x128xf32>
    %253 = arith.addf %251, %252 : vector<2x128xf32>
    %254 = math.tanh %253 : vector<2x128xf32>
    %255 = arith.mulf %240, %254 : vector<2x128xf32>
    %c7_i32 = arith.constant 7 : i32
    %256 = tpu.concatenate %255, %250 in 1 : vector<2x128xf32>, vector<2x128xf32> -> vector<2x256xf32>
    %257 = arith.truncf %256 : vector<2x256xf32> to vector<2x256xbf16>
    %c0_49 = arith.constant 0 : index
    %c0_50 = arith.constant 0 : index
    %258 = vector.load %arg2[%c0_49, %c0_50] : memref<256x1024xbf16, #tpu.memory_space<vmem>>, vector<256x1024xbf16>
    %cst_51 = arith.constant dense<0.000000e+00> : vector<2x1024xf32>
    %259 = tpu.matmul %257, %258, %cst_51 {dimension_numbers = #tpu.dot_dimension_numbers<[1], [0], [0], [1], [0, 0, 1, 1], [], []>} : vector<2x256xbf16>, vector<256x1024xbf16>, vector<2x1024xf32> -> vector<2x1024xf32>
    %260 = arith.index_cast %c7_i32 : i32 to index
    %c0_52 = arith.constant 0 : index
    %c0_53 = arith.constant 0 : index
    %261 = vector.load %arg1[%260, %c0_52, %c0_53] : memref<8x2x1024xf32, #tpu.memory_space<vmem>>, vector<1x2x1024xf32>
    %262 = vector.shape_cast %261 : vector<1x2x1024xf32> to vector<2x1024xf32>
    %263 = arith.addf %259, %262 : vector<2x1024xf32>
    %264 = vector.extract_strided_slice %263 {offsets = [0, 0], sizes = [2, 768], strides = [1, 1]} : vector<2x1024xf32> to vector<2x768xf32>
    %265 = arith.negf %264 : vector<2x768xf32>
    %266 = math.exp %265 : vector<2x768xf32>
    %cst_54 = arith.constant 1.000000e+00 : f32
    %267 = vector.broadcast %cst_54 : f32 to vector<2x768xf32>
    %268 = arith.addf %267, %266 : vector<2x768xf32>
    %269 = arith.divf %267, %268 : vector<2x768xf32>
    %270 = vector.extract_strided_slice %263 {offsets = [0, 768], sizes = [2, 256], strides = [1, 1]} : vector<2x1024xf32> to vector<2x256xf32>
    %271 = math.tanh %270 : vector<2x256xf32>
    %272 = vector.extract_strided_slice %269 {offsets = [0, 0], sizes = [2, 128], strides = [1, 1]} : vector<2x768xf32> to vector<2x128xf32>
    %273 = vector.extract_strided_slice %269 {offsets = [0, 128], sizes = [2, 128], strides = [1, 1]} : vector<2x768xf32> to vector<2x128xf32>
    %274 = vector.extract_strided_slice %269 {offsets = [0, 256], sizes = [2, 128], strides = [1, 1]} : vector<2x768xf32> to vector<2x128xf32>
    %275 = vector.extract_strided_slice %269 {offsets = [0, 384], sizes = [2, 128], strides = [1, 1]} : vector<2x768xf32> to vector<2x128xf32>
    %276 = vector.extract_strided_slice %269 {offsets = [0, 512], sizes = [2, 128], strides = [1, 1]} : vector<2x768xf32> to vector<2x128xf32>
    %277 = vector.extract_strided_slice %269 {offsets = [0, 640], sizes = [2, 128], strides = [1, 1]} : vector<2x768xf32> to vector<2x128xf32>
    %278 = vector.extract_strided_slice %271 {offsets = [0, 0], sizes = [2, 128], strides = [1, 1]} : vector<2x256xf32> to vector<2x128xf32>
    %279 = vector.extract_strided_slice %271 {offsets = [0, 128], sizes = [2, 128], strides = [1, 1]} : vector<2x256xf32> to vector<2x128xf32>
    %280 = arith.mulf %276, %248 : vector<2x128xf32>
    %281 = arith.mulf %275, %279 : vector<2x128xf32>
    %282 = arith.addf %280, %281 : vector<2x128xf32>
    %283 = math.tanh %282 : vector<2x128xf32>
    %284 = arith.mulf %277, %283 : vector<2x128xf32>
    %285 = arith.mulf %273, %253 : vector<2x128xf32>
    %286 = arith.mulf %272, %278 : vector<2x128xf32>
    %287 = arith.addf %285, %286 : vector<2x128xf32>
    %288 = math.tanh %287 : vector<2x128xf32>
    %289 = arith.mulf %274, %288 : vector<2x128xf32>
    %c8_i32 = arith.constant 8 : i32
    %290 = vector.broadcast %0 : vector<1x128xf32> to vector<2x128xf32>
    %291 = arith.mulf %284, %290 : vector<2x128xf32>
    %cst_55 = arith.constant dense<0.000000e+00> : vector<2xf32>
    %292 = vector.multi_reduction <add>, %291, %cst_55 [1] : vector<2x128xf32> to vector<2xf32>
    %293 = vector.shape_cast %292 : vector<2xf32> to vector<2x1xf32>
    %294 = vector.broadcast %1 : vector<1x1xf32> to vector<2x1xf32>
    %295 = arith.addf %293, %294 : vector<2x1xf32>
    %c0_56 = arith.constant 0 : index
    %c0_57 = arith.constant 0 : index
    %296 = vector.load %arg5[%c0_56, %c0_57] : memref<2x1xf32, #tpu.memory_space<vmem>>, vector<2x1xf32>
    tpu.vector_store %arg5[%c0_56, %c0_57], %295 {strides = array<i32>} : memref<2x1xf32, #tpu.memory_space<vmem>>, vector<2x1xf32>,
    return
  }
}

</mosaic_0001>

<bundles_post_ra>
// kernel: rnn_model_forward.1
= control target key start
LH: loop header
LB: loop body
LE: loop exit
PB: predicated region body
PF: predicated region fallthrough
CT: control target
= control target key end

     0   :  { %s7602_s2 = inlined_call_operand.vmem [shape: bf16[256,1024], index: 2, kind: input, shape index: {}]   ;;  %s7603_s0 = inlined_call_operand.vmem [shape: f32[2,512], index: 0, kind: input, shape index: {}]   ;;  %s7604_s1 = inlined_call_operand.vmem [shape: f32[8,2,1024], index: 1, kind: input, shape index: {}]   ;;  %s7605_s3 = inlined_call_operand.vmem [shape: f32[1,128], index: 3, kind: input, shape index: {}]   ;;  %s7606_s4 = inlined_call_operand.<no memory space> [shape: f32[1,1], index: 4, kind: input, shape index: {}]   ;;  %s7607_s5 = inlined_call_operand.vmem [shape: f32[2,1], index: 5, kind: output, shape index: {}]  }
   0x1   :  { %v3771_v0 = vld [vmem:[%s7602_s2 + $0x1c0] sm:$0xf]  ;;  %v4172_v5 = vld [vmem:[%s7602_s2 + $0x1c4] sm:$0xf] }
   0x2   :  { %v4176_v1 = vld [vmem:[%s7602_s2 + $0x1dc] sm:$0xf0]  ;;  %v3773_v6 = vld [vmem:[%s7602_s2 + $0x1e0] sm:$0xf0] }
   0x3   :  { %v4027_v2 = vld [vmem:[%s7602_s2 + $0x3c0] sm:$0xf]  ;;  %v4535_v3 = vor.u32 %v4176_v1, %v3771_v0  ;;  %v4548_v8 = vor.u32 %v4172_v5, %v3773_v6  ;;  %v4236_v9 = vld [vmem:[%s7602_s2 + $0x3c4] sm:$0xf] }
   0x4   :  { %v4240_v4 = vld [vmem:[%s7602_s2 + $0x3dc] sm:$0xf0]  ;;  %v4029_v10 = vld [vmem:[%s7602_s2 + $0x3e0] sm:$0xf0] }
   0x5   :  { %7870 = vst [vmem:[#allocation3_spill] sm:$0xff] %v4535_v3  ;;  %v4546_v7 = vor.u32 %v4240_v4, %v4027_v2  ;;  %v3739_v11 = vld [vmem:[%s7602_s2 + $0x180] sm:$0xf]  ;;  %847 = vmatpush.bf16.msra.mxu0 %v4535_v3  ;;  %v4560_v12 = vor.u32 %v4236_v9, %v4029_v10  ;;  %873 = vmatpush.bf16.msra.mxu2 %v4548_v8  ;;  %v4164_v18 = vld [vmem:[%s7602_s2 + $0x184] sm:$0xf] }
   0x6   :  { %7872 = vst [vmem:[#allocation5_spill] sm:$0xff] %v4548_v8  ;;  %v4168_v13 = vld [vmem:[%s7602_s2 + $0x19c] sm:$0xf0]  ;;  %v3741_v19 = vld [vmem:[%s7602_s2 + $0x1a0] sm:$0xf0] }
   0x7   :  { %7871 = vst [vmem:[#allocation4_spill] sm:$0xff] %v4546_v7  ;;  %v3995_v14 = vld [vmem:[%s7602_s2 + $0x380] sm:$0xf]  ;;  %860 = vmatpush.bf16.msra.mxu1 %v4546_v7  ;;  %v4573_v16 = vor.u32 %v4168_v13, %v3739_v11  ;;  %v4228_v20 = vld [vmem:[%s7602_s2 + $0x384] sm:$0xf]  ;;  %886 = vmatpush.bf16.msra.mxu3 %v4560_v12  ;;  %v4587_v21 = vor.u32 %v4164_v18, %v3741_v19 }
   0x8   :  { %7873 = vst [vmem:[#allocation6_spill] sm:$0xff] %v4560_v12  ;;  %v4232_v15 = vld [vmem:[%s7602_s2 + $0x39c] sm:$0xf0]  ;;  %v3997_v22 = vld [vmem:[%s7602_s2 + $0x3a0] sm:$0xf0] }
   0x9   :  { %7874 = vst [vmem:[#allocation7_spill] sm:$0xff] %v4573_v16  ;;  %v4575_v17 = vor.u32 %v4232_v15, %v3995_v14  ;;  %v3707_v23 = vld [vmem:[%s7602_s2 + $0x140] sm:$0xf]  ;;  %v4598_v25 = vor.u32 %v4228_v20, %v3997_v22  ;;  %v4156_v28 = vld [vmem:[%s7602_s2 + $0x144] sm:$0xf]  ;;  %848 = vmatpush.bf16.msra.mxu0 %v4573_v16  ;;  %874 = vmatpush.bf16.msra.mxu2 %v4587_v21 }
   0xa   :  { %7876 = vst [vmem:[#allocation9_spill] sm:$0xff] %v4587_v21  ;;  %v4160_v24 = vld [vmem:[%s7602_s2 + $0x15c] sm:$0xf0]  ;;  %v3709_v30 = vld [vmem:[%s7602_s2 + $0x160] sm:$0xf0] }
   0xb   :  { %7875 = vst [vmem:[#allocation8_spill] sm:$0xff] %v4575_v17  ;;  %v3963_v26 = vld [vmem:[%s7602_s2 + $0x340] sm:$0xf]  ;;  %v4610_v29 = vor.u32 %v4160_v24, %v3707_v23  ;;  %v4220_v31 = vld [vmem:[%s7602_s2 + $0x344] sm:$0xf]  ;;  %861 = vmatpush.bf16.msra.mxu1 %v4575_v17  ;;  %v4625_v34 = vor.u32 %v4156_v28, %v3709_v30  ;;  %887 = vmatpush.bf16.msra.mxu3 %v4598_v25 }
   0xc   :  { %7877 = vst [vmem:[#allocation10_spill] sm:$0xff] %v4598_v25  ;;  %v4224_v27 = vld [vmem:[%s7602_s2 + $0x35c] sm:$0xf0]  ;;  %v3965_v32 = vld [vmem:[%s7602_s2 + $0x360] sm:$0xf0] }
   0xd   :  { %7878 = vst [vmem:[#allocation11_spill] sm:$0xff] %v4610_v29  ;;  %v4623_v33 = vor.u32 %v4224_v27, %v3963_v26  ;;  %v3675_v35 = vld [vmem:[%s7602_s2 + $0x100] sm:$0xf]  ;;  %v4637_v38 = vor.u32 %v4220_v31, %v3965_v32  ;;  %v4148_v40 = vld [vmem:[%s7602_s2 + $0x104] sm:$0xf]  ;;  %849 = vmatpush.bf16.msra.mxu0 %v4610_v29  ;;  %875 = vmatpush.bf16.msra.mxu2 %v4625_v34 }
   0xe   :  { %7880 = vst [vmem:[#allocation13_spill] sm:$0xff] %v4625_v34  ;;  %v4152_v36 = vld [vmem:[%s7602_s2 + $0x11c] sm:$0xf0]  ;;  %v3677_v41 = vld [vmem:[%s7602_s2 + $0x120] sm:$0xf0] }
   0xf   :  { %7879 = vst [vmem:[#allocation12_spill] sm:$0xff] %v4623_v33  ;;  %v3931_v37 = vld [vmem:[%s7602_s2 + $0x300] sm:$0xf]  ;;  %v4212_v42 = vld [vmem:[%s7602_s2 + $0x304] sm:$0xf]  ;;  %v4655_v44 = vor.u32 %v4152_v36, %v3675_v35  ;;  %862 = vmatpush.bf16.msra.mxu1 %v4623_v33  ;;  %v4661_v46 = vor.u32 %v4148_v40, %v3677_v41  ;;  %888 = vmatpush.bf16.msra.mxu3 %v4637_v38 }
  0x10   :  { %7881 = vst [vmem:[#allocation14_spill] sm:$0xff] %v4637_v38  ;;  %v4216_v39 = vld [vmem:[%s7602_s2 + $0x31c] sm:$0xf0]  ;;  %v3933_v43 = vld [vmem:[%s7602_s2 + $0x320] sm:$0xf0] }
  0x11   :  { %7882 = vst [vmem:[#allocation15_spill] sm:$0xff] %v4655_v44  ;;  %v4659_v45 = vor.u32 %v4216_v39, %v3931_v37  ;;  %v3643_v47 = vld [vmem:[%s7602_s2 + $0xc0] sm:$0xf]  ;;  %v4673_v50 = vor.u32 %v4212_v42, %v3933_v43  ;;  %v4140_v52 = vld [vmem:[%s7602_s2 + $0xc4] sm:$0xf]  ;;  %850 = vmatpush.bf16.msra.mxu0 %v4655_v44  ;;  %876 = vmatpush.bf16.msra.mxu2 %v4661_v46 }
  0x12   :  { %7884 = vst [vmem:[#allocation17_spill] sm:$0xff] %v4661_v46  ;;  %v4144_v48 = vld [vmem:[%s7602_s2 + $0xdc] sm:$0xf0]  ;;  %v3645_v53 = vld [vmem:[%s7602_s2 + $0xe0] sm:$0xf0] }
  0x13   :  { %7883 = vst [vmem:[#allocation16_spill] sm:$0xff] %v4659_v45  ;;  %v3899_v49 = vld [vmem:[%s7602_s2 + $0x2c0] sm:$0xf]  ;;  %v4204_v54 = vld [vmem:[%s7602_s2 + $0x2c4] sm:$0xf]  ;;  %v4691_v56 = vor.u32 %v4144_v48, %v3643_v47  ;;  %863 = vmatpush.bf16.msra.mxu1 %v4659_v45  ;;  %v4697_v58 = vor.u32 %v4140_v52, %v3645_v53  ;;  %889 = vmatpush.bf16.msra.mxu3 %v4673_v50 }
  0x14   :  { %7885 = vst [vmem:[#allocation18_spill] sm:$0xff] %v4673_v50  ;;  %v4208_v51 = vld [vmem:[%s7602_s2 + $0x2dc] sm:$0xf0]  ;;  %v3901_v55 = vld [vmem:[%s7602_s2 + $0x2e0] sm:$0xf0] }
  0x15   :  { %7886 = vst [vmem:[#allocation19_spill] sm:$0xff] %v4691_v56  ;;  %v4695_v57 = vor.u32 %v4208_v51, %v3899_v49  ;;  %v3611_v59 = vld [vmem:[%s7602_s2 + $0x80] sm:$0xf]  ;;  %v4709_v62 = vor.u32 %v4204_v54, %v3901_v55  ;;  %v4132_v0 = vld [vmem:[%s7602_s2 + $0x84] sm:$0xf]  ;;  %851 = vmatpush.bf16.msra.mxu0 %v4691_v56  ;;  %877 = vmatpush.bf16.msra.mxu2 %v4697_v58 }
  0x16   :  { %7888 = vst [vmem:[#allocation21_spill] sm:$0xff] %v4697_v58  ;;  %v4136_v60 = vld [vmem:[%s7602_s2 + $0x9c] sm:$0xf0]  ;;  %v3613_v1 = vld [vmem:[%s7602_s2 + $0xa0] sm:$0xf0] }
  0x17   :  { %7887 = vst [vmem:[#allocation20_spill] sm:$0xff] %v4695_v57  ;;  %v3867_v61 = vld [vmem:[%s7602_s2 + $0x280] sm:$0xf]  ;;  %v4196_v2 = vld [vmem:[%s7602_s2 + $0x284] sm:$0xf]  ;;  %v4727_v5 = vor.u32 %v4136_v60, %v3611_v59  ;;  %864 = vmatpush.bf16.msra.mxu1 %v4695_v57  ;;  %v4733_v9 = vor.u32 %v4132_v0, %v3613_v1  ;;  %890 = vmatpush.bf16.msra.mxu3 %v4709_v62 }
  0x18   :  { %7889 = vst [vmem:[#allocation22_spill] sm:$0xff] %v4709_v62  ;;  %v4200_v63 = vld [vmem:[%s7602_s2 + $0x29c] sm:$0xf0]  ;;  %v3869_v4 = vld [vmem:[%s7602_s2 + $0x2a0] sm:$0xf0] }
  0x19   :  { %7890 = vst [vmem:[#allocation23_spill] sm:$0xff] %v4727_v5  ;;  %v4731_v6 = vor.u32 %v4200_v63, %v3867_v61  ;;  %v3579_v10 = vld [vmem:[%s7602_s2 + $0x40] sm:$0xf]  ;;  %v4745_v14 = vor.u32 %v4196_v2, %v3869_v4  ;;  %v4124_v18 = vld [vmem:[%s7602_s2 + $0x44] sm:$0xf]  ;;  %852 = vmatpush.bf16.msra.mxu0 %v4727_v5  ;;  %878 = vmatpush.bf16.msra.mxu2 %v4733_v9 }
  0x1a   :  { %7892 = vst [vmem:[#allocation25_spill] sm:$0xff] %v4733_v9  ;;  %v4128_v11 = vld [vmem:[%s7602_s2 + $0x5c] sm:$0xf0]  ;;  %v3581_v19 = vld [vmem:[%s7602_s2 + $0x60] sm:$0xf0] }
  0x1b   :  { %7891 = vst [vmem:[#allocation24_spill] sm:$0xff] %v4731_v6  ;;  %v3835_v13 = vld [vmem:[%s7602_s2 + $0x240] sm:$0xf]  ;;  %v4188_v20 = vld [vmem:[%s7602_s2 + $0x244] sm:$0xf]  ;;  %v4763_v23 = vor.u32 %v4128_v11, %v3579_v10  ;;  %865 = vmatpush.bf16.msra.mxu1 %v4731_v6  ;;  %v4775_v28 = vor.u32 %v4124_v18, %v3581_v19  ;;  %891 = vmatpush.bf16.msra.mxu3 %v4745_v14 }
  0x1c   :  { %7893 = vst [vmem:[#allocation26_spill] sm:$0xff] %v4745_v14  ;;  %v4192_v15 = vld [vmem:[%s7602_s2 + $0x25c] sm:$0xf0]  ;;  %v3837_v22 = vld [vmem:[%s7602_s2 + $0x260] sm:$0xf0] }
  0x1d   :  { %7894 = vst [vmem:[#allocation27_spill] sm:$0xff] %v4763_v23  ;;  %v3547_v24 = vld [vmem:[%s7602_s2] sm:$0xf]  ;;  %v4773_v27 = vor.u32 %v4192_v15, %v3835_v13  ;;  %v4116_v32 = vld [vmem:[%s7602_s2 + $0x4] sm:$0xf]  ;;  %v4787_v35 = vor.u32 %v4188_v20, %v3837_v22  ;;  %853 = vmatpush.bf16.msra.mxu0 %v4763_v23  ;;  %879 = vmatpush.bf16.msra.mxu2 %v4775_v28 }
  0x1e   :  { %v4120_v26 = vld [vmem:[%s7602_s2 + $0x1c] sm:$0xf0]  ;;  %7896 = vst [vmem:[#allocation29_spill] sm:$0xff] %v4775_v28  ;;  %v3549_v36 = vld [vmem:[%s7602_s2 + $0x20] sm:$0xf0] }
  0x1f   :  { %7895 = vst [vmem:[#allocation28_spill] sm:$0xff] %v4773_v27  ;;  %v3803_v30 = vld [vmem:[%s7602_s2 + $0x200] sm:$0xf]  ;;  %v4180_v37 = vld [vmem:[%s7602_s2 + $0x204] sm:$0xf]  ;;  %v4808_v43 = vor.u32 %v4120_v26, %v3547_v24  ;;  %866 = vmatpush.bf16.msra.mxu1 %v4773_v27  ;;  %v4823_v52 = vor.u32 %v4116_v32, %v3549_v36  ;;  %892 = vmatpush.bf16.msra.mxu3 %v4787_v35 }
  0x20   :  { %v4184_v31 = vld [vmem:[%s7602_s2 + $0x21c] sm:$0xf0]  ;;  %7897 = vst [vmem:[#allocation30_spill] sm:$0xff] %v4787_v35  ;;  %v3805_v39 = vld [vmem:[%s7602_s2 + $0x220] sm:$0xf0] }
  0x21   :  { %v3779_v40 = vld [vmem:[%s7602_s2 + $0x1c8] sm:$0xf]  ;;  %7898 = vst [vmem:[#allocation31_spill] sm:$0xff] %v4808_v43  ;;  %v4173_v48 = vld [vmem:[%s7602_s2 + $0x1cc] sm:$0xf]  ;;  %v4821_v51 = vor.u32 %v4184_v31, %v3803_v30  ;;  %v4832_v55 = vor.u32 %v4180_v37, %v3805_v39  ;;  %854 = vmatpush.bf16.msra.mxu0 %v4808_v43  ;;  %880 = vmatpush.bf16.msra.mxu2 %v4823_v52  ;;  %v4872_v18 = vld [vmem:[%s7603_s0] sm:$0xff] }
  0x22   :  { %v4177_v41 = vld [vmem:[%s7602_s2 + $0x1e4] sm:$0xf0]  ;;  %v3781_v49 = vld [vmem:[%s7602_s2 + $0x1e8] sm:$0xf0]  ;;  %7900 = vst [vmem:[#allocation33_spill] sm:$0xff] %v4823_v52 }
  0x23   :  { %v4035_v42 = vld [vmem:[%s7602_s2 + $0x3c8] sm:$0xf]  ;;  %7899 = vst [vmem:[#allocation32_spill] sm:$0xff] %v4821_v51  ;;  %v4237_v53 = vld [vmem:[%s7602_s2 + $0x3cc] sm:$0xf]  ;;  %v4834_v59 = vor.u32 %v4177_v41, %v3779_v40  ;;  %v4838_v61 = vor.u32 %v4173_v48, %v3781_v49  ;;  %867 = vmatpush.bf16.msra.mxu1 %v4821_v51  ;;  %893 = vmatpush.bf16.msra.mxu3 %v4832_v55 }
  0x24   :  { %v4241_v47 = vld [vmem:[%s7602_s2 + $0x3e4] sm:$0xf0]  ;;  %v4037_v54 = vld [vmem:[%s7602_s2 + $0x3e8] sm:$0xf0]  ;;  %7901 = vst [vmem:[#allocation34_spill] sm:$0xff] %v4832_v55 }
  0x25   :  { %7902 = vst [vmem:[#allocation35_spill] sm:$0xff] %v4834_v59  ;;  %v4836_v60 = vor.u32 %v4241_v47, %v4035_v42  ;;  %v3747_v63 = vld [vmem:[%s7602_s2 + $0x188] sm:$0xf]  ;;  %v4850_v2 = vor.u32 %v4237_v53, %v4037_v54  ;;  %v4165_v10 = vld [vmem:[%s7602_s2 + $0x18c] sm:$0xf]  ;;  %899 = vmatpush.bf16.msrb.mxu0 %v4834_v59  ;;  %925 = vmatpush.bf16.msrb.mxu2 %v4838_v61 }
  0x26   :  { %7904 = vst [vmem:[#allocation37_spill] sm:$0xff] %v4838_v61  ;;  %v4169_v0 = vld [vmem:[%s7602_s2 + $0x1a4] sm:$0xf0]  ;;  %v3749_v11 = vld [vmem:[%s7602_s2 + $0x1a8] sm:$0xf0] }
  0x27   :  { %7903 = vst [vmem:[#allocation36_spill] sm:$0xff] %v4836_v60  ;;  %v4003_v1 = vld [vmem:[%s7602_s2 + $0x388] sm:$0xf]  ;;  %v4229_v13 = vld [vmem:[%s7602_s2 + $0x38c] sm:$0xf]  ;;  %v4876_v19 = vor.u32 %v4169_v0, %v3747_v63  ;;  %912 = vmatpush.bf16.msrb.mxu1 %v4836_v60  ;;  %v4883_v24 = vor.u32 %v4165_v10, %v3749_v11  ;;  %938 = vmatpush.bf16.msrb.mxu3 %v4850_v2 }
  0x28   :  { %7905 = vst [vmem:[#allocation38_spill] sm:$0xff] %v4850_v2  ;;  %v4233_v4 = vld [vmem:[%s7602_s2 + $0x3a4] sm:$0xf0]  ;;  %v4005_v15 = vld [vmem:[%s7602_s2 + $0x3a8] sm:$0xf0] }
  0x29   :  { %7906 = vst [vmem:[#allocation39_spill] sm:$0xff] %v4876_v19  ;;  %v3544_v20 = vmul.f32 -1.442695, %v4872_v18  ;;  %v4881_v22 = vor.u32 %v4233_v4, %v4003_v1  ;;  %v3715_v26 = vld [vmem:[%s7602_s2 + $0x148] sm:$0xf]  ;;  %v4895_v32 = vor.u32 %v4229_v13, %v4005_v15  ;;  %900 = vmatpush.bf16.msrb.mxu0 %v4876_v19  ;;  %926 = vmatpush.bf16.msrb.mxu2 %v4883_v24 }
  0x2a   :  { %7908 = vst [vmem:[#allocation41_spill] sm:$0xff] %v4883_v24  ;;  %v4161_v30 = vld [vmem:[%s7602_s2 + $0x164] sm:$0xf0]  ;;  %v4157_v37 = vld [vmem:[%s7602_s2 + $0x14c] sm:$0xf] }
  0x2b   :  { %7907 = vst [vmem:[#allocation40_spill] sm:$0xff] %v4881_v22  ;;  %v3971_v31 = vld [vmem:[%s7602_s2 + $0x348] sm:$0xf]  ;;  %v3717_v39 = vld [vmem:[%s7602_s2 + $0x168] sm:$0xf0]  ;;  %4247 = vpow2.f32 %v3544_v20  ;;  %v4913_v42 = vor.u32 %v4161_v30, %v3715_v26  ;;  %913 = vmatpush.bf16.msrb.mxu1 %v4881_v22  ;;  %939 = vmatpush.bf16.msrb.mxu3 %v4895_v32 }
  0x2c   :  { %7909 = vst [vmem:[#allocation42_spill] sm:$0xff] %v4895_v32  ;;  %v4225_v36 = vld [vmem:[%s7602_s2 + $0x364] sm:$0xf0]  ;;  %v4221_v40 = vld [vmem:[%s7602_s2 + $0x34c] sm:$0xf]  ;;  %v4919_v48 = vor.u32 %v4157_v37, %v3717_v39 }
  0x2d   :  { %v3973_v41 = vld [vmem:[%s7602_s2 + $0x368] sm:$0xf0]  ;;  %7910 = vst [vmem:[#allocation43_spill] sm:$0xff] %v4913_v42  ;;  %v4917_v47 = vor.u32 %v4225_v36, %v3971_v31  ;;  %v3683_v49 = vld [vmem:[%s7602_s2 + $0x108] sm:$0xf]  ;;  %901 = vmatpush.bf16.msrb.mxu0 %v4913_v42 }
  0x2e   :  { %7912 = vst [vmem:[#allocation45_spill] sm:$0xff] %v4919_v48  ;;  %v4153_v53 = vld [vmem:[%s7602_s2 + $0x124] sm:$0xf0]  ;;  %v4931_v63 = vor.u32 %v4221_v40, %v3973_v41  ;;  %v4149_v1 = vld [vmem:[%s7602_s2 + $0x10c] sm:$0xf]  ;;  %927 = vmatpush.bf16.msrb.mxu2 %v4919_v48 }
  0x2f   :  { %7911 = vst [vmem:[#allocation44_spill] sm:$0xff] %v4917_v47  ;;  %v3939_v54 = vld [vmem:[%s7602_s2 + $0x308] sm:$0xf]  ;;  %v3685_v4 = vld [vmem:[%s7602_s2 + $0x128] sm:$0xf0]  ;;  %v4949_v15 = vor.u32 %v4153_v53, %v3683_v49  ;;  %914 = vmatpush.bf16.msrb.mxu1 %v4917_v47  ;;  %v7608_v53 = vmov 0.0|0.0  }
  0x30   :  { %7913 = vst [vmem:[#allocation46_spill] sm:$0xff] %v4931_v63  ;;  %v4217_v0 = vld [vmem:[%s7602_s2 + $0x324] sm:$0xf0]  ;;  %v4213_v10 = vld [vmem:[%s7602_s2 + $0x30c] sm:$0xf]  ;;  %v4958_v30 = vor.u32 %v4149_v1, %v3685_v4  ;;  %940 = vmatpush.bf16.msrb.mxu3 %v4931_v63  ;;  %868 = vmatmul.bf16.vlgmr.msra.gmra.mxu1 %v7608_v53 }
  0x31   :  { %v3941_v11 = vld [vmem:[%s7602_s2 + $0x328] sm:$0xf0]  ;;  %v4248_v13 = vpop.eup %4247  ;;  %7914 = vst [vmem:[#allocation47_spill] sm:$0xff] %v4949_v15  ;;  %v3651_v20 = vld [vmem:[%s7602_s2 + $0xc8] sm:$0xf]  ;;  %v4956_v26 = vor.u32 %v4217_v0, %v3939_v54  ;;  %894 = vmatmul.bf16.vlgmr.msra.gmra.mxu3 %v7608_v53  ;;  %902 = vmatpush.bf16.msrb.mxu0 %v4949_v15 }
  0x32   :  { %7916 = vst [vmem:[#allocation49_spill] sm:$0xff] %v4958_v30  ;;  %v4960_v31 = vadd.f32 1.0, %v4248_v13  ;;  %v4145_v36 = vld [vmem:[%s7602_s2 + $0xe4] sm:$0xf0]  ;;  %v4969_v39 = vor.u32 %v4213_v10, %v3941_v11  ;;  %v4141_v41 = vld [vmem:[%s7602_s2 + $0xcc] sm:$0xf]  ;;  %928 = vmatpush.bf16.msrb.mxu2 %v4958_v30 }
  0x33   :  { %7915 = vst [vmem:[#allocation48_spill] sm:$0xff] %v4956_v26  ;;  %v3907_v37 = vld [vmem:[%s7602_s2 + $0x2c8] sm:$0xf]  ;;  %v3653_v49 = vld [vmem:[%s7602_s2 + $0xe8] sm:$0xf0]  ;;  %v4990_v1 = vor.u32 %v4145_v36, %v3651_v20  ;;  %915 = vmatpush.bf16.msrb.mxu1 %v4956_v26 }
  0x34   :  { %7917 = vst [vmem:[#allocation50_spill] sm:$0xff] %v4969_v39  ;;  %v4209_v40 = vld [vmem:[%s7602_s2 + $0x2e4] sm:$0xf0]  ;;  %4249 = vrcp.f32 %v4960_v31  ;;  %v4205_v54 = vld [vmem:[%s7602_s2 + $0x2cc] sm:$0xf]  ;;  %v4996_v10 = vor.u32 %v4141_v41, %v3653_v49  ;;  %941 = vmatpush.bf16.msrb.mxu3 %v4969_v39  ;;  %v45_v49 = vrot.slane %v4872_v18, 6  ;;  %vm34_vm0 = vweird.f32 %v4960_v31 }
  0x35   :  { %v3909_v0 = vld [vmem:[%s7602_s2 + $0x2e8] sm:$0xf0]  ;;  %7918 = vst [vmem:[#allocation51_spill] sm:$0xff] %v4990_v1  ;;  %v4994_v4 = vor.u32 %v4209_v40, %v3907_v37  ;;  %v3619_v11 = vld [vmem:[%s7602_s2 + $0x88] sm:$0xf]  ;;  %903 = vmatpush.bf16.msrb.mxu0 %v4990_v1 }
  0x36   :  { %7920 = vst [vmem:[#allocation53_spill] sm:$0xff] %v4996_v10  ;;  %v4137_v13 = vld [vmem:[%s7602_s2 + $0xa4] sm:$0xf0]  ;;  %v5008_v36 = vor.u32 %v4205_v54, %v3909_v0  ;;  %v4133_v40 = vld [vmem:[%s7602_s2 + $0x8c] sm:$0xf]  ;;  %929 = vmatpush.bf16.msrb.mxu2 %v4996_v10  ;;  %v40_v10 = vand.u32 2147483648, %v4960_v31  ;;  %4251 = vtanh.f32 %v45_v49 }
  0x37   :  { %7919 = vst [vmem:[#allocation52_spill] sm:$0xff] %v4994_v4  ;;  %v3875_v20 = vld [vmem:[%s7602_s2 + $0x288] sm:$0xf]  ;;  %v3621_v41 = vld [vmem:[%s7602_s2 + $0xa8] sm:$0xf0]  ;;  %v5028_v30 = vor.u32 %v4137_v13, %v3619_v11  ;;  %916 = vmatpush.bf16.msrb.mxu1 %v4994_v4 }
  0x38   :  { %7921 = vst [vmem:[#allocation54_spill] sm:$0xff] %v5008_v36  ;;  %v4201_v37 = vld [vmem:[%s7602_s2 + $0x2a4] sm:$0xf0]  ;;  %v4197_v53 = vld [vmem:[%s7602_s2 + $0x28c] sm:$0xf]  ;;  %v5034_v48 = vor.u32 %v4133_v40, %v3621_v41  ;;  %942 = vmatpush.bf16.msrb.mxu3 %v5008_v36 }
  0x39   :  { %v3877_v54 = vld [vmem:[%s7602_s2 + $0x2a8] sm:$0xf0]  ;;  %v38_v0 = vand.u32 2147483647, %v4960_v31  ;;  %7922 = vst [vmem:[#allocation55_spill] sm:$0xff] %v5028_v30  ;;  %v5032_v18 = vor.u32 %v4201_v37, %v3875_v20  ;;  %904 = vmatpush.bf16.msrb.mxu0 %v5028_v30 }
  0x3a   :  { %v4250_v15 = vpop.eup %4249  ;;  %7924 = vst [vmem:[#allocation57_spill] sm:$0xff] %v5034_v48  ;;  %v3587_v42 = vld [vmem:[%s7602_s2 + $0x48] sm:$0xf]  ;;  %v5047_v20 = vor.u32 %v4197_v53, %v3877_v54  ;;  %v4125_v40 = vld [vmem:[%s7602_s2 + $0x4c] sm:$0xf]  ;;  %930 = vmatpush.bf16.msrb.mxu2 %v5034_v48 }
  0x3b   :  { %7923 = vst [vmem:[#allocation56_spill] sm:$0xff] %v5032_v18  ;;  %v4129_v24 = vld [vmem:[%s7602_s2 + $0x64] sm:$0xf0]  ;;  %v30_v13 = vmul.f32 %v4250_v15, %v4960_v31  ;;  %v3589_v41 = vld [vmem:[%s7602_s2 + $0x68] sm:$0xf0]  ;;  %vm35_vm1 = vweird.f32 %v4250_v15  ;;  %917 = vmatpush.bf16.msrb.mxu1 %v5032_v18  ;;  %vm39_vm3 = vcmp.eq.f32.partialorder %v38_v0, 8.507059e+37 }
  0x3c   :  { %v3843_v11 = vld [vmem:[%s7602_s2 + $0x248] sm:$0xf]  ;;  %7925 = vst [vmem:[#allocation58_spill] sm:$0xff] %v5047_v20  ;;  %v4189_v53 = vld [vmem:[%s7602_s2 + $0x24c] sm:$0xf]  ;;  %v5067_v36 = vor.u32 %v4129_v24, %v3587_v42  ;;  %v5079_v19 = vor.u32 %v4125_v40, %v3589_v41  ;;  %943 = vmatpush.bf16.msrb.mxu3 %v5047_v20  ;;  %vm5105_vm2 = vmor %vm34_vm0, %vm35_vm1  ;;  %v41_v41 = vor.u32 1.1754944e-38, %v40_v10  ;;  %v4252_v26 = vpop.eup %4251 }
  0x3d   :  { %v4193_v37 = vld [vmem:[%s7602_s2 + $0x264] sm:$0xf0]  ;;  %v3845_v54 = vld [vmem:[%s7602_s2 + $0x268] sm:$0xf0]  ;;  %v31_v1 = vsub.f32 1.0, %v30_v13 }
  0x3e   :  { %7926 = vst [vmem:[#allocation59_spill] sm:$0xff] %v5067_v36  ;;  %v3555_v49 = vld [vmem:[%s7602_s2 + $0x8] sm:$0xf]  ;;  %v5077_v13 = vor.u32 %v4193_v37, %v3843_v11  ;;  %v4117_v30 = vld [vmem:[%s7602_s2 + $0xc] sm:$0xf]  ;;  %v5091_v48 = vor.u32 %v4189_v53, %v3845_v54  ;;  %905 = vmatpush.bf16.msrb.mxu0 %v5067_v36  ;;  %931 = vmatpush.bf16.msrb.mxu2 %v5079_v19 }
  0x3f   :  { %v4121_v4 = vld [vmem:[%s7602_s2 + $0x24] sm:$0xf0]  ;;  %7928 = vst [vmem:[#allocation61_spill] sm:$0xff] %v5079_v19  ;;  %v32_v39 = vmul.f32 %v4250_v15, %v31_v1  ;;  %v3557_v11 = vld [vmem:[%s7602_s2 + $0x28] sm:$0xf0]  ;;  %v7941_v1 = vmov 0.0|0.0  }
  0x40   :  { %7927 = vst [vmem:[#allocation60_spill] sm:$0xff] %v5077_v13  ;;  %v3811_v24 = vld [vmem:[%s7602_s2 + $0x208] sm:$0xf]  ;;  %v4181_v37 = vld [vmem:[%s7602_s2 + $0x20c] sm:$0xf]  ;;  %v5116_v18 = vor.u32 %v4121_v4, %v3555_v49  ;;  %918 = vmatpush.bf16.msrb.mxu1 %v5077_v13  ;;  %944 = vmatpush.bf16.msrb.mxu3 %v5091_v48 }
  0x41   :  { %v4185_v42 = vld [vmem:[%s7602_s2 + $0x224] sm:$0xf0]  ;;  %7929 = vst [vmem:[#allocation62_spill] sm:$0xff] %v5091_v48  ;;  %v3813_v40 = vld [vmem:[%s7602_s2 + $0x228] sm:$0xf0]  ;;  %v33_v20 = vadd.f32 %v4250_v15, %v32_v39  ;;  %v5128_v39 = vor.u32 %v4117_v30, %v3557_v11 }
  0x42   :  { %v4043_v53 = vld [vmem:[%s7602_s2 + $0x3d0] sm:$0xf]  ;;  %7932 = vst [vmem:[#allocation63_spill] sm:$0xff] %v5116_v18  ;;  %v4238_v31 = vld [vmem:[%s7602_s2 + $0x3d4] sm:$0xf]  ;;  %v5126_v61 = vor.u32 %v4185_v42, %v3811_v24  ;;  %v5133_v0 = vor.u32 %v4181_v37, %v3813_v40  ;;  %906 = vmatpush.bf16.msrb.mxu0 %v5116_v18 }
  0x43   :  { %v4242_v54 = vld [vmem:[%s7602_s2 + $0x3ec] sm:$0xf0]  ;;  %v4045_v10 = vld [vmem:[%s7602_s2 + $0x3f0] sm:$0xf0]  ;;  %7934 = vst [vmem:[#allocation65_spill] sm:$0xff] %v5128_v39  ;;  %v37_v4 = vsel %vm5105_vm2, %v4250_v15, %v33_v20  ;;  %932 = vmatpush.bf16.msrb.mxu2 %v5128_v39 }
  0x44   :  { %7933 = vst [vmem:[#allocation64_spill] sm:$0xff] %v5126_v61  ;;  %v5135_v49 = vor.u32 %v4242_v54, %v4043_v53  ;;  %v42_v36 = vsel %vm39_vm3, %v41_v41, %v37_v4  ;;  %v5137_v59 = vor.u32 %v4238_v31, %v4045_v10  ;;  %v4011_v19 = vld [vmem:[%s7602_s2 + $0x390] sm:$0xf]  ;;  %v4230_v15 = vld [vmem:[%s7602_s2 + $0x394] sm:$0xf]  ;;  %919 = vmatpush.bf16.msrb.mxu1 %v5126_v61 }
  0x45   :  { %7935 = vst [vmem:[#allocation66_spill] sm:$0xff] %v5133_v0  ;;  %v4234_v30 = vld [vmem:[%s7602_s2 + $0x3ac] sm:$0xf0]  ;;  %v5145_v24 = vmul.f32 %v4252_v26, %v42_v36  ;;  %v4013_v20 = vld [vmem:[%s7602_s2 + $0x3b0] sm:$0xf0]  ;;  %945 = vmatpush.bf16.msrb.mxu3 %v5133_v0  ;;  %v51_v41 = vrot.slane %v42_v36, 4 }
  0x46   :  { %7936 = vst [vmem:[#allocation67_spill] sm:$0xff] %v5135_v49  ;;  %v5159_v26 = vor.u32 %v4234_v30, %v4011_v19  ;;  %v5162_v42 = vor.u32 %v4230_v15, %v4013_v20  ;;  %v3979_v11 = vld [vmem:[%s7602_s2 + $0x350] sm:$0xf]  ;;  %v4222_v40 = vld [vmem:[%s7602_s2 + $0x354] sm:$0xf] }
  0x47   :  { %7937 = vst [vmem:[#allocation68_spill] sm:$0xff] %v5137_v59  ;;  %4253 = vtanh.f32 %v5145_v24  ;;  %v4226_v37 = vld [vmem:[%s7602_s2 + $0x36c] sm:$0xf0]  ;;  %v3981_v19 = vld [vmem:[%s7602_s2 + $0x370] sm:$0xf0]  ;;  %920 = vmatmul.bf16.vlgmr.msrb.gmra.mxu1 %v7941_v1 }
  0x48   :  { %7938 = vst [vmem:[#allocation69_spill] sm:$0xff] %v5145_v24  ;;  %964 = vmatpush.bf16.msra.mxu1 %v5135_v49  ;;  %946 = vmatmul.bf16.vlgmr.msrb.gmra.mxu3 %v7941_v1  ;;  %v3787_v53 = vld [vmem:[%s7602_s2 + $0x1d0] sm:$0xf]  ;;  %v5185_v31 = vor.u32 %v4226_v37, %v3979_v11  ;;  %v4174_v10 = vld [vmem:[%s7602_s2 + $0x1d4] sm:$0xf]  ;;  %v5194_v4 = vor.u32 %v4222_v40, %v3981_v19 }
  0x49   :  { %7939 = vst [vmem:[#allocation70_spill] sm:$0xff] %v5159_v26  ;;  %990 = vmatpush.bf16.msra.mxu3 %v5137_v59  ;;  %v4178_v54 = vld [vmem:[%s7602_s2 + $0x1ec] sm:$0xf0]  ;;  %v3789_v36 = vld [vmem:[%s7602_s2 + $0x1f0] sm:$0xf0] }
  0x4a   :  { %7940 = vst [vmem:[#allocation71_spill] sm:$0xff] %v5162_v42  ;;  %v3947_v30 = vld [vmem:[%s7602_s2 + $0x310] sm:$0xf]  ;;  %v4214_v11 = vld [vmem:[%s7602_s2 + $0x314] sm:$0xf]  ;;  %v5208_v40 = vor.u32 %v4178_v54, %v3787_v53  ;;  %v5210_v19 = vor.u32 %v4174_v10, %v3789_v36 }
  0x4b   :  { %7942 = vst [vmem:[#allocation72_spill] sm:$0xff] %v5185_v31  ;;  %v4218_v20 = vld [vmem:[%s7602_s2 + $0x32c] sm:$0xf0]  ;;  %v3949_v37 = vld [vmem:[%s7602_s2 + $0x330] sm:$0xf0] }
  0x4c   :  { %965 = vmatpush.bf16.msra.mxu1 %v5159_v26  ;;  %7943 = vst [vmem:[#allocation73_spill] sm:$0xff] %v5194_v4  ;;  %v3755_v26 = vld [vmem:[%s7602_s2 + $0x190] sm:$0xf]  ;;  %v3757_v53 = vld [vmem:[%s7602_s2 + $0x1b0] sm:$0xf0]  ;;  %v5228_v54 = vor.u32 %v4218_v20, %v3947_v30  ;;  %v5230_v10 = vor.u32 %v4214_v11, %v3949_v37 }
  0x4d   :  { %991 = vmatpush.bf16.msra.mxu3 %v5162_v42  ;;  %v4254_v15 = vpop.eup %4253  ;;  %7944 = vst [vmem:[#allocation74_spill] sm:$0xff] %v5208_v40  ;;  %v4170_v59 = vld [vmem:[%s7602_s2 + $0x1ac] sm:$0xf0]  ;;  %v4134_v0 = vld [vmem:[%s7602_s2 + $0x94] sm:$0xf] }
  0x4e   :  { %v53_v42 = vmul.f32 %v4254_v15, %v51_v41  ;;  %7945 = vst [vmem:[#allocation75_spill] sm:$0xff] %v5210_v19  ;;  %v4166_v41 = vld [vmem:[%s7602_s2 + $0x194] sm:$0xf]  ;;  %v3915_v36 = vld [vmem:[%s7602_s2 + $0x2d0] sm:$0xf]  ;;  %v5248_v30 = vor.u32 %v4170_v59, %v3755_v26 }
  0x4f   :  { %7946 = vst [vmem:[#allocation76_spill] sm:$0xff] %v5228_v54  ;;  %v4206_v15 = vld [vmem:[%s7602_s2 + $0x2d4] sm:$0xf]  ;;  %v5250_v20 = vor.u32 %v4166_v41, %v3757_v53  ;;  %v3723_v11 = vld [vmem:[%s7602_s2 + $0x150] sm:$0xf] }
  0x50   :  { %966 = vmatpush.bf16.msra.mxu1 %v5185_v31  ;;  %v5219_v49 = vpack.c.bf16 %v53_v42, %v53_v42  ;;  %7947 = vst [vmem:[#allocation77_spill] sm:$0xff] %v5230_v10  ;;  %v4210_v42 = vld [vmem:[%s7602_s2 + $0x2ec] sm:$0xf0]  ;;  %v4158_v31 = vld [vmem:[%s7602_s2 + $0x154] sm:$0xf] }
  0x51   :  { %992 = vmatpush.bf16.msra.mxu3 %v5194_v4  ;;  %v3917_v4 = vld [vmem:[%s7602_s2 + $0x2f0] sm:$0xf0]  ;;  %7948 = vst [vmem:[#allocation78_spill] sm:$0xff] %v5248_v30  ;;  %v4162_v37 = vld [vmem:[%s7602_s2 + $0x16c] sm:$0xf0]  ;;  %v5266_v59 = vor.u32 %v4210_v42, %v3915_v36 }
  0x52   :  { %881 = vmatmul.bf16.vlgmr.msra.gmra.mxu2 %v5219_v49  ;;  %855 = vmatmul.bf16.vlgmr.msra.gmra.mxu0 %v5219_v49  ;;  %7949 = vst [vmem:[#allocation79_spill] sm:$0xff] %v5250_v20  ;;  %v5268_v26 = vor.u32 %v4206_v15, %v3917_v4  ;;  %v3883_v41 = vld [vmem:[%s7602_s2 + $0x290] sm:$0xf]  ;;  %v5284_v4 = vor.u32 %v4162_v37, %v3723_v11  ;;  %v4171_v61 = vld [vmem:[%s7602_s2 + $0x1b4] sm:$0xf0] }
  0x53   :  { %951 = vmatpush.bf16.msra.mxu0 %v5208_v40  ;;  %977 = vmatpush.bf16.msra.mxu2 %v5210_v19  ;;  %v3725_v19 = vld [vmem:[%s7602_s2 + $0x170] sm:$0xf0]  ;;  %7950 = vst [vmem:[#allocation80_spill] sm:$0xff] %v5266_v59  ;;  %v4202_v53 = vld [vmem:[%s7602_s2 + $0x2ac] sm:$0xf0] }
  0x54   :  { %967 = vmatpush.bf16.msra.mxu1 %v5228_v54  ;;  %7951 = vst [vmem:[#allocation81_spill] sm:$0xff] %v5268_v26  ;;  %v4198_v40 = vld [vmem:[%s7602_s2 + $0x294] sm:$0xf]  ;;  %v5286_v36 = vor.u32 %v4158_v31, %v3725_v19  ;;  %v3691_v42 = vld [vmem:[%s7602_s2 + $0x110] sm:$0xf]  ;;  %v5302_v31 = vor.u32 %v4202_v53, %v3883_v41 }
  0x55   :  { %993 = vmatpush.bf16.msra.mxu3 %v5230_v10  ;;  %v3885_v10 = vld [vmem:[%s7602_s2 + $0x2b0] sm:$0xf0]  ;;  %7952 = vst [vmem:[#allocation82_spill] sm:$0xff] %v5284_v4  ;;  %v4154_v15 = vld [vmem:[%s7602_s2 + $0x12c] sm:$0xf0] }
  0x56   :  { %7953 = vst [vmem:[#allocation83_spill] sm:$0xff] %v5286_v36  ;;  %v4150_v54 = vld [vmem:[%s7602_s2 + $0x114] sm:$0xf]  ;;  %v5304_v19 = vor.u32 %v4198_v40, %v3885_v10  ;;  %v3851_v11 = vld [vmem:[%s7602_s2 + $0x250] sm:$0xf]  ;;  %v5320_v40 = vor.u32 %v4154_v15, %v3691_v42 }
  0x57   :  { %952 = vmatpush.bf16.msra.mxu0 %v5248_v30  ;;  %978 = vmatpush.bf16.msra.mxu2 %v5250_v20  ;;  %v3693_v20 = vld [vmem:[%s7602_s2 + $0x130] sm:$0xf0]  ;;  %7954 = vst [vmem:[#allocation84_spill] sm:$0xff] %v5302_v31  ;;  %v4194_v37 = vld [vmem:[%s7602_s2 + $0x26c] sm:$0xf0] }
  0x58   :  { %968 = vmatpush.bf16.msra.mxu1 %v5266_v59  ;;  %7955 = vst [vmem:[#allocation85_spill] sm:$0xff] %v5304_v19  ;;  %v4190_v30 = vld [vmem:[%s7602_s2 + $0x254] sm:$0xf]  ;;  %v5322_v10 = vor.u32 %v4150_v54, %v3693_v20  ;;  %v3659_v41 = vld [vmem:[%s7602_s2 + $0xd0] sm:$0xf]  ;;  %v5338_v54 = vor.u32 %v4194_v37, %v3851_v11 }
  0x59   :  { %994 = vmatpush.bf16.msra.mxu3 %v5268_v26  ;;  %v3853_v26 = vld [vmem:[%s7602_s2 + $0x270] sm:$0xf0]  ;;  %7956 = vst [vmem:[#allocation86_spill] sm:$0xff] %v5320_v40  ;;  %v4146_v53 = vld [vmem:[%s7602_s2 + $0xec] sm:$0xf0] }
  0x5a   :  { %7957 = vst [vmem:[#allocation87_spill] sm:$0xff] %v5322_v10  ;;  %v4142_v59 = vld [vmem:[%s7602_s2 + $0xd4] sm:$0xf]  ;;  %v5340_v20 = vor.u32 %v4190_v30, %v3853_v26  ;;  %v3819_v42 = vld [vmem:[%s7602_s2 + $0x210] sm:$0xf] }
  0x5b   :  { %953 = vmatpush.bf16.msra.mxu0 %v5284_v4  ;;  %979 = vmatpush.bf16.msra.mxu2 %v5286_v36  ;;  %v3661_v36 = vld [vmem:[%s7602_s2 + $0xf0] sm:$0xf0]  ;;  %7958 = vst [vmem:[#allocation88_spill] sm:$0xff] %v5338_v54  ;;  %v4186_v15 = vld [vmem:[%s7602_s2 + $0x22c] sm:$0xf0] }
  0x5c   :  { %969 = vmatpush.bf16.msra.mxu1 %v5302_v31  ;;  %7959 = vst [vmem:[#allocation89_spill] sm:$0xff] %v5340_v20  ;;  %v4182_v4 = vld [vmem:[%s7602_s2 + $0x214] sm:$0xf]  ;;  %v4051_v30 = vld [vmem:[%s7602_s2 + $0x3d8] sm:$0xf]  ;;  %v5368_v31 = vor.u32 %v4146_v53, %v3659_v41  ;;  %v5370_v24 = vor.u32 %v4142_v59, %v3661_v36  ;;  %v5386_v59 = vor.u32 %v4186_v15, %v3819_v42 }
  0x5d   :  { %995 = vmatpush.bf16.msra.mxu3 %v5304_v19  ;;  %v3821_v19 = vld [vmem:[%s7602_s2 + $0x230] sm:$0xf0]  ;;  %v4243_v26 = vld [vmem:[%s7602_s2 + $0x3f4] sm:$0xf0]  ;;  %v4239_v11 = vld [vmem:[%s7602_s2 + $0x3dc] sm:$0xf] }
  0x5e   :  { %v4053_v37 = vld [vmem:[%s7602_s2 + $0x3f8] sm:$0xf0]  ;;  %7960 = vst [vmem:[#allocation90_spill] sm:$0xff] %v5368_v31  ;;  %v3627_v39 = vld [vmem:[%s7602_s2 + $0x90] sm:$0xf]  ;;  %v5388_v36 = vor.u32 %v4182_v4, %v3821_v19  ;;  %v5390_v41 = vor.u32 %v4243_v26, %v4051_v30 }
  0x5f   :  { %954 = vmatpush.bf16.msra.mxu0 %v5320_v40  ;;  %980 = vmatpush.bf16.msra.mxu2 %v5322_v10  ;;  %7961 = vst [vmem:[#allocation91_spill] sm:$0xff] %v5370_v24  ;;  %v4138_v18 = vld [vmem:[%s7602_s2 + $0xac] sm:$0xf0]  ;;  %v3629_v10 = vld [vmem:[%s7602_s2 + $0xb0] sm:$0xf0]  ;;  %v5392_v53 = vor.u32 %v4239_v11, %v4053_v37 }
  0x60   :  { %970 = vmatpush.bf16.msra.mxu1 %v5338_v54  ;;  %7962 = vst [vmem:[#allocation92_spill] sm:$0xff] %v5386_v59  ;;  %v4019_v40 = vld [vmem:[%s7602_s2 + $0x398] sm:$0xf]  ;;  %v4231_v4 = vld [vmem:[%s7602_s2 + $0x39c] sm:$0xf]  ;;  %v5410_v42 = vor.u32 %v4138_v18, %v3627_v39  ;;  %v5412_v15 = vor.u32 %v4134_v0, %v3629_v10 }
  0x61   :  { %996 = vmatpush.bf16.msra.mxu3 %v5340_v20  ;;  %7963 = vst [vmem:[#allocation93_spill] sm:$0xff] %v5388_v36  ;;  %v4235_v20 = vld [vmem:[%s7602_s2 + $0x3b4] sm:$0xf0]  ;;  %v4021_v19 = vld [vmem:[%s7602_s2 + $0x3b8] sm:$0xf0] }
  0x62   :  { %7964 = vst [vmem:[#allocation94_spill] sm:$0xff] %v5390_v41  ;;  %933 = vmatmul.bf16.vlgmr.msrb.gmra.mxu2 %v5219_v49  ;;  %907 = vmatmul.bf16.vlgmr.msrb.gmra.mxu0 %v5219_v49  ;;  %v3595_v30 = vld [vmem:[%s7602_s2 + $0x50] sm:$0xf]  ;;  %v4126_v11 = vld [vmem:[%s7602_s2 + $0x54] sm:$0xf]  ;;  %v5430_v18 = vor.u32 %v4235_v20, %v4019_v40  ;;  %v5432_v39 = vor.u32 %v4231_v4, %v4021_v19 }
  0x63   :  { %7965 = vst [vmem:[#allocation95_spill] sm:$0xff] %v5392_v53  ;;  %955 = vmatpush.bf16.msra.mxu0 %v5368_v31  ;;  %981 = vmatpush.bf16.msra.mxu2 %v5370_v24  ;;  %v4130_v26 = vld [vmem:[%s7602_s2 + $0x6c] sm:$0xf0]  ;;  %v3597_v37 = vld [vmem:[%s7602_s2 + $0x70] sm:$0xf0] }
  0x64   :  { %7966 = vst [vmem:[#allocation96_spill] sm:$0xff] %v5410_v42  ;;  %971 = vmatpush.bf16.msra.mxu1 %v5386_v59  ;;  %v3987_v0 = vld [vmem:[%s7602_s2 + $0x358] sm:$0xf]  ;;  %v5448_v40 = vor.u32 %v4130_v26, %v3595_v30  ;;  %v5450_v20 = vor.u32 %v4126_v11, %v3597_v37  ;;  %v3563_v4 = vld [vmem:[%s7602_s2 + $0x10] sm:$0xf] }
  0x65   :  { %7967 = vst [vmem:[#allocation97_spill] sm:$0xff] %v5412_v15  ;;  %997 = vmatpush.bf16.msra.mxu3 %v5388_v36  ;;  %v4227_v10 = vld [vmem:[%s7602_s2 + $0x374] sm:$0xf0]  ;;  %v4223_v36 = vld [vmem:[%s7602_s2 + $0x35c] sm:$0xf] }
  0x66   :  { %7968 = vst [vmem:[#allocation98_spill] sm:$0xff] %v5430_v18  ;;  %v4122_v19 = vld [vmem:[%s7602_s2 + $0x2c] sm:$0xf0]  ;;  %v3565_v59 = vld [vmem:[%s7602_s2 + $0x30] sm:$0xf0]  ;;  %v5480_v54 = vor.u32 %v4227_v10, %v3987_v0 }
  0x67   :  { %7969 = vst [vmem:[#allocation99_spill] sm:$0xff] %v5432_v39  ;;  %956 = vmatpush.bf16.msra.mxu0 %v5410_v42  ;;  %982 = vmatpush.bf16.msra.mxu2 %v5412_v15  ;;  %v3795_v30 = vld [vmem:[%s7602_s2 + $0x1d8] sm:$0xf]  ;;  %v4175_v11 = vld [vmem:[%s7602_s2 + $0x1dc] sm:$0xf] }
  0x68   :  { %1016 = vmatpush.bf16.msrb.mxu1 %v5390_v41  ;;  %7970 = vst [vmem:[#allocation100_spill] sm:$0xff] %v5450_v20  ;;  %v4118_v41 = vld [vmem:[%s7602_s2 + $0x14] sm:$0xf]  ;;  %v4179_v26 = vld [vmem:[%s7602_s2 + $0x1f4] sm:$0xf0]  ;;  %998 = vmatmul.bf16.vlgmr.msra.gmra.mxu3 %v7941_v1 }
  0x69   :  { %1042 = vmatpush.bf16.msrb.mxu3 %v5392_v53  ;;  %v3989_v53 = vld [vmem:[%s7602_s2 + $0x378] sm:$0xf0]  ;;  %972 = vmatmul.bf16.vlgmr.msra.gmra.mxu1 %v7941_v1  ;;  %7971 = vst [vmem:[#allocation101_spill] sm:$0xff] %v5480_v54  ;;  %v3955_v42 = vld [vmem:[%s7602_s2 + $0x318] sm:$0xf]  ;;  %v5502_v0 = vor.u32 %v4179_v26, %v3795_v30 }
  0x6a   :  { %v3797_v37 = vld [vmem:[%s7602_s2 + $0x1f8] sm:$0xf0]  ;;  %v5482_v15 = vor.u32 %v4223_v36, %v3989_v53  ;;  %v4219_v24 = vld [vmem:[%s7602_s2 + $0x334] sm:$0xf0]  ;;  %v5498_v36 = vor.u32 %v4122_v19, %v3563_v4  ;;  %v5500_v53 = vor.u32 %v4118_v41, %v3565_v59 }
  0x6b   :  { %v4215_v31 = vld [vmem:[%s7602_s2 + $0x31c] sm:$0xf]  ;;  %957 = vmatpush.bf16.msra.mxu0 %v5448_v40  ;;  %983 = vmatpush.bf16.msra.mxu2 %v5450_v20  ;;  %7975 = vst [vmem:[#allocation105_spill] sm:$0xff] %v5502_v0  ;;  %v5504_v10 = vor.u32 %v4175_v11, %v3797_v37  ;;  %v5520_v41 = vor.u32 %v4219_v24, %v3955_v42  ;;  %v3923_v19 = vld [vmem:[%s7602_s2 + $0x2d8] sm:$0xf]  ;;  %v184_v24 = vld [vmem:[%s7604_s1] sm:$0xff] }
  0x6c   :  { %1017 = vmatpush.bf16.msrb.mxu1 %v5430_v18  ;;  %7972 = vst [vmem:[#allocation102_spill] sm:$0xff] %v5482_v15  ;;  %v3763_v18 = vld [vmem:[%s7602_s2 + $0x198] sm:$0xf]  ;;  %v4167_v20 = vld [vmem:[%s7602_s2 + $0x19c] sm:$0xf] }
  0x6d   :  { %1043 = vmatpush.bf16.msrb.mxu3 %v5432_v39  ;;  %v3957_v39 = vld [vmem:[%s7602_s2 + $0x338] sm:$0xf0]  ;;  %7973 = vst [vmem:[#allocation103_spill] sm:$0xff] %v5498_v36  ;;  %v4211_v30 = vld [vmem:[%s7602_s2 + $0x2f4] sm:$0xf0] }
  0x6e   :  { %7974 = vst [vmem:[#allocation104_spill] sm:$0xff] %v5500_v53  ;;  %v3765_v59 = vld [vmem:[%s7602_s2 + $0x1b8] sm:$0xf0]  ;;  %v5522_v4 = vor.u32 %v4215_v31, %v3957_v39  ;;  %v5543_v31 = vor.u32 %v4171_v61, %v3763_v18  ;;  %v3731_v39 = vld [vmem:[%s7602_s2 + $0x158] sm:$0xf]  ;;  %v5561_v18 = vor.u32 %v4211_v30, %v3923_v19 }
  0x6f   :  { %7976 = vst [vmem:[#allocation106_spill] sm:$0xff] %v5504_v10  ;;  %v4207_v26 = vld [vmem:[%s7602_s2 + $0x2dc] sm:$0xf]  ;;  %958 = vmatpush.bf16.msra.mxu0 %v5498_v36  ;;  %984 = vmatpush.bf16.msra.mxu2 %v5500_v53  ;;  %v5545_v42 = vor.u32 %v4167_v20, %v3765_v59  ;;  %v4163_v37 = vld [vmem:[%s7602_s2 + $0x174] sm:$0xf0] }
  0x70   :  { %1018 = vmatpush.bf16.msrb.mxu1 %v5480_v54  ;;  %7977 = vst [vmem:[#allocation107_spill] sm:$0xff] %v5520_v41  ;;  %v3925_v11 = vld [vmem:[%s7602_s2 + $0x2f8] sm:$0xf0]  ;;  %v3891_v59 = vld [vmem:[%s7602_s2 + $0x298] sm:$0xf]  ;;  %v5581_v30 = vor.u32 %v4163_v37, %v3731_v39 }
  0x71   :  { %1044 = vmatpush.bf16.msrb.mxu3 %v5482_v15  ;;  %7978 = vst [vmem:[#allocation108_spill] sm:$0xff] %v5522_v4  ;;  %v4159_v15 = vld [vmem:[%s7602_s2 + $0x15c] sm:$0xf]  ;;  %v5563_v20 = vor.u32 %v4207_v26, %v3925_v11  ;;  %v3699_v11 = vld [vmem:[%s7602_s2 + $0x118] sm:$0xf] }
  0x72   :  { %7979 = vst [vmem:[#allocation109_spill] sm:$0xff] %v5543_v31  ;;  %v3733_v61 = vld [vmem:[%s7602_s2 + $0x178] sm:$0xf0]  ;;  %985 = vmatmul.bf16.vlgmr.msra.gmra.mxu2 %v5219_v49  ;;  %959 = vmatmul.bf16.vlgmr.msra.gmra.mxu0 %v5219_v49  ;;  %v3859_v37 = vld [vmem:[%s7602_s2 + $0x258] sm:$0xf] }
  0x73   :  { %1003 = vmatpush.bf16.msrb.mxu0 %v5502_v0  ;;  %1029 = vmatpush.bf16.msrb.mxu2 %v5504_v10  ;;  %7980 = vst [vmem:[#allocation110_spill] sm:$0xff] %v5545_v42  ;;  %v3893_v19 = vld [vmem:[%s7602_s2 + $0x2b8] sm:$0xf0]  ;;  %v5583_v26 = vor.u32 %v4159_v15, %v3733_v61  ;;  %v4195_v61 = vld [vmem:[%s7602_s2 + $0x274] sm:$0xf0] }
  0x74   :  { %828 = vst [vmem:[#allocation1] ss:$4 sm:$0xff] %v184_v24  ;;  %1019 = vmatpush.bf16.msrb.mxu1 %v5520_v41  ;;  %v4203_v24 = vld [vmem:[%s7602_s2 + $0x2b4] sm:$0xf0]  ;;  %v4151_v54 = vld [vmem:[%s7602_s2 + $0x11c] sm:$0xf] }
  0x75   :  { %1045 = vmatpush.bf16.msrb.mxu3 %v5522_v4  ;;  %7981 = vst [vmem:[#allocation111_spill] sm:$0xff] %v5561_v18  ;;  %v4199_v4 = vld [vmem:[%s7602_s2 + $0x29c] sm:$0xf]  ;;  %v4155_v41 = vld [vmem:[%s7602_s2 + $0x134] sm:$0xf0]  ;;  %v5599_v15 = vor.u32 %v4203_v24, %v3891_v59 }
  0x76   :  { %7982 = vst [vmem:[#allocation112_spill] sm:$0xff] %v5563_v20  ;;  %v5601_v39 = vor.u32 %v4199_v4, %v3893_v19  ;;  %v5617_v4 = vor.u32 %v4155_v41, %v3699_v11  ;;  %v3667_v24 = vld [vmem:[%s7602_s2 + $0xd8] sm:$0xf] }
  0x77   :  { %1004 = vmatpush.bf16.msrb.mxu0 %v5543_v31  ;;  %1030 = vmatpush.bf16.msrb.mxu2 %v5545_v42  ;;  %7983 = vst [vmem:[#allocation113_spill] sm:$0xff] %v5581_v30  ;;  %v3701_v42 = vld [vmem:[%s7602_s2 + $0x138] sm:$0xf0]  ;;  %v4147_v19 = vld [vmem:[%s7602_s2 + $0xf4] sm:$0xf0] }
  0x78   :  { %7984 = vst [vmem:[#allocation114_spill] sm:$0xff] %v5583_v26  ;;  %1020 = vmatpush.bf16.msrb.mxu1 %v5561_v18  ;;  %v4191_v31 = vld [vmem:[%s7602_s2 + $0x25c] sm:$0xf]  ;;  %v5619_v59 = vor.u32 %v4151_v54, %v3701_v42  ;;  %v5635_v54 = vor.u32 %v4195_v61, %v3859_v37  ;;  %v3827_v42 = vld [vmem:[%s7602_s2 + $0x218] sm:$0xf] }
  0x79   :  { %1046 = vmatpush.bf16.msrb.mxu3 %v5563_v20  ;;  %7985 = vst [vmem:[#allocation115_spill] sm:$0xff] %v5599_v15  ;;  %v3861_v20 = vld [vmem:[%s7602_s2 + $0x278] sm:$0xf0]  ;;  %v4187_v11 = vld [vmem:[%s7602_s2 + $0x234] sm:$0xf0] }
  0x7a   :  { %7986 = vst [vmem:[#allocation116_spill] sm:$0xff] %v5601_v39  ;;  %v4143_v18 = vld [vmem:[%s7602_s2 + $0xdc] sm:$0xf]  ;;  %v5637_v41 = vor.u32 %v4191_v31, %v3861_v20  ;;  %v5653_v31 = vor.u32 %v4147_v19, %v3667_v24  ;;  %v3635_v37 = vld [vmem:[%s7602_s2 + $0x98] sm:$0xf] }
  0x7b   :  { %1005 = vmatpush.bf16.msrb.mxu0 %v5581_v30  ;;  %1031 = vmatpush.bf16.msrb.mxu2 %v5583_v26  ;;  %7987 = vst [vmem:[#allocation117_spill] sm:$0xff] %v5617_v4  ;;  %v3669_v26 = vld [vmem:[%s7602_s2 + $0xf8] sm:$0xf0]  ;;  %v4139_v61 = vld [vmem:[%s7602_s2 + $0xb4] sm:$0xf0] }
  0x7c   :  { %7988 = vst [vmem:[#allocation118_spill] sm:$0xff] %v5619_v59  ;;  %1021 = vmatpush.bf16.msrb.mxu1 %v5599_v15  ;;  %v4183_v30 = vld [vmem:[%s7602_s2 + $0x21c] sm:$0xf]  ;;  %v5655_v20 = vor.u32 %v4143_v18, %v3669_v26  ;;  %v5671_v18 = vor.u32 %v4187_v11, %v3827_v42  ;;  %v5677_v24 = vor.u32 %v4139_v61, %v3635_v37  ;;  %v3571_v42 = vld [vmem:[%s7602_s2 + $0x18] sm:$0xf] }
  0x7d   :  { %1047 = vmatpush.bf16.msrb.mxu3 %v5601_v39  ;;  %7989 = vst [vmem:[#allocation119_spill] sm:$0xff] %v5635_v54  ;;  %v3829_v39 = vld [vmem:[%s7602_s2 + $0x238] sm:$0xf0]  ;;  %v4123_v11 = vld [vmem:[%s7602_s2 + $0x34] sm:$0xf0] }
  0x7e   :  { %7990 = vst [vmem:[#allocation120_spill] sm:$0xff] %v5637_v41  ;;  %v4135_v15 = vld [vmem:[%s7602_s2 + $0x9c] sm:$0xf]  ;;  %v5673_v26 = vor.u32 %v4183_v30, %v3829_v39 }
  0x7f   :  { %1006 = vmatpush.bf16.msrb.mxu0 %v5617_v4  ;;  %1032 = vmatpush.bf16.msrb.mxu2 %v5619_v59  ;;  %7991 = vst [vmem:[#allocation121_spill] sm:$0xff] %v5653_v31  ;;  %v3637_v59 = vld [vmem:[%s7602_s2 + $0xb8] sm:$0xf0]  ;;  %v3603_v4 = vld [vmem:[%s7602_s2 + $0x58] sm:$0xf] }
  0x80   :  { %7992 = vst [vmem:[#allocation122_spill] sm:$0xff] %v5655_v20  ;;  %1022 = vmatpush.bf16.msrb.mxu1 %v5635_v54  ;;  %v5679_v19 = vor.u32 %v4135_v15, %v3637_v59  ;;  %v4127_v30 = vld [vmem:[%s7602_s2 + $0x5c] sm:$0xf] }
  0x81   :  { %1048 = vmatpush.bf16.msrb.mxu3 %v5637_v41  ;;  %7993 = vst [vmem:[#allocation123_spill] sm:$0xff] %v5671_v18  ;;  %v4131_v41 = vld [vmem:[%s7602_s2 + $0x74] sm:$0xf0]  ;;  %v3605_v39 = vld [vmem:[%s7602_s2 + $0x78] sm:$0xf0] }
  0x82   :  { %7994 = vst [vmem:[#allocation124_spill] sm:$0xff] %v5673_v26  ;;  %v5699_v15 = vor.u32 %v4131_v41, %v3603_v4  ;;  %v5701_v59 = vor.u32 %v4127_v30, %v3605_v39  ;;  %v4119_v37 = vld [vmem:[%s7602_s2 + $0x1c] sm:$0xf]  ;;  %v5721_v4 = vor.u32 %v4123_v11, %v3571_v42  ;;  %v8003_v30 = vld [vmem:[#allocation48_spill] sm:$0xff]  ;;  %v8004_v39 = vld [vmem:[#allocation50_spill] sm:$0xff] }
  0x83   :  { %1007 = vmatpush.bf16.msrb.mxu0 %v5653_v31  ;;  %1033 = vmatpush.bf16.msrb.mxu2 %v5655_v20  ;;  %7995 = vst [vmem:[#allocation125_spill] sm:$0xff] %v5677_v24  ;;  %v3573_v61 = vld [vmem:[%s7602_s2 + $0x38] sm:$0xf0]  ;;  %v8005_v42 = vld [vmem:[#allocation39_spill] sm:$0xff] }
  0x84   :  { %7996 = vst [vmem:[#allocation126_spill] sm:$0xff] %v5679_v19  ;;  %1023 = vmatpush.bf16.msrb.mxu1 %v5671_v18  ;;  %v5723_v41 = vor.u32 %v4119_v37, %v3573_v61  ;;  %v8006_v11 = vld [vmem:[#allocation41_spill] sm:$0xff]  ;;  %v8007_v37 = vld [vmem:[#allocation52_spill] sm:$0xff]  ;;  %v8008_v61 = vld [vmem:[#allocation54_spill] sm:$0xff] }
  0x85   :  { %1049 = vmatpush.bf16.msrb.mxu3 %v5673_v26  ;;  %7997 = vst [vmem:[#allocation127_spill] sm:$0xff] %v5699_v15 }
  0x86   :  { %7998 = vst [vmem:[#allocation128_spill] sm:$0xff] %v5701_v59 }
  0x87   :  { %1008 = vmatpush.bf16.msrb.mxu0 %v5677_v24  ;;  %1034 = vmatpush.bf16.msrb.mxu2 %v5679_v19  ;;  %7999 = vst [vmem:[#allocation129_spill] sm:$0xff] %v5721_v4 }
  0x88   :  { %1220 = vmatpush.bf16.msra.mxu1 %v4546_v7  ;;  %1050 = vmatmul.bf16.vlgmr.msrb.gmra.mxu3 %v7941_v1  ;;  %8000 = vst [vmem:[#allocation130_spill] sm:$0xff] %v5723_v41 }
  0x89   :  { %1246 = vmatpush.bf16.msra.mxu3 %v4560_v12  ;;  %1024 = vmatmul.bf16.vlgmr.msrb.gmra.mxu1 %v7941_v1  ;;  %v8002_v1 = vld [vmem:[#allocation37_spill] sm:$0xff] }
  0x8b   :  { %1009 = vmatpush.bf16.msrb.mxu0 %v5699_v15  ;;  %1035 = vmatpush.bf16.msrb.mxu2 %v5701_v59 }
  0x8c   :  { %1221 = vmatpush.bf16.msra.mxu1 %v4575_v17 }
  0x8d   :  { %1247 = vmatpush.bf16.msra.mxu3 %v4598_v25 }
  0x8f   :  { %1010 = vmatpush.bf16.msrb.mxu0 %v5721_v4  ;;  %1036 = vmatpush.bf16.msrb.mxu2 %v5723_v41 }
  0x90   :  { %1222 = vmatpush.bf16.msra.mxu1 %v4623_v33 }
  0x91   :  { %1248 = vmatpush.bf16.msra.mxu3 %v4637_v38 }
  0x92   :  { %1011 = vmatmul.bf16.vlgmr.msrb.gmra.mxu0 %v5219_v49  ;;  %1037 = vmatmul.bf16.vlgmr.msrb.gmra.mxu2 %v5219_v49  ;;  %v8001_v49 = vld [vmem:[#allocation35_spill] sm:$0xff] }
  0x93   :  { %1207 = vmatpush.bf16.msra.mxu0 %v4535_v3  ;;  %1233 = vmatpush.bf16.msra.mxu2 %v4548_v8 }
  0x94   :  { %1223 = vmatpush.bf16.msra.mxu1 %v4659_v45 }
  0x95   :  { %1249 = vmatpush.bf16.msra.mxu3 %v4673_v50 }
  0x97   :  { %1208 = vmatpush.bf16.msra.mxu0 %v4573_v16  ;;  %1234 = vmatpush.bf16.msra.mxu2 %v4587_v21 }
  0x98   :  { %1224 = vmatpush.bf16.msra.mxu1 %v4695_v57 }
  0x99   :  { %1250 = vmatpush.bf16.msra.mxu3 %v4709_v62 }
  0x9b   :  { %1209 = vmatpush.bf16.msra.mxu0 %v4610_v29  ;;  %1235 = vmatpush.bf16.msra.mxu2 %v4625_v34 }
  0x9c   :  { %1225 = vmatpush.bf16.msra.mxu1 %v4731_v6 }
  0x9d   :  { %1251 = vmatpush.bf16.msra.mxu3 %v4745_v14 }
  0x9f   :  { %1210 = vmatpush.bf16.msra.mxu0 %v4655_v44  ;;  %1236 = vmatpush.bf16.msra.mxu2 %v4661_v46 }
  0xa0   :  { %1226 = vmatpush.bf16.msra.mxu1 %v4773_v27 }
  0xa1   :  { %1252 = vmatpush.bf16.msra.mxu3 %v4787_v35 }
  0xa3   :  { %1211 = vmatpush.bf16.msra.mxu0 %v4691_v56  ;;  %1237 = vmatpush.bf16.msra.mxu2 %v4697_v58 }
  0xa4   :  { %1227 = vmatpush.bf16.msra.mxu1 %v4821_v51  ;;  %v8022_v51 = vld [vmem:[#allocation61_spill] sm:$0xff] }
  0xa5   :  { %1253 = vmatpush.bf16.msra.mxu3 %v4832_v55  ;;  %v8016_v55 = vld [vmem:[#allocation53_spill] sm:$0xff] }
  0xa7   :  { %1212 = vmatpush.bf16.msra.mxu0 %v4727_v5  ;;  %1238 = vmatpush.bf16.msra.mxu2 %v4733_v9 }
  0xa8   :  { %1272 = vmatpush.bf16.msrb.mxu1 %v4836_v60 }
  0xa9   :  { %1298 = vmatpush.bf16.msrb.mxu3 %v4850_v2  ;;  %v8012_v2 = vld [vmem:[#allocation58_spill] sm:$0xff] }
  0xab   :  { %1213 = vmatpush.bf16.msra.mxu0 %v4763_v23  ;;  %1239 = vmatpush.bf16.msra.mxu2 %v4775_v28  ;;  %v833_v23 = vld.sshfl [vmem:[#allocation1 + $0x10] sm:$0xff pattern:$0x73625140] }
  0xac   :  { %1273 = vmatpush.bf16.msrb.mxu1 %v4881_v22  ;;  %v8011_v22 = vld [vmem:[#allocation56_spill] sm:$0xff] }
  0xad   :  { %1299 = vmatpush.bf16.msrb.mxu3 %v4895_v32  ;;  %v8010_v32 = vld [vmem:[#allocation45_spill] sm:$0xff] }
  0xaf   :  { %1214 = vmatpush.bf16.msra.mxu0 %v4808_v43  ;;  %1240 = vmatpush.bf16.msra.mxu2 %v4823_v52 }
  0xb0   :  { %1274 = vmatpush.bf16.msrb.mxu1 %v4917_v47  ;;  %v8009_v47 = vld [vmem:[#allocation43_spill] sm:$0xff] }
  0xb1   :  { %1300 = vmatpush.bf16.msrb.mxu3 %v4931_v63  ;;  %v869_v63 = vpop.f32.mrf.mxu1 }
  0xb3   :  { %1259 = vmatpush.bf16.msrb.mxu0 %v8001_v49  ;;  %1285 = vmatpush.bf16.msrb.mxu2 %v8002_v1  ;;  %v834_v1 = vld.sshfl [vmem:[#allocation1 + $0x18] sm:$0xff pattern:$0x73625140] }
  0xb4   :  { %1275 = vmatpush.bf16.msrb.mxu1 %v8003_v30  ;;  %v8013_v30 = vld [vmem:[#allocation47_spill] sm:$0xff]  ;;  %v895_v60 = vpop.f32.mrf.mxu3 }
  0xb5   :  { %1301 = vmatpush.bf16.msrb.mxu3 %v8004_v39  ;;  %v8014_v39 = vld [vmem:[#allocation49_spill] sm:$0xff] }
  0xb7   :  { %1260 = vmatpush.bf16.msrb.mxu0 %v8005_v42  ;;  %1286 = vmatpush.bf16.msrb.mxu2 %v8006_v11  ;;  %v832_v11 = vld.sshfl [vmem:[#allocation1 + $0x8] sm:$0xff pattern:$0x73625140]  ;;  %v831_v42 = vld.sshfl [vmem:[#allocation1] sm:$0xff pattern:$0x73625140] }
  0xb8   :  { %1276 = vmatpush.bf16.msrb.mxu1 %v8007_v37 }
  0xb9   :  { %1302 = vmatpush.bf16.msrb.mxu3 %v8008_v61  ;;  %v871_v37 = vpop.f32.mrf.mxu1  ;;  %v8015_v61 = vld [vmem:[#allocation51_spill] sm:$0xff] }
  0xba   :  { %v8024_v37 = vld [vmem:[#allocation65_spill] sm:$0xff] }
  0xbb   :  { %1261 = vmatpush.bf16.msrb.mxu0 %v8009_v47  ;;  %1287 = vmatpush.bf16.msrb.mxu2 %v8010_v32  ;;  %v8017_v47 = vld [vmem:[#allocation64_spill] sm:$0xff]  ;;  %v8018_v32 = vld [vmem:[#allocation66_spill] sm:$0xff] }
  0xbc   :  { %1277 = vmatpush.bf16.msrb.mxu1 %v8011_v22  ;;  %v8019_v22 = vld [vmem:[#allocation55_spill] sm:$0xff] }
  0xbd   :  { %1303 = vmatpush.bf16.msrb.mxu3 %v8012_v2  ;;  %v8020_v2 = vld [vmem:[#allocation57_spill] sm:$0xff] }
  0xbf   :  { %1262 = vmatpush.bf16.msrb.mxu0 %v8013_v30  ;;  %1288 = vmatpush.bf16.msrb.mxu2 %v8014_v39  ;;  %v897_v30 = vpop.f32.mrf.mxu3  ;;  %v8021_v39 = vld [vmem:[#allocation59_spill] sm:$0xff] }
  0xc0   :  { %1278 = vmatpush.bf16.msrb.mxu1 %v5077_v13  ;;  %v8023_v13 = vld [vmem:[#allocation63_spill] sm:$0xff] }
  0xc1   :  { %1304 = vmatpush.bf16.msrb.mxu3 %v5091_v48 }
  0xc3   :  { %1263 = vmatpush.bf16.msrb.mxu0 %v8015_v61  ;;  %1289 = vmatpush.bf16.msrb.mxu2 %v8016_v55 }
  0xc4   :  { %1279 = vmatpush.bf16.msrb.mxu1 %v8017_v47  ;;  %v921_v48 = vpop.f32.mrf.mxu1 }
  0xc5   :  { %1305 = vmatpush.bf16.msrb.mxu3 %v8018_v32  ;;  %v185_v32 = vld [vmem:[%s7604_s1 + $0x8] sm:$0xff] }
  0xc6   :  { %830 = vst [vmem:[#allocation1 + $0x20] ss:$4 sm:$0xff] %v185_v32 }
  0xc7   :  { %1264 = vmatpush.bf16.msrb.mxu0 %v8019_v22  ;;  %1290 = vmatpush.bf16.msrb.mxu2 %v8020_v2 }
  0xcb   :  { %1265 = vmatpush.bf16.msrb.mxu0 %v8021_v39  ;;  %1291 = vmatpush.bf16.msrb.mxu2 %v8022_v51  ;;  %v947_v55 = vpop.f32.mrf.mxu3 }
  0xcc   :  { %v923_v22 = vpop.f32.mrf.mxu1 }
  0xcf   :  { %1266 = vmatpush.bf16.msrb.mxu0 %v8023_v13  ;;  %1292 = vmatpush.bf16.msrb.mxu2 %v8024_v37  ;;  %v856_v61 = vpop.f32.mrf.mxu0 }
  0xd0   :  { %v857_v13 = vadd.f32 %v856_v61, %v831_v42 }
  0xd2   :  { %v870_v37 = vadd.f32 %v869_v63, %v857_v13 }
  0xd3   :  { %v949_v30 = vpop.f32.mrf.mxu3 }
  0xd4   :  { %v4057_v28 = vmul.f32 -1.442695, %v870_v37  ;;  %v835_v30 = vld.sshfl [vmem:[#allocation1 + $0x20] sm:$0xff pattern:$0x73625140] }
  0xd5   :  { %v882_v47 = vpop.f32.mrf.mxu2 }
  0xd6   :  { %v883_v51 = vadd.f32 %v882_v47, %v832_v11 }
  0xd7   :  { %v858_v2 = vpop.f32.mrf.mxu0 }
  0xd8   :  { %v896_v27 = vadd.f32 %v895_v60, %v883_v51 }
  0xda   :  { %v4058_v43 = vmul.f32 -1.442695, %v896_v27  ;;  %v836_v27 = vld.sshfl [vmem:[#allocation1 + $0x28] sm:$0xff pattern:$0x73625140] }
  0xdc   :  { %4255 = vpow2.f32 %v4058_v43 }
  0xdd   :  { %v884_v39 = vpop.f32.mrf.mxu2  ;;  %4257 = vpow2.f32 %v4057_v28 }
  0xdf   :  { %v908_v35 = vpop.f32.mrf.mxu0 }
  0xe0   :  { %v909_v32 = vadd.f32 %v908_v35, %v833_v23 }
  0xe2   :  { %v4256_v60 = vpop.eup %4255  ;;  %v922_v63 = vadd.f32 %v921_v48, %v909_v32 }
  0xe3   :  { %v4258_v61 = vpop.eup %4257 }
  0xe4   :  { %v5794_v28 = vadd.f32 1.0, %v4258_v61 }
  0xe5   :  { %v934_v49 = vpop.f32.mrf.mxu2 }
  0xe6   :  { %v973_v52 = vpop.f32.mrf.mxu1  ;;  %v935_v6 = vadd.f32 %v934_v49, %v834_v1  ;;  %v5792_v49 = vadd.f32 1.0, %v4256_v60  ;;  %v4059_v1 = vmul.f32 -1.442695, %v922_v63  ;;  %vm1084_vm4 = vweird.f32 %v5794_v28 }
  0xe7   :  { %v910_v14 = vpop.f32.mrf.mxu0 }
  0xe8   :  { %v948_v2 = vadd.f32 %v947_v55, %v935_v6  ;;  %vm1099_vm5 = vweird.f32 %v5792_v49 }
  0xea   :  { %v4060_v42 = vmul.f32 -1.442695, %v948_v2 }
  0xeb   :  { %v999_v22 = vpop.f32.mrf.mxu3 }
  0xec   :  { %4259 = vpow2.f32 %v4060_v42 }
  0xed   :  { %v936_v39 = vpop.f32.mrf.mxu2 }
  0xee   :  { %v975_v47 = vpop.f32.mrf.mxu1 }
  0xef   :  { %v960_v11 = vpop.f32.mrf.mxu0 }
  0xf0   :  { %v961_v51 = vadd.f32 %v960_v11, %v835_v30 }
  0xf2   :  { %v974_v13 = vadd.f32 %v973_v52, %v961_v51  ;;  %v4260_v48 = vpop.eup %4259 }
  0xf3   :  { %v1001_v14 = vpop.f32.mrf.mxu3  ;;  %v5798_v2 = vadd.f32 1.0, %v4260_v48 }
  0xf4   :  { %v4061_v43 = vmul.f32 -1.442695, %v974_v13 }
  0xf5   :  { %v986_v6 = vpop.f32.mrf.mxu2  ;;  %vm1129_vm14 = vweird.f32 %v5798_v2 }
  0xf6   :  { %4261 = vpow2.f32 %v4061_v43  ;;  %v987_v23 = vadd.f32 %v986_v6, %v836_v27 }
  0xf7   :  { %v962_v35 = vpop.f32.mrf.mxu0  ;;  %4263 = vrcp.f32 %v5792_v49 }
  0xf8   :  { %v1000_v55 = vadd.f32 %v999_v22, %v987_v23  ;;  %4265 = vpow2.f32 %v4059_v1 }
  0xf9   :  { %4267 = vrcp.f32 %v5794_v28 }
  0xfa   :  { %v4062_v52 = vmul.f32 -1.442695, %v1000_v55  ;;  %v837_v55 = vld.sshfl [vmem:[#allocation1 + $0x30] sm:$0xff pattern:$0x73625140] }
  0xfc   :  { %v4262_v37 = vpop.eup %4261  ;;  %4269 = vpow2.f32 %v4062_v52 }
  0xfd   :  { %v5800_v32 = vadd.f32 1.0, %v4262_v37  ;;  %v988_v39 = vpop.f32.mrf.mxu2  ;;  %v5802_v30 = vpop.eup %4263  ;;  %v1088_v37 = vand.u32 2147483647, %v5794_v28 }
  0xfe   :  { %v4266_v47 = vpop.eup %4265  ;;  %v1095_v22 = vmul.f32 %v5802_v30, %v5792_v49  ;;  %v1090_v39 = vand.u32 2147483648, %v5794_v28  ;;  %vm1100_vm6 = vweird.f32 %v5802_v30 }
  0xff   :  { %4271 = vrcp.f32 %v5800_v32  ;;  %v5805_v11 = vpop.eup %4267  ;;  %v5810_v42 = vadd.f32 1.0, %v4266_v47  ;;  %vm5839_vm8 = vmor %vm1099_vm5, %vm1100_vm6  ;;  %vm5853_vm10 = vcmp.eq.f32.partialorder %v1088_v37, 8.507059e+37  ;;  %vm1144_vm12 = vweird.f32 %v5800_v32 }
 0x100   :  { %4273 = vrcp.f32 %v5798_v2  ;;  %v1080_v60 = vmul.f32 %v5805_v11, %v5794_v28  ;;  %v1096_v61 = vsub.f32 1.0, %v1095_v22  ;;  %vm1085_vm7 = vweird.f32 %v5805_v11 }
 0x101   :  { %4275 = vrcp.f32 %v5810_v42  ;;  %vm5849_vm9 = vmor %vm1084_vm4, %vm1085_vm7  ;;  %v1091_v45 = vor.u32 1.1754944e-38, %v1090_v39  ;;  %v1150_v39 = vand.u32 2147483648, %v5800_v32  ;;  %vm1114_vm3 = vweird.f32 %v5810_v42 }
 0x102   :  { %v4270_v63 = vpop.eup %4269  ;;  %v1081_v14 = vsub.f32 1.0, %v1080_v60  ;;  %v1097_v23 = vmul.f32 %v5802_v30, %v1096_v61 }
 0x103   :  { %v5821_v1 = vadd.f32 1.0, %v4270_v63  ;;  %v1105_v63 = vand.u32 2147483648, %v5792_v49 }
 0x104   :  { %v1082_v52 = vmul.f32 %v5805_v11, %v1081_v14  ;;  %v1103_v14 = vand.u32 2147483647, %v5792_v49  ;;  %v1098_v62 = vadd.f32 %v5802_v30, %v1097_v23  ;;  %v838_v23 = vld.sshfl [vmem:[#allocation1 + $0x38] sm:$0xff pattern:$0x73625140] }
 0x105   :  { %v5814_v13 = vpop.eup %4271  ;;  %4277 = vrcp.f32 %v5821_v1 }
 0x106   :  { %v1025_v51 = vpop.f32.mrf.mxu1  ;;  %v5817_v27 = vpop.eup %4273  ;;  %v1140_v43 = vmul.f32 %v5814_v13, %v5800_v32  ;;  %v1083_v5 = vadd.f32 %v5805_v11, %v1082_v52  ;;  %vm5857_vm11 = vcmp.eq.f32.partialorder %v1103_v14, 8.507059e+37  ;;  %v1102_v28 = vsel %vm5839_vm8, %v5802_v30, %v1098_v62 }
 0x107   :  { %v1125_v35 = vmul.f32 %v5817_v27, %v5798_v2  ;;  %v5830_v47 = vpop.eup %4275  ;;  %vm1145_vm13 = vweird.f32 %v5814_v13  ;;  %vm1130_vm15 = vweird.f32 %v5817_v27  ;;  %v1148_v62 = vand.u32 2147483647, %v5800_v32 }
 0x108   :  { %v1141_v22 = vsub.f32 1.0, %v1140_v43  ;;  %v1110_v43 = vmul.f32 %v5830_v47, %v5810_v42  ;;  %vm5884_vm0 = vmor %vm1144_vm12, %vm1145_vm13  ;;  %vm1115_vm4 = vweird.f32 %v5830_v47  ;;  %vm1159_vm8 = vweird.f32 %v5821_v1 }
 0x109   :  { %vm5897_vm1 = vmor %vm1129_vm14, %vm1130_vm15  ;;  %vm1149_vm2 = vcmp.eq.f32.partialorder %v1148_v62, 8.507059e+37  ;;  %v8049_v62 = vld [vmem:[#allocation71_spill] sm:$0xff] }
 0x10a   :  { %v1142_v50 = vmul.f32 %v5814_v13, %v1141_v22  ;;  %vm5915_vm6 = vmor %vm1114_vm3, %vm1115_vm4 }
 0x10b   :  { %v1051_v6 = vpop.f32.mrf.mxu3  ;;  %v5861_v52 = vpop.eup %4277 }
 0x10c   :  { %v1143_v57 = vadd.f32 %v5814_v13, %v1142_v50  ;;  %v1155_v14 = vmul.f32 %v5861_v52, %v5821_v1 }
 0x10e   :  { %v1027_v48 = vpop.f32.mrf.mxu1 }
 0x10f   :  { %v1012_v60 = vpop.f32.mrf.mxu0  ;;  %v1126_v48 = vsub.f32 1.0, %v1125_v35 }
 0x110   :  { %v1013_v61 = vadd.f32 %v1012_v60, %v837_v55  ;;  %v1106_v60 = vor.u32 1.1754944e-38, %v1105_v63  ;;  %v1111_v63 = vsub.f32 1.0, %v1110_v43  ;;  %v1135_v55 = vand.u32 2147483648, %v5798_v2 }
 0x111   :  { %v1127_v22 = vmul.f32 %v5817_v27, %v1126_v48 }
 0x112   :  { %v1026_v9 = vadd.f32 %v1025_v51, %v1013_v61  ;;  %v1107_v48 = vsel %vm5857_vm11, %v1106_v60, %v1102_v28  ;;  %v1136_v49 = vor.u32 1.1754944e-38, %v1135_v55 }
 0x113   :  { %v1053_v35 = vpop.f32.mrf.mxu3  ;;  %v1128_v50 = vadd.f32 %v5817_v27, %v1127_v22  ;;  %v1147_v22 = vsel %vm5884_vm0, %v5814_v13, %v1143_v57  ;;  %v1118_v13 = vand.u32 2147483647, %v5810_v42 }
 0x114   :  { %4279 = vtanh.f32 %v1026_v9  ;;  %v1087_v9 = vsel %vm5849_vm9, %v5805_v11, %v1083_v5  ;;  %v1133_v11 = vand.u32 2147483647, %v5798_v2  ;;  %v1112_v35 = vmul.f32 %v5830_v47, %v1111_v63 }
 0x115   :  { %v1038_v37 = vpop.f32.mrf.mxu2  ;;  %v1092_v60 = vsel %vm5853_vm10, %v1091_v45, %v1087_v9  ;;  %v1156_v45 = vsub.f32 1.0, %v1155_v14  ;;  %v1120_v2 = vand.u32 2147483648, %v5810_v42  ;;  %vm1119_vm7 = vcmp.eq.f32.partialorder %v1118_v13, 8.507059e+37  ;;  %v8047_v13 = vld [vmem:[#allocation83_spill] sm:$0xff] }
 0x116   :  { %v1039_v61 = vadd.f32 %v1038_v37, %v838_v23  ;;  %v1151_v37 = vor.u32 1.1754944e-38, %v1150_v39  ;;  %v1132_v39 = vsel %vm5897_vm1, %v5817_v27, %v1128_v50  ;;  %vm1134_vm5 = vcmp.eq.f32.partialorder %v1133_v11, 8.507059e+37 }
 0x117   :  { %v1014_v30 = vpop.f32.mrf.mxu0  ;;  %v1157_v14 = vmul.f32 %v5861_v52, %v1156_v45  ;;  %vm1160_vm9 = vweird.f32 %v5861_v52  ;;  %v1165_v42 = vand.u32 2147483648, %v5821_v1 }
 0x118   :  { %v1052_v43 = vadd.f32 %v1051_v6, %v1039_v61  ;;  %v8037_v6 = vld [vmem:[#allocation69_spill] sm:$0xff]  ;;  %v1113_v61 = vadd.f32 %v5830_v47, %v1112_v35  ;;  %v1152_v57 = vsel %vm1149_vm2, %v1151_v37, %v1147_v22  ;;  %vm1161_vm10 = vmor %vm1159_vm8, %vm1160_vm9  ;;  %v8040_v22 = vld [vmem:[#allocation74_spill] sm:$0xff] }
 0x119   :  { %v1176_v51 = vmul.f32 %v1107_v48, %v8037_v6  ;;  %v1137_v48 = vsel %vm1134_vm5, %v1136_v49, %v1132_v39  ;;  %v1171_v55 = vmul.f32 0.0, %v1152_v57  ;;  %v1158_v11 = vadd.f32 %v5861_v52, %v1157_v14  ;;  %v8043_v39 = vld [vmem:[#allocation79_spill] sm:$0xff]  ;;  %v8048_v57 = vld [vmem:[#allocation70_spill] sm:$0xff] }
 0x11a   :  { %v4280_v23 = vpop.eup %4279  ;;  %4281 = vtanh.f32 %v1052_v43  ;;  %v1121_v43 = vor.u32 1.1754944e-38, %v1120_v2  ;;  %v1117_v5 = vsel %vm5915_vm6, %v5830_v47, %v1113_v61  ;;  %v1166_v47 = vor.u32 1.1754944e-38, %v1165_v42  ;;  %v8042_v2 = vld [vmem:[#allocation78_spill] sm:$0xff]  ;;  %v8051_v14 = vld [vmem:[#allocation87_spill] sm:$0xff]  ;;  %v8057_v42 = vld [vmem:[#allocation77_spill] sm:$0xff] }
 0x11b   :  { %v1177_v28 = vmul.f32 %v4280_v23, %v1092_v60  ;;  %v1163_v23 = vand.u32 2147483647, %v5821_v1  ;;  %v1162_v32 = vsel %vm1161_vm10, %v5861_v52, %v1158_v11  ;;  %v8041_v1 = vld [vmem:[#allocation75_spill] sm:$0xff]  ;;  %v8046_v61 = vld [vmem:[#allocation82_spill] sm:$0xff]  ;;  %v8058_v11 = vld [vmem:[#allocation96_spill] sm:$0xff] }
 0x11c   :  { %v1122_v37 = vsel %vm1119_vm7, %v1121_v43, %v1117_v5  ;;  %v8044_v52 = vld [vmem:[#allocation67_spill] sm:$0xff]  ;;  %v8053_v43 = vld [vmem:[#allocation73_spill] sm:$0xff]  ;;  %v8056_v5 = vld [vmem:[#allocation76_spill] sm:$0xff] }
 0x11d   :  { %v5908_v63 = vadd.f32 %v1177_v28, %v1176_v51  ;;  %v1040_v9 = vpop.f32.mrf.mxu2  ;;  %vm1164_vm11 = vcmp.eq.f32.partialorder %v1163_v23, 8.507059e+37  ;;  %v8059_v23 = vld [vmem:[#allocation97_spill] sm:$0xff] }
 0x11e   :  { %v1167_v28 = vsel %vm1164_vm11, %v1166_v47, %v1162_v32  ;;  %v8045_v9 = vld [vmem:[#allocation68_spill] sm:$0xff]  ;;  %v8064_v32 = vld [vmem:[#allocation85_spill] sm:$0xff] }
 0x11f   :  { %4283 = vtanh.f32 %v5908_v63  ;;  %v8063_v47 = vld [vmem:[#allocation84_spill] sm:$0xff] }
 0x120   :  { %v4282_v30 = vpop.eup %4281 }
 0x121   :  { %v1172_v27 = vmul.f32 %v4282_v30, %v1137_v48  ;;  %v8050_v30 = vld [vmem:[#allocation86_spill] sm:$0xff]  ;;  %v8052_v48 = vld [vmem:[#allocation72_spill] sm:$0xff] }
 0x123   :  { %v5927_v50 = vadd.f32 %v1172_v27, %v1171_v55  ;;  %v8054_v55 = vld [vmem:[#allocation90_spill] sm:$0xff]  ;;  %v8055_v27 = vld [vmem:[#allocation91_spill] sm:$0xff] }
 0x125   :  { %v4284_v35 = vpop.eup %4283  ;;  %4285 = vtanh.f32 %v5927_v50 }
 0x126   :  { %v1180_v60 = vmul.f32 %v4284_v35, %v1122_v37  ;;  %v8060_v35 = vld [vmem:[#allocation80_spill] sm:$0xff]  ;;  %v8061_v37 = vld [vmem:[#allocation81_spill] sm:$0xff] }
 0x128   :  { %v5933_v6 = vpack.c.bf16 %v1180_v60, %v1180_v60  ;;  %v8062_v60 = vld [vmem:[#allocation100_spill] sm:$0xff] }
 0x12a   :  { %1215 = vmatmul.bf16.vlgmr.msra.gmra.mxu0 %v5933_v6  ;;  %1241 = vmatmul.bf16.vlgmr.msra.gmra.mxu2 %v5933_v6 }
 0x12b   :  { %v4286_v51 = vpop.eup %4285  ;;  %1311 = vmatpush.bf16.msra.mxu0 %v8040_v22  ;;  %1337 = vmatpush.bf16.msra.mxu2 %v8041_v1 }
 0x12c   :  { %v1175_v45 = vmul.f32 %v4286_v51, %v1167_v28  ;;  %v8065_v51 = vld [vmem:[#allocation88_spill] sm:$0xff]  ;;  %v8066_v28 = vld [vmem:[#allocation89_spill] sm:$0xff] }
 0x12e   :  { %v5939_v49 = vpack.c.bf16 %v1175_v45, %v1175_v45  ;;  %v8067_v45 = vld [vmem:[#allocation109_spill] sm:$0xff] }
 0x12f   :  { %1312 = vmatpush.bf16.msra.mxu0 %v8042_v2  ;;  %1338 = vmatpush.bf16.msra.mxu2 %v8043_v39 }
 0x130   :  { %1228 = vmatmul.bf16.vlgmr.msra.gmra.mxu1 %v5939_v49  ;;  %1254 = vmatmul.bf16.vlgmr.msra.gmra.mxu3 %v5939_v49 }
 0x131   :  { %1324 = vmatpush.bf16.msra.mxu1 %v8044_v52  ;;  %1350 = vmatpush.bf16.msra.mxu3 %v8045_v9 }
 0x133   :  { %1313 = vmatpush.bf16.msra.mxu0 %v8046_v61  ;;  %1339 = vmatpush.bf16.msra.mxu2 %v8047_v13 }
 0x135   :  { %1325 = vmatpush.bf16.msra.mxu1 %v8048_v57  ;;  %1351 = vmatpush.bf16.msra.mxu3 %v8049_v62 }
 0x137   :  { %1314 = vmatpush.bf16.msra.mxu0 %v8050_v30  ;;  %1340 = vmatpush.bf16.msra.mxu2 %v8051_v14 }
 0x139   :  { %1326 = vmatpush.bf16.msra.mxu1 %v8052_v48  ;;  %1352 = vmatpush.bf16.msra.mxu3 %v8053_v43 }
 0x13a   :  { %1267 = vmatmul.bf16.vlgmr.msrb.gmra.mxu0 %v5933_v6  ;;  %1293 = vmatmul.bf16.vlgmr.msrb.gmra.mxu2 %v5933_v6 }
 0x13b   :  { %1315 = vmatpush.bf16.msra.mxu0 %v8054_v55  ;;  %1341 = vmatpush.bf16.msra.mxu2 %v8055_v27 }
 0x13d   :  { %1327 = vmatpush.bf16.msra.mxu1 %v8056_v5  ;;  %1353 = vmatpush.bf16.msra.mxu3 %v8057_v42 }
 0x13f   :  { %1316 = vmatpush.bf16.msra.mxu0 %v8058_v11  ;;  %1342 = vmatpush.bf16.msra.mxu2 %v8059_v23 }
 0x140   :  { %1280 = vmatmul.bf16.vlgmr.msrb.gmra.mxu1 %v5939_v49  ;;  %1306 = vmatmul.bf16.vlgmr.msrb.gmra.mxu3 %v5939_v49 }
 0x141   :  { %1328 = vmatpush.bf16.msra.mxu1 %v8060_v35  ;;  %1354 = vmatpush.bf16.msra.mxu3 %v8061_v37 }
 0x143   :  { %1317 = vmatpush.bf16.msra.mxu0 %v5448_v40  ;;  %1343 = vmatpush.bf16.msra.mxu2 %v8062_v60 }
 0x145   :  { %1329 = vmatpush.bf16.msra.mxu1 %v8063_v47  ;;  %1355 = vmatpush.bf16.msra.mxu3 %v8064_v32  ;;  %v8068_v47 = vld [vmem:[#allocation110_spill] sm:$0xff]  ;;  %v8069_v32 = vld [vmem:[#allocation92_spill] sm:$0xff] }
 0x147   :  { %1318 = vmatpush.bf16.msra.mxu0 %v5498_v36  ;;  %1344 = vmatpush.bf16.msra.mxu2 %v5500_v53  ;;  %v8070_v36 = vld [vmem:[#allocation93_spill] sm:$0xff]  ;;  %v8074_v53 = vld [vmem:[#allocation114_spill] sm:$0xff] }
 0x149   :  { %1330 = vmatpush.bf16.msra.mxu1 %v8065_v51  ;;  %1356 = vmatpush.bf16.msra.mxu3 %v8066_v28  ;;  %v8072_v51 = vld [vmem:[#allocation95_spill] sm:$0xff]  ;;  %v8073_v28 = vld [vmem:[#allocation113_spill] sm:$0xff] }
 0x14a   :  { %1319 = vmatmul.bf16.vlgmr.msra.gmra.mxu0 %v5933_v6  ;;  %1345 = vmatmul.bf16.vlgmr.msra.gmra.mxu2 %v5933_v6 }
 0x14b   :  { %1363 = vmatpush.bf16.msrb.mxu0 %v5502_v0  ;;  %1389 = vmatpush.bf16.msrb.mxu2 %v5504_v10  ;;  %v4063_v10 = vld [vmem:[%s7604_s1 + $0x10] sm:$0xff]  ;;  %v8071_v0 = vld [vmem:[#allocation94_spill] sm:$0xff] }
 0x14c   :  { %1188 = vst [vmem:[#allocation1] ss:$4 sm:$0xff] %v4063_v10  ;;  %v8081_v10 = vld [vmem:[#allocation107_spill] sm:$0xff] }
 0x14d   :  { %1331 = vmatpush.bf16.msra.mxu1 %v8069_v32  ;;  %1357 = vmatpush.bf16.msra.mxu3 %v8070_v36  ;;  %v8075_v32 = vld [vmem:[#allocation98_spill] sm:$0xff]  ;;  %v8076_v36 = vld [vmem:[#allocation99_spill] sm:$0xff] }
 0x14f   :  { %1364 = vmatpush.bf16.msrb.mxu0 %v8067_v45  ;;  %1390 = vmatpush.bf16.msrb.mxu2 %v8068_v47  ;;  %v8077_v47 = vld [vmem:[#allocation117_spill] sm:$0xff]  ;;  %v8078_v45 = vld [vmem:[#allocation118_spill] sm:$0xff] }
 0x150   :  { %1332 = vmatmul.bf16.vlgmr.msra.gmra.mxu1 %v5939_v49  ;;  %1358 = vmatmul.bf16.vlgmr.msra.gmra.mxu3 %v5939_v49 }
 0x151   :  { %1376 = vmatpush.bf16.msrb.mxu1 %v8071_v0  ;;  %1402 = vmatpush.bf16.msrb.mxu3 %v8072_v51  ;;  %v8079_v0 = vld [vmem:[#allocation101_spill] sm:$0xff]  ;;  %v8080_v51 = vld [vmem:[#allocation102_spill] sm:$0xff] }
 0x153   :  { %1365 = vmatpush.bf16.msrb.mxu0 %v8073_v28  ;;  %1391 = vmatpush.bf16.msrb.mxu2 %v8074_v53  ;;  %v8082_v53 = vld [vmem:[#allocation108_spill] sm:$0xff] }
 0x155   :  { %1377 = vmatpush.bf16.msrb.mxu1 %v8075_v32  ;;  %1403 = vmatpush.bf16.msrb.mxu3 %v8076_v36  ;;  %v8083_v36 = vld [vmem:[#allocation111_spill] sm:$0xff] }
 0x157   :  { %1366 = vmatpush.bf16.msrb.mxu0 %v8077_v47  ;;  %1392 = vmatpush.bf16.msrb.mxu2 %v8078_v45  ;;  %v8084_v47 = vld [vmem:[#allocation112_spill] sm:$0xff] }
 0x159   :  { %1378 = vmatpush.bf16.msrb.mxu1 %v8079_v0  ;;  %1404 = vmatpush.bf16.msrb.mxu3 %v8080_v51  ;;  %v8085_v51 = vld [vmem:[#allocation115_spill] sm:$0xff] }
 0x15b   :  { %1367 = vmatpush.bf16.msrb.mxu0 %v5653_v31  ;;  %1393 = vmatpush.bf16.msrb.mxu2 %v5655_v20  ;;  %v8086_v31 = vld [vmem:[#allocation116_spill] sm:$0xff] }
 0x15d   :  { %1379 = vmatpush.bf16.msrb.mxu1 %v8081_v10  ;;  %1405 = vmatpush.bf16.msrb.mxu3 %v8082_v53 }
 0x15f   :  { %1368 = vmatpush.bf16.msrb.mxu0 %v5677_v24  ;;  %1394 = vmatpush.bf16.msrb.mxu2 %v5679_v19 }
 0x161   :  { %1380 = vmatpush.bf16.msrb.mxu1 %v8083_v36  ;;  %1406 = vmatpush.bf16.msrb.mxu3 %v8084_v47  ;;  %v8087_v36 = vld [vmem:[#allocation120_spill] sm:$0xff] }
 0x163   :  { %1369 = vmatpush.bf16.msrb.mxu0 %v5699_v15  ;;  %1395 = vmatpush.bf16.msrb.mxu2 %v5701_v59 }
 0x165   :  { %1381 = vmatpush.bf16.msrb.mxu1 %v8085_v51  ;;  %1407 = vmatpush.bf16.msrb.mxu3 %v8086_v31 }
 0x167   :  { %1370 = vmatpush.bf16.msrb.mxu0 %v5721_v4  ;;  %1396 = vmatpush.bf16.msrb.mxu2 %v5723_v41  ;;  %v1193_v4 = vld.sshfl [vmem:[#allocation1 + $0x10] sm:$0xff pattern:$0x73625140] }
 0x169   :  { %1382 = vmatpush.bf16.msrb.mxu1 %v5635_v54  ;;  %1408 = vmatpush.bf16.msrb.mxu3 %v8087_v36 }
 0x16a   :  { %1371 = vmatmul.bf16.vlgmr.msrb.gmra.mxu0 %v5933_v6  ;;  %1397 = vmatmul.bf16.vlgmr.msrb.gmra.mxu2 %v5933_v6  ;;  %v8088_v6 = vld [vmem:[#allocation16_spill] sm:$0xff] }
 0x16b   :  { %1567 = vmatpush.bf16.msra.mxu0 %v4535_v3  ;;  %1593 = vmatpush.bf16.msra.mxu2 %v4548_v8  ;;  %v1194_v3 = vld.sshfl [vmem:[#allocation1 + $0x18] sm:$0xff pattern:$0x73625140] }
 0x16d   :  { %1383 = vmatpush.bf16.msrb.mxu1 %v5671_v18  ;;  %1409 = vmatpush.bf16.msrb.mxu3 %v5673_v26 }
 0x16f   :  { %1568 = vmatpush.bf16.msra.mxu0 %v4573_v16  ;;  %1594 = vmatpush.bf16.msra.mxu2 %v4587_v21 }
 0x170   :  { %1384 = vmatmul.bf16.vlgmr.msrb.gmra.mxu1 %v5939_v49  ;;  %1410 = vmatmul.bf16.vlgmr.msrb.gmra.mxu3 %v5939_v49  ;;  %v8089_v49 = vld [vmem:[#allocation18_spill] sm:$0xff] }
 0x171   :  { %1580 = vmatpush.bf16.msra.mxu1 %v4546_v7  ;;  %1606 = vmatpush.bf16.msra.mxu3 %v4560_v12  ;;  %v1192_v7 = vld.sshfl [vmem:[#allocation1 + $0x8] sm:$0xff pattern:$0x73625140] }
 0x173   :  { %1569 = vmatpush.bf16.msra.mxu0 %v4610_v29  ;;  %1595 = vmatpush.bf16.msra.mxu2 %v4625_v34  ;;  %v8090_v34 = vld [vmem:[#allocation23_spill] sm:$0xff] }
 0x175   :  { %1581 = vmatpush.bf16.msra.mxu1 %v4575_v17  ;;  %1607 = vmatpush.bf16.msra.mxu3 %v4598_v25  ;;  %v8091_v17 = vld [vmem:[#allocation25_spill] sm:$0xff]  ;;  %v8092_v25 = vld [vmem:[#allocation20_spill] sm:$0xff] }
 0x177   :  { %1570 = vmatpush.bf16.msra.mxu0 %v4655_v44  ;;  %1596 = vmatpush.bf16.msra.mxu2 %v4661_v46  ;;  %v8093_v44 = vld [vmem:[#allocation22_spill] sm:$0xff]  ;;  %v8094_v46 = vld [vmem:[#allocation27_spill] sm:$0xff] }
 0x179   :  { %1582 = vmatpush.bf16.msra.mxu1 %v4623_v33  ;;  %1608 = vmatpush.bf16.msra.mxu3 %v4637_v38  ;;  %v8095_v33 = vld [vmem:[#allocation29_spill] sm:$0xff]  ;;  %v8096_v38 = vld [vmem:[#allocation24_spill] sm:$0xff] }
 0x17b   :  { %1571 = vmatpush.bf16.msra.mxu0 %v4691_v56  ;;  %1597 = vmatpush.bf16.msra.mxu2 %v4697_v58  ;;  %v8097_v56 = vld [vmem:[#allocation26_spill] sm:$0xff]  ;;  %v8098_v58 = vld [vmem:[#allocation31_spill] sm:$0xff] }
 0x17d   :  { %1583 = vmatpush.bf16.msra.mxu1 %v8088_v6  ;;  %1609 = vmatpush.bf16.msra.mxu3 %v8089_v49  ;;  %v8099_v6 = vld [vmem:[#allocation33_spill] sm:$0xff]  ;;  %v8100_v49 = vld [vmem:[#allocation35_spill] sm:$0xff] }
 0x17f   :  { %1572 = vmatpush.bf16.msra.mxu0 %v8090_v34  ;;  %1598 = vmatpush.bf16.msra.mxu2 %v8091_v17  ;;  %v8101_v34 = vld [vmem:[#allocation37_spill] sm:$0xff]  ;;  %v8102_v17 = vld [vmem:[#allocation28_spill] sm:$0xff] }
 0x181   :  { %1584 = vmatpush.bf16.msra.mxu1 %v8092_v25  ;;  %1610 = vmatpush.bf16.msra.mxu3 %v8093_v44  ;;  %v8103_v25 = vld [vmem:[#allocation30_spill] sm:$0xff]  ;;  %v8104_v44 = vld [vmem:[#allocation39_spill] sm:$0xff] }
 0x183   :  { %1573 = vmatpush.bf16.msra.mxu0 %v8094_v46  ;;  %1599 = vmatpush.bf16.msra.mxu2 %v8095_v33  ;;  %v8105_v46 = vld [vmem:[#allocation41_spill] sm:$0xff]  ;;  %v8106_v33 = vld [vmem:[#allocation32_spill] sm:$0xff] }
 0x185   :  { %1585 = vmatpush.bf16.msra.mxu1 %v8096_v38  ;;  %1611 = vmatpush.bf16.msra.mxu3 %v8097_v56  ;;  %v8107_v38 = vld [vmem:[#allocation34_spill] sm:$0xff]  ;;  %v8108_v56 = vld [vmem:[#allocation36_spill] sm:$0xff] }
 0x187   :  { %1574 = vmatpush.bf16.msra.mxu0 %v8098_v58  ;;  %1600 = vmatpush.bf16.msra.mxu2 %v8099_v6  ;;  %v8109_v58 = vld [vmem:[#allocation38_spill] sm:$0xff]  ;;  %v8110_v6 = vld [vmem:[#allocation43_spill] sm:$0xff] }
 0x189   :  { %1586 = vmatpush.bf16.msra.mxu1 %v8102_v17  ;;  %1612 = vmatpush.bf16.msra.mxu3 %v8103_v25  ;;  %v8113_v17 = vld [vmem:[#allocation42_spill] sm:$0xff]  ;;  %v8114_v25 = vld [vmem:[#allocation47_spill] sm:$0xff] }
 0x18b   :  { %1619 = vmatpush.bf16.msrb.mxu0 %v8100_v49  ;;  %1645 = vmatpush.bf16.msrb.mxu2 %v8101_v34  ;;  %v8111_v49 = vld [vmem:[#allocation45_spill] sm:$0xff]  ;;  %v8112_v34 = vld [vmem:[#allocation40_spill] sm:$0xff] }
 0x18d   :  { %1587 = vmatpush.bf16.msra.mxu1 %v8106_v33  ;;  %1613 = vmatpush.bf16.msra.mxu3 %v8107_v38  ;;  %v8117_v33 = vld [vmem:[#allocation46_spill] sm:$0xff]  ;;  %v8118_v38 = vld [vmem:[#allocation51_spill] sm:$0xff] }
 0x18f   :  { %1620 = vmatpush.bf16.msrb.mxu0 %v8104_v44  ;;  %1646 = vmatpush.bf16.msrb.mxu2 %v8105_v46  ;;  %v8115_v44 = vld [vmem:[#allocation49_spill] sm:$0xff]  ;;  %v8116_v46 = vld [vmem:[#allocation44_spill] sm:$0xff] }
 0x191   :  { %1632 = vmatpush.bf16.msrb.mxu1 %v8108_v56  ;;  %1658 = vmatpush.bf16.msrb.mxu3 %v8109_v58  ;;  %v8119_v56 = vld [vmem:[#allocation53_spill] sm:$0xff]  ;;  %v8120_v58 = vld [vmem:[#allocation48_spill] sm:$0xff] }
 0x193   :  { %1621 = vmatpush.bf16.msrb.mxu0 %v8110_v6  ;;  %1647 = vmatpush.bf16.msrb.mxu2 %v8111_v49  ;;  %v8121_v6 = vld [vmem:[#allocation50_spill] sm:$0xff]  ;;  %v8122_v49 = vld [vmem:[#allocation55_spill] sm:$0xff] }
 0x195   :  { %1633 = vmatpush.bf16.msrb.mxu1 %v8112_v34  ;;  %1659 = vmatpush.bf16.msrb.mxu3 %v8113_v17  ;;  %v8123_v34 = vld [vmem:[#allocation57_spill] sm:$0xff]  ;;  %v8124_v17 = vld [vmem:[#allocation52_spill] sm:$0xff] }
 0x197   :  { %1622 = vmatpush.bf16.msrb.mxu0 %v8114_v25  ;;  %1648 = vmatpush.bf16.msrb.mxu2 %v8115_v44  ;;  %v8125_v25 = vld [vmem:[#allocation54_spill] sm:$0xff]  ;;  %v8126_v44 = vld [vmem:[#allocation59_spill] sm:$0xff] }
 0x199   :  { %1634 = vmatpush.bf16.msrb.mxu1 %v8116_v46  ;;  %1660 = vmatpush.bf16.msrb.mxu3 %v8117_v33  ;;  %v8127_v46 = vld [vmem:[#allocation61_spill] sm:$0xff]  ;;  %v8128_v33 = vld [vmem:[#allocation56_spill] sm:$0xff] }
 0x19b   :  { %1623 = vmatpush.bf16.msrb.mxu0 %v8118_v38  ;;  %1649 = vmatpush.bf16.msrb.mxu2 %v8119_v56  ;;  %v8129_v38 = vld [vmem:[#allocation58_spill] sm:$0xff]  ;;  %v8130_v56 = vld [vmem:[#allocation63_spill] sm:$0xff] }
 0x19d   :  { %1635 = vmatpush.bf16.msrb.mxu1 %v8120_v58  ;;  %1661 = vmatpush.bf16.msrb.mxu3 %v8121_v6  ;;  %v8131_v58 = vld [vmem:[#allocation65_spill] sm:$0xff]  ;;  %v8132_v6 = vld [vmem:[#allocation60_spill] sm:$0xff] }
 0x19f   :  { %1624 = vmatpush.bf16.msrb.mxu0 %v8122_v49  ;;  %1650 = vmatpush.bf16.msrb.mxu2 %v8123_v34  ;;  %v8133_v49 = vld [vmem:[#allocation62_spill] sm:$0xff]  ;;  %v8134_v34 = vld [vmem:[#allocation64_spill] sm:$0xff] }
 0x1a1   :  { %1636 = vmatpush.bf16.msrb.mxu1 %v8124_v17  ;;  %1662 = vmatpush.bf16.msrb.mxu3 %v8125_v25  ;;  %v8135_v17 = vld [vmem:[#allocation66_spill] sm:$0xff] }
 0x1a3   :  { %1625 = vmatpush.bf16.msrb.mxu0 %v8126_v44  ;;  %1651 = vmatpush.bf16.msrb.mxu2 %v8127_v46  ;;  %v4064_v46 = vld [vmem:[%s7604_s1 + $0x18] sm:$0xff] }
 0x1a4   :  { %1190 = vst [vmem:[#allocation1 + $0x20] ss:$4 sm:$0xff] %v4064_v46 }
 0x1a5   :  { %1637 = vmatpush.bf16.msrb.mxu1 %v8128_v33  ;;  %1663 = vmatpush.bf16.msrb.mxu3 %v8129_v38 }
 0x1a7   :  { %1626 = vmatpush.bf16.msrb.mxu0 %v8130_v56  ;;  %1652 = vmatpush.bf16.msrb.mxu2 %v8131_v58  ;;  %v1216_v25 = vpop.f32.mrf.mxu0 }
 0x1a9   :  { %1638 = vmatpush.bf16.msrb.mxu1 %v8132_v6  ;;  %1664 = vmatpush.bf16.msrb.mxu3 %v8133_v49  ;;  %v1191_v6 = vld.sshfl [vmem:[#allocation1] sm:$0xff pattern:$0x73625140] }
 0x1aa   :  { %v1217_v49 = vadd.f32 %v1216_v25, %v1191_v6 }
 0x1ab   :  { %v1195_v25 = vld.sshfl [vmem:[#allocation1 + $0x20] sm:$0xff pattern:$0x73625140] }
 0x1ad   :  { %1639 = vmatpush.bf16.msrb.mxu1 %v8134_v34  ;;  %1665 = vmatpush.bf16.msrb.mxu3 %v8135_v17  ;;  %v1229_v33 = vpop.f32.mrf.mxu1  ;;  %v1242_v44 = vpop.f32.mrf.mxu2 }
 0x1ae   :  { %v1230_v34 = vadd.f32 %v1229_v33, %v1217_v49  ;;  %v1243_v18 = vadd.f32 %v1242_v44, %v1192_v7 }
 0x1af   :  { %v1218_v38 = vpop.f32.mrf.mxu0 }
 0x1b0   :  { %v4065_v54 = vmul.f32 -1.442695, %v1230_v34 }
 0x1b2   :  { %4287 = vpow2.f32 %v4065_v54 }
 0x1b3   :  { %v1255_v56 = vpop.f32.mrf.mxu3 }
 0x1b4   :  { %v1256_v16 = vadd.f32 %v1255_v56, %v1243_v18 }
 0x1b5   :  { %v1231_v29 = vpop.f32.mrf.mxu1  ;;  %v1244_v58 = vpop.f32.mrf.mxu2 }
 0x1b6   :  { %v4066_v8 = vmul.f32 -1.442695, %v1256_v16 }
 0x1b7   :  { %v1268_v12 = vpop.f32.mrf.mxu0 }
 0x1b8   :  { %4289 = vpow2.f32 %v4066_v8  ;;  %v1269_v33 = vadd.f32 %v1268_v12, %v1193_v4 }
 0x1bb   :  { %v1257_v26 = vpop.f32.mrf.mxu3 }
 0x1bc   :  { %v4288_v26 = vpop.eup %4287 }
 0x1bd   :  { %v1281_v17 = vpop.f32.mrf.mxu1  ;;  %v1294_v21 = vpop.f32.mrf.mxu2  ;;  %v6087_v16 = vadd.f32 1.0, %v4288_v26 }
 0x1be   :  { %v1295_v29 = vadd.f32 %v1294_v21, %v1194_v3  ;;  %v4290_v6 = vpop.eup %4289  ;;  %v1282_v56 = vadd.f32 %v1281_v17, %v1269_v33  ;;  %v1196_v3 = vld.sshfl [vmem:[#allocation1 + $0x28] sm:$0xff pattern:$0x73625140] }
 0x1bf   :  { %v1270_v36 = vpop.f32.mrf.mxu0  ;;  %vm1444_vm12 = vweird.f32 %v6087_v16 }
 0x1c0   :  { %v4067_v8 = vmul.f32 -1.442695, %v1282_v56 }
 0x1c3   :  { %v1307_v41 = vpop.f32.mrf.mxu3 }
 0x1c4   :  { %v1308_v31 = vadd.f32 %v1307_v41, %v1295_v29 }
 0x1c5   :  { %v1283_v38 = vpop.f32.mrf.mxu1  ;;  %v1296_v46 = vpop.f32.mrf.mxu2 }
 0x1c6   :  { %v4068_v44 = vmul.f32 -1.442695, %v1308_v31  ;;  %v6089_v38 = vadd.f32 1.0, %v4290_v6 }
 0x1c7   :  { %v1320_v58 = vpop.f32.mrf.mxu0 }
 0x1c8   :  { %v1321_v36 = vadd.f32 %v1320_v58, %v1195_v25  ;;  %4291 = vpow2.f32 %v4068_v44  ;;  %vm1459_vm15 = vweird.f32 %v6089_v38  ;;  %v1463_v59 = vand.u32 2147483647, %v6089_v38 }
 0x1c9   :  { %4293 = vrcp.f32 %v6087_v16 }
 0x1ca   :  { %vm1464_vm4 = vcmp.eq.f32.partialorder %v1463_v59, 8.507059e+37 }
 0x1cb   :  { %v1309_v7 = vpop.f32.mrf.mxu3 }
 0x1cd   :  { %v1346_v34 = vpop.f32.mrf.mxu2  ;;  %v1333_v18 = vpop.f32.mrf.mxu1 }
 0x1ce   :  { %v1334_v54 = vadd.f32 %v1333_v18, %v1321_v36  ;;  %v1347_v12 = vadd.f32 %v1346_v34, %v1196_v3  ;;  %v4292_v41 = vpop.eup %4291 }
 0x1cf   :  { %v1322_v49 = vpop.f32.mrf.mxu0  ;;  %v6093_v58 = vpop.eup %4293  ;;  %v6095_v26 = vadd.f32 1.0, %v4292_v41 }
 0x1d0   :  { %v4069_v21 = vmul.f32 -1.442695, %v1334_v54  ;;  %v1440_v56 = vmul.f32 %v6093_v58, %v6087_v16  ;;  %vm1445_vm13 = vweird.f32 %v6093_v58 }
 0x1d1   :  { %vm6137_vm0 = vmor %vm1444_vm12, %vm1445_vm13  ;;  %vm1489_vm8 = vweird.f32 %v6095_v26 }
 0x1d2   :  { %4295 = vpow2.f32 %v4069_v21  ;;  %v1441_v54 = vsub.f32 1.0, %v1440_v56 }
 0x1d3   :  { %4297 = vrcp.f32 %v6089_v38  ;;  %v1359_v17 = vpop.f32.mrf.mxu3 }
 0x1d4   :  { %4299 = vpow2.f32 %v4067_v8  ;;  %v1360_v31 = vadd.f32 %v1359_v17, %v1347_v12 }
 0x1d5   :  { %v1348_v4 = vpop.f32.mrf.mxu2  ;;  %v1335_v46 = vpop.f32.mrf.mxu1 }
 0x1d6   :  { %v4070_v29 = vmul.f32 -1.442695, %v1360_v31  ;;  %v1442_v31 = vmul.f32 %v6093_v58, %v1441_v54  ;;  %v1197_v46 = vld.sshfl [vmem:[#allocation1 + $0x30] sm:$0xff pattern:$0x73625140] }
 0x1d8   :  { %v4296_v25 = vpop.eup %4295  ;;  %4301 = vpow2.f32 %v4070_v29 }
 0x1d9   :  { %v6097_v33 = vpop.eup %4297  ;;  %v6099_v7 = vadd.f32 1.0, %v4296_v25 }
 0x1da   :  { %v4300_v44 = vpop.eup %4299  ;;  %v1455_v36 = vmul.f32 %v6097_v33, %v6089_v38  ;;  %vm1460_vm14 = vweird.f32 %v6097_v33 }
 0x1db   :  { %4303 = vrcp.f32 %v6099_v7  ;;  %v1361_v6 = vpop.f32.mrf.mxu3  ;;  %v6107_v34 = vadd.f32 1.0, %v4300_v44  ;;  %vm6144_vm1 = vmor %vm1459_vm15, %vm1460_vm14  ;;  %vm1504_vm5 = vweird.f32 %v6099_v7 }
 0x1dc   :  { %4305 = vrcp.f32 %v6095_v26  ;;  %v1456_v3 = vsub.f32 1.0, %v1455_v36  ;;  %v1443_v6 = vadd.f32 %v6093_v58, %v1442_v31  ;;  %v1448_v31 = vand.u32 2147483647, %v6087_v16 }
 0x1dd   :  { %4307 = vrcp.f32 %v6107_v34  ;;  %vm1474_vm13 = vweird.f32 %v6107_v34 }
 0x1de   :  { %v4302_v18 = vpop.eup %4301  ;;  %v1457_v4 = vmul.f32 %v6097_v33, %v1456_v3  ;;  %vm1449_vm2 = vcmp.eq.f32.partialorder %v1448_v31, 8.507059e+37 }
 0x1df   :  { %v6116_v12 = vadd.f32 1.0, %v4302_v18  ;;  %v1450_v18 = vand.u32 2147483648, %v6087_v16  ;;  %v1447_v16 = vsel %vm6137_vm0, %v6093_v58, %v1443_v6  ;;  %v1510_v6 = vand.u32 2147483648, %v6099_v7 }
 0x1e0   :  { %v1458_v54 = vadd.f32 %v6097_v33, %v1457_v4  ;;  %v1198_v4 = vld.sshfl [vmem:[#allocation1 + $0x38] sm:$0xff pattern:$0x73625140] }
 0x1e1   :  { %v6109_v49 = vpop.eup %4303  ;;  %4309 = vrcp.f32 %v6116_v12 }
 0x1e2   :  { %v6112_v8 = vpop.eup %4305  ;;  %v1500_v21 = vmul.f32 %v6109_v49, %v6099_v7  ;;  %vm1505_vm3 = vweird.f32 %v6109_v49 }
 0x1e3   :  { %v1485_v41 = vmul.f32 %v6112_v8, %v6095_v26  ;;  %v6122_v29 = vpop.eup %4307  ;;  %vm1490_vm6 = vweird.f32 %v6112_v8  ;;  %vm6169_vm7 = vmor %vm1504_vm5, %vm1505_vm3 }
 0x1e4   :  { %v1501_v25 = vsub.f32 1.0, %v1500_v21  ;;  %v1465_v21 = vand.u32 2147483648, %v6089_v38  ;;  %v1462_v38 = vsel %vm6144_vm1, %v6097_v33, %v1458_v54  ;;  %v1508_v54 = vand.u32 2147483647, %v6099_v7  ;;  %vm6182_vm9 = vmor %vm1489_vm8, %vm1490_vm6 }
 0x1e5   :  { %v1486_v56 = vsub.f32 1.0, %v1485_v41  ;;  %v1493_v7 = vand.u32 2147483647, %v6095_v26  ;;  %vm1475_vm11 = vweird.f32 %v6122_v29  ;;  %vm1519_vm1 = vweird.f32 %v6116_v12 }
 0x1e6   :  { %v1502_v51 = vmul.f32 %v6109_v49, %v1501_v25  ;;  %vm1509_vm10 = vcmp.eq.f32.partialorder %v1508_v54, 8.507059e+37  ;;  %vm1476_vm14 = vmor %vm1474_vm13, %vm1475_vm11 }
 0x1e7   :  { %v1372_v17 = vpop.f32.mrf.mxu0  ;;  %v6151_v25 = vpop.eup %4309  ;;  %vm1494_vm12 = vcmp.eq.f32.partialorder %v1493_v7, 8.507059e+37 }
 0x1e8   :  { %v1373_v44 = vadd.f32 %v1372_v17, %v1197_v46  ;;  %v1470_v17 = vmul.f32 %v6122_v29, %v6107_v34  ;;  %v1503_v58 = vadd.f32 %v6109_v49, %v1502_v51  ;;  %vm1520_vm0 = vweird.f32 %v6151_v25 }
 0x1ea   :  { %v1471_v19 = vsub.f32 1.0, %v1470_v17 }
 0x1ec   :  { %v1472_v51 = vmul.f32 %v6122_v29, %v1471_v19  ;;  %v1507_v19 = vsel %vm6169_vm7, %v6109_v49, %v1503_v58  ;;  %v1478_v58 = vand.u32 2147483647, %v6107_v34 }
 0x1ed   :  { %v1385_v36 = vpop.f32.mrf.mxu1  ;;  %v1398_v3 = vpop.f32.mrf.mxu2 }
 0x1ee   :  { %v1386_v46 = vadd.f32 %v1385_v36, %v1373_v44  ;;  %v1451_v44 = vor.u32 1.1754944e-38, %v1450_v18  ;;  %v1466_v36 = vor.u32 1.1754944e-38, %v1465_v21  ;;  %v1399_v24 = vadd.f32 %v1398_v3, %v1198_v4 }
 0x1ef   :  { %v1374_v15 = vpop.f32.mrf.mxu0  ;;  %v1515_v18 = vmul.f32 %v6151_v25, %v6116_v12  ;;  %v1511_v4 = vor.u32 1.1754944e-38, %v1510_v6  ;;  %vm1479_vm15 = vcmp.eq.f32.partialorder %v1478_v58, 8.507059e+37  ;;  %v4071_v58 = vld [vmem:[%s7604_s1 + $0x20] sm:$0xff] }
 0x1f0   :  { %4311 = vtanh.f32 %v1386_v46  ;;  %v1487_v15 = vmul.f32 %v6112_v8, %v1486_v56  ;;  %v1452_v53 = vsel %vm1449_vm2, %v1451_v44, %v1447_v16  ;;  %v1467_v47 = vsel %vm1464_vm4, %v1466_v36, %v1462_v38  ;;  %vm1521_vm2 = vmor %vm1519_vm1, %vm1520_vm0  ;;  %v8148_v44 = vld [vmem:[#allocation105_spill] sm:$0xff]  ;;  %1548 = vst [vmem:[#allocation1] ss:$4 sm:$0xff] %v4071_v58  ;;  %v8173_v58 = vld [vmem:[#allocation130_spill] sm:$0xff] }
 0x1f1   :  { %v1536_v46 = vmul.f32 %v1467_v47, %v5908_v63  ;;  %v1516_v16 = vsub.f32 1.0, %v1515_v18  ;;  %v1473_v63 = vadd.f32 %v6122_v29, %v1472_v51  ;;  %v1512_v49 = vsel %vm1509_vm10, %v1511_v4, %v1507_v19  ;;  %v8145_v19 = vld [vmem:[#allocation85_spill] sm:$0xff]  ;;  %v8146_v4 = vld [vmem:[#allocation103_spill] sm:$0xff] }
 0x1f2   :  { %v1488_v56 = vadd.f32 %v6112_v8, %v1487_v15  ;;  %v1480_v15 = vand.u32 2147483648, %v6107_v34  ;;  %v1531_v18 = vmul.f32 %v1512_v49, %v5927_v50  ;;  %v1525_v34 = vand.u32 2147483648, %v6116_v12  ;;  %v8152_v49 = vld [vmem:[#allocation109_spill] sm:$0xff] }
 0x1f3   :  { %v1411_v41 = vpop.f32.mrf.mxu3  ;;  %v1523_v50 = vand.u32 2147483647, %v6116_v12 }
 0x1f4   :  { %v1412_v33 = vadd.f32 %v1411_v41, %v1399_v24  ;;  %v1495_v24 = vand.u32 2147483648, %v6095_v26 }
 0x1f5   :  { %v1387_v3 = vpop.f32.mrf.mxu1  ;;  %v1400_v59 = vpop.f32.mrf.mxu2  ;;  %vm1524_vm3 = vcmp.eq.f32.partialorder %v1523_v50, 8.507059e+37  ;;  %v8166_v50 = vld [vmem:[#allocation111_spill] sm:$0xff] }
 0x1f6   :  { %v4312_v21 = vpop.eup %4311  ;;  %4313 = vtanh.f32 %v1412_v33  ;;  %v1496_v26 = vor.u32 1.1754944e-38, %v1495_v24  ;;  %v1477_v33 = vsel %vm1476_vm14, %v6122_v29, %v1473_v63  ;;  %v1526_v24 = vor.u32 1.1754944e-38, %v1525_v34  ;;  %v8150_v63 = vld [vmem:[#allocation88_spill] sm:$0xff]  ;;  %v8165_v34 = vld [vmem:[#allocation126_spill] sm:$0xff] }
 0x1f7   :  { %v1537_v31 = vmul.f32 %v4312_v21, %v1452_v53  ;;  %v1492_v53 = vsel %vm6182_vm9, %v6112_v8, %v1488_v56  ;;  %v1517_v8 = vmul.f32 %v6151_v25, %v1516_v16  ;;  %v1481_v56 = vor.u32 1.1754944e-38, %v1480_v15  ;;  %v8147_v16 = vld [vmem:[#allocation104_spill] sm:$0xff]  ;;  %v8153_v15 = vld [vmem:[#allocation110_spill] sm:$0xff] }
 0x1f8   :  { %v1497_v6 = vsel %vm1494_vm12, %v1496_v26, %v1492_v53  ;;  %v8149_v53 = vld [vmem:[#allocation106_spill] sm:$0xff]  ;;  %v8151_v26 = vld [vmem:[#allocation89_spill] sm:$0xff] }
 0x1f9   :  { %v6186_v38 = vadd.f32 %v1537_v31, %v1536_v46  ;;  %v1518_v3 = vadd.f32 %v6151_v25, %v1517_v8  ;;  %v1482_v21 = vsel %vm1479_vm15, %v1481_v56, %v1477_v33  ;;  %v8156_v8 = vld [vmem:[#allocation94_spill] sm:$0xff]  ;;  %v8160_v33 = vld [vmem:[#allocation117_spill] sm:$0xff] }
 0x1fa   :  { %v8161_v56 = vld [vmem:[#allocation102_spill] sm:$0xff] }
 0x1fb   :  { %4315 = vtanh.f32 %v6186_v38  ;;  %v1413_v36 = vpop.f32.mrf.mxu3  ;;  %v1522_v29 = vsel %vm1521_vm2, %v6151_v25, %v1518_v3  ;;  %v8144_v25 = vld [vmem:[#allocation84_spill] sm:$0xff]  ;;  %v8162_v3 = vld [vmem:[#allocation121_spill] sm:$0xff] }
 0x1fc   :  { %v4314_v41 = vpop.eup %4313  ;;  %v1527_v31 = vsel %vm1524_vm3, %v1526_v24, %v1522_v29  ;;  %v8154_v36 = vld [vmem:[#allocation92_spill] sm:$0xff]  ;;  %v8168_v29 = vld [vmem:[#allocation127_spill] sm:$0xff] }
 0x1fd   :  { %v1532_v47 = vmul.f32 %v4314_v41, %v1497_v6  ;;  %v8155_v41 = vld [vmem:[#allocation93_spill] sm:$0xff]  ;;  %v8157_v6 = vld [vmem:[#allocation95_spill] sm:$0xff]  ;;  %v8169_v24 = vld [vmem:[#allocation128_spill] sm:$0xff] }
 0x1ff   :  { %v6200_v54 = vadd.f32 %v1532_v47, %v1531_v18  ;;  %v8158_v18 = vld [vmem:[#allocation114_spill] sm:$0xff]  ;;  %v8159_v47 = vld [vmem:[#allocation99_spill] sm:$0xff] }
 0x201   :  { %v4316_v59 = vpop.eup %4315  ;;  %4317 = vtanh.f32 %v6200_v54 }
 0x202   :  { %v1540_v51 = vmul.f32 %v4316_v59, %v1482_v21  ;;  %v8163_v59 = vld [vmem:[#allocation108_spill] sm:$0xff]  ;;  %v8164_v21 = vld [vmem:[#allocation125_spill] sm:$0xff] }
 0x204   :  { %v6209_v17 = vpack.c.bf16 %v1540_v51, %v1540_v51  ;;  %v8167_v51 = vld [vmem:[#allocation112_spill] sm:$0xff] }
 0x206   :  { %1575 = vmatmul.bf16.vlgmr.msra.gmra.mxu0 %v6209_v17  ;;  %1601 = vmatmul.bf16.vlgmr.msra.gmra.mxu2 %v6209_v17 }
 0x207   :  { %v4318_v46 = vpop.eup %4317  ;;  %1671 = vmatpush.bf16.msra.mxu0 %v8040_v22  ;;  %1697 = vmatpush.bf16.msra.mxu2 %v8041_v1 }
 0x208   :  { %v1535_v7 = vmul.f32 %v4318_v46, %v1527_v31  ;;  %v8170_v46 = vld [vmem:[#allocation115_spill] sm:$0xff]  ;;  %v8171_v31 = vld [vmem:[#allocation116_spill] sm:$0xff] }
 0x20a   :  { %v6215_v12 = vpack.c.bf16 %v1535_v7, %v1535_v7  ;;  %v8172_v7 = vld [vmem:[#allocation129_spill] sm:$0xff] }
 0x20b   :  { %1672 = vmatpush.bf16.msra.mxu0 %v8042_v2  ;;  %1698 = vmatpush.bf16.msra.mxu2 %v8043_v39 }
 0x20c   :  { %1588 = vmatmul.bf16.vlgmr.msra.gmra.mxu1 %v6215_v12  ;;  %1614 = vmatmul.bf16.vlgmr.msra.gmra.mxu3 %v6215_v12 }
 0x20d   :  { %1684 = vmatpush.bf16.msra.mxu1 %v8044_v52  ;;  %1710 = vmatpush.bf16.msra.mxu3 %v8045_v9 }
 0x20f   :  { %1673 = vmatpush.bf16.msra.mxu0 %v8046_v61  ;;  %1699 = vmatpush.bf16.msra.mxu2 %v8047_v13 }
 0x211   :  { %1685 = vmatpush.bf16.msra.mxu1 %v8048_v57  ;;  %1711 = vmatpush.bf16.msra.mxu3 %v8049_v62 }
 0x213   :  { %1674 = vmatpush.bf16.msra.mxu0 %v8050_v30  ;;  %1700 = vmatpush.bf16.msra.mxu2 %v8051_v14 }
 0x215   :  { %1686 = vmatpush.bf16.msra.mxu1 %v8052_v48  ;;  %1712 = vmatpush.bf16.msra.mxu3 %v8053_v43 }
 0x216   :  { %1627 = vmatmul.bf16.vlgmr.msrb.gmra.mxu0 %v6209_v17  ;;  %1653 = vmatmul.bf16.vlgmr.msrb.gmra.mxu2 %v6209_v17 }
 0x217   :  { %1675 = vmatpush.bf16.msra.mxu0 %v8054_v55  ;;  %1701 = vmatpush.bf16.msra.mxu2 %v8055_v27 }
 0x219   :  { %1687 = vmatpush.bf16.msra.mxu1 %v8056_v5  ;;  %1713 = vmatpush.bf16.msra.mxu3 %v8057_v42 }
 0x21b   :  { %1676 = vmatpush.bf16.msra.mxu0 %v8058_v11  ;;  %1702 = vmatpush.bf16.msra.mxu2 %v8059_v23 }
 0x21c   :  { %1640 = vmatmul.bf16.vlgmr.msrb.gmra.mxu1 %v6215_v12  ;;  %1666 = vmatmul.bf16.vlgmr.msrb.gmra.mxu3 %v6215_v12 }
 0x21d   :  { %1688 = vmatpush.bf16.msra.mxu1 %v8060_v35  ;;  %1714 = vmatpush.bf16.msra.mxu3 %v8061_v37 }
 0x21f   :  { %1677 = vmatpush.bf16.msra.mxu0 %v5448_v40  ;;  %1703 = vmatpush.bf16.msra.mxu2 %v8062_v60 }
 0x221   :  { %1689 = vmatpush.bf16.msra.mxu1 %v8144_v25  ;;  %1715 = vmatpush.bf16.msra.mxu3 %v8145_v19 }
 0x223   :  { %1678 = vmatpush.bf16.msra.mxu0 %v8146_v4  ;;  %1704 = vmatpush.bf16.msra.mxu2 %v8147_v16 }
 0x225   :  { %1690 = vmatpush.bf16.msra.mxu1 %v8150_v63  ;;  %1716 = vmatpush.bf16.msra.mxu3 %v8151_v26 }
 0x226   :  { %1679 = vmatmul.bf16.vlgmr.msra.gmra.mxu0 %v6209_v17  ;;  %1705 = vmatmul.bf16.vlgmr.msra.gmra.mxu2 %v6209_v17 }
 0x227   :  { %1723 = vmatpush.bf16.msrb.mxu0 %v8148_v44  ;;  %1749 = vmatpush.bf16.msrb.mxu2 %v8149_v53 }
 0x229   :  { %1691 = vmatpush.bf16.msra.mxu1 %v8154_v36  ;;  %1717 = vmatpush.bf16.msra.mxu3 %v8155_v41 }
 0x22b   :  { %1724 = vmatpush.bf16.msrb.mxu0 %v8152_v49  ;;  %1750 = vmatpush.bf16.msrb.mxu2 %v8153_v15 }
 0x22c   :  { %1692 = vmatmul.bf16.vlgmr.msra.gmra.mxu1 %v6215_v12  ;;  %1718 = vmatmul.bf16.vlgmr.msra.gmra.mxu3 %v6215_v12 }
 0x22d   :  { %1736 = vmatpush.bf16.msrb.mxu1 %v8156_v8  ;;  %1762 = vmatpush.bf16.msrb.mxu3 %v8157_v6 }
 0x22f   :  { %1725 = vmatpush.bf16.msrb.mxu0 %v8073_v28  ;;  %1751 = vmatpush.bf16.msrb.mxu2 %v8158_v18  ;;  %v1553_v28 = vld.sshfl [vmem:[#allocation1 + $0x10] sm:$0xff pattern:$0x73625140] }
 0x231   :  { %1737 = vmatpush.bf16.msrb.mxu1 %v8075_v32  ;;  %1763 = vmatpush.bf16.msrb.mxu3 %v8159_v47 }
 0x233   :  { %1726 = vmatpush.bf16.msrb.mxu0 %v8160_v33  ;;  %1752 = vmatpush.bf16.msrb.mxu2 %v8078_v45 }
 0x235   :  { %1738 = vmatpush.bf16.msrb.mxu1 %v8079_v0  ;;  %1764 = vmatpush.bf16.msrb.mxu3 %v8161_v56 }
 0x237   :  { %1727 = vmatpush.bf16.msrb.mxu0 %v8162_v3  ;;  %1753 = vmatpush.bf16.msrb.mxu2 %v5655_v20 }
 0x239   :  { %1739 = vmatpush.bf16.msrb.mxu1 %v8081_v10  ;;  %1765 = vmatpush.bf16.msrb.mxu3 %v8163_v59  ;;  %v8174_v59 = vld [vmem:[#allocation3_spill] sm:$0xff] }
 0x23a   :  { %v1552_v10 = vld.sshfl [vmem:[#allocation1 + $0x8] sm:$0xff pattern:$0x73625140] }
 0x23b   :  { %1728 = vmatpush.bf16.msrb.mxu0 %v8164_v21  ;;  %1754 = vmatpush.bf16.msrb.mxu2 %v8165_v34  ;;  %v8175_v21 = vld [vmem:[#allocation5_spill] sm:$0xff]  ;;  %v8176_v34 = vld [vmem:[#allocation119_spill] sm:$0xff] }
 0x23d   :  { %1740 = vmatpush.bf16.msrb.mxu1 %v8166_v50  ;;  %1766 = vmatpush.bf16.msrb.mxu3 %v8167_v51  ;;  %v8177_v50 = vld [vmem:[#allocation120_spill] sm:$0xff] }
 0x23f   :  { %1729 = vmatpush.bf16.msrb.mxu0 %v8168_v29  ;;  %1755 = vmatpush.bf16.msrb.mxu2 %v8169_v24  ;;  %v8178_v24 = vld [vmem:[#allocation7_spill] sm:$0xff] }
 0x241   :  { %1741 = vmatpush.bf16.msrb.mxu1 %v8170_v46  ;;  %1767 = vmatpush.bf16.msrb.mxu3 %v8171_v31  ;;  %v8179_v46 = vld [vmem:[#allocation9_spill] sm:$0xff]  ;;  %v8180_v31 = vld [vmem:[#allocation123_spill] sm:$0xff] }
 0x243   :  { %1730 = vmatpush.bf16.msrb.mxu0 %v8172_v7  ;;  %1756 = vmatpush.bf16.msrb.mxu2 %v8173_v58  ;;  %v8181_v7 = vld [vmem:[#allocation124_spill] sm:$0xff] }
 0x244   :  { %v8182_v58 = vld [vmem:[#allocation4_spill] sm:$0xff] }
 0x245   :  { %1742 = vmatpush.bf16.msrb.mxu1 %v8176_v34  ;;  %1768 = vmatpush.bf16.msrb.mxu3 %v8177_v50  ;;  %v8184_v50 = vld [vmem:[#allocation11_spill] sm:$0xff]  ;;  %v8185_v34 = vld [vmem:[#allocation13_spill] sm:$0xff] }
 0x246   :  { %1731 = vmatmul.bf16.vlgmr.msrb.gmra.mxu0 %v6209_v17  ;;  %1757 = vmatmul.bf16.vlgmr.msrb.gmra.mxu2 %v6209_v17  ;;  %v8186_v17 = vld [vmem:[#allocation8_spill] sm:$0xff] }
 0x247   :  { %1927 = vmatpush.bf16.msra.mxu0 %v8174_v59  ;;  %1953 = vmatpush.bf16.msra.mxu2 %v8175_v21  ;;  %v8183_v59 = vld [vmem:[#allocation6_spill] sm:$0xff]  ;;  %v8193_v21 = vld [vmem:[#allocation21_spill] sm:$0xff] }
 0x249   :  { %1743 = vmatpush.bf16.msrb.mxu1 %v8180_v31  ;;  %1769 = vmatpush.bf16.msrb.mxu3 %v8181_v7  ;;  %v8189_v31 = vld [vmem:[#allocation17_spill] sm:$0xff]  ;;  %v8190_v7 = vld [vmem:[#allocation12_spill] sm:$0xff] }
 0x24b   :  { %1928 = vmatpush.bf16.msra.mxu0 %v8178_v24  ;;  %1954 = vmatpush.bf16.msra.mxu2 %v8179_v46  ;;  %v8187_v24 = vld [vmem:[#allocation10_spill] sm:$0xff]  ;;  %v8188_v46 = vld [vmem:[#allocation15_spill] sm:$0xff] }
 0x24c   :  { %1744 = vmatmul.bf16.vlgmr.msrb.gmra.mxu1 %v6215_v12  ;;  %1770 = vmatmul.bf16.vlgmr.msrb.gmra.mxu3 %v6215_v12  ;;  %v8194_v12 = vld [vmem:[#allocation16_spill] sm:$0xff] }
 0x24d   :  { %1940 = vmatpush.bf16.msra.mxu1 %v8182_v58  ;;  %1966 = vmatpush.bf16.msra.mxu3 %v8183_v59  ;;  %v8191_v58 = vld [vmem:[#allocation14_spill] sm:$0xff]  ;;  %v8192_v59 = vld [vmem:[#allocation19_spill] sm:$0xff] }
 0x24f   :  { %1929 = vmatpush.bf16.msra.mxu0 %v8184_v50  ;;  %1955 = vmatpush.bf16.msra.mxu2 %v8185_v34  ;;  %v8195_v50 = vld [vmem:[#allocation18_spill] sm:$0xff]  ;;  %v8196_v34 = vld [vmem:[#allocation23_spill] sm:$0xff] }
 0x251   :  { %1941 = vmatpush.bf16.msra.mxu1 %v8186_v17  ;;  %1967 = vmatpush.bf16.msra.mxu3 %v8187_v24  ;;  %v8197_v17 = vld [vmem:[#allocation25_spill] sm:$0xff]  ;;  %v8198_v24 = vld [vmem:[#allocation20_spill] sm:$0xff] }
 0x253   :  { %1930 = vmatpush.bf16.msra.mxu0 %v8188_v46  ;;  %1956 = vmatpush.bf16.msra.mxu2 %v8189_v31  ;;  %v8199_v46 = vld [vmem:[#allocation22_spill] sm:$0xff]  ;;  %v8200_v31 = vld [vmem:[#allocation27_spill] sm:$0xff] }
 0x255   :  { %1942 = vmatpush.bf16.msra.mxu1 %v8190_v7  ;;  %1968 = vmatpush.bf16.msra.mxu3 %v8191_v58  ;;  %v8201_v7 = vld [vmem:[#allocation29_spill] sm:$0xff]  ;;  %v8202_v58 = vld [vmem:[#allocation24_spill] sm:$0xff] }
 0x257   :  { %1931 = vmatpush.bf16.msra.mxu0 %v8192_v59  ;;  %1957 = vmatpush.bf16.msra.mxu2 %v8193_v21  ;;  %v8203_v59 = vld [vmem:[#allocation26_spill] sm:$0xff]  ;;  %v8204_v21 = vld [vmem:[#allocation31_spill] sm:$0xff] }
 0x259   :  { %1943 = vmatpush.bf16.msra.mxu1 %v8194_v12  ;;  %1969 = vmatpush.bf16.msra.mxu3 %v8195_v50  ;;  %v8205_v12 = vld [vmem:[#allocation33_spill] sm:$0xff]  ;;  %v8206_v50 = vld [vmem:[#allocation35_spill] sm:$0xff] }
 0x25b   :  { %1932 = vmatpush.bf16.msra.mxu0 %v8196_v34  ;;  %1958 = vmatpush.bf16.msra.mxu2 %v8197_v17  ;;  %v8207_v34 = vld [vmem:[#allocation37_spill] sm:$0xff]  ;;  %v8208_v17 = vld [vmem:[#allocation28_spill] sm:$0xff] }
 0x25d   :  { %1944 = vmatpush.bf16.msra.mxu1 %v8198_v24  ;;  %1970 = vmatpush.bf16.msra.mxu3 %v8199_v46  ;;  %v8209_v24 = vld [vmem:[#allocation30_spill] sm:$0xff]  ;;  %v8210_v46 = vld [vmem:[#allocation39_spill] sm:$0xff] }
 0x25f   :  { %1933 = vmatpush.bf16.msra.mxu0 %v8200_v31  ;;  %1959 = vmatpush.bf16.msra.mxu2 %v8201_v7  ;;  %v8211_v31 = vld [vmem:[#allocation41_spill] sm:$0xff]  ;;  %v8212_v7 = vld [vmem:[#allocation32_spill] sm:$0xff] }
 0x261   :  { %1945 = vmatpush.bf16.msra.mxu1 %v8202_v58  ;;  %1971 = vmatpush.bf16.msra.mxu3 %v8203_v59  ;;  %v8213_v58 = vld [vmem:[#allocation34_spill] sm:$0xff]  ;;  %v8214_v59 = vld [vmem:[#allocation36_spill] sm:$0xff] }
 0x263   :  { %1934 = vmatpush.bf16.msra.mxu0 %v8204_v21  ;;  %1960 = vmatpush.bf16.msra.mxu2 %v8205_v12  ;;  %v8215_v21 = vld [vmem:[#allocation38_spill] sm:$0xff]  ;;  %v8216_v12 = vld [vmem:[#allocation43_spill] sm:$0xff] }
 0x265   :  { %1946 = vmatpush.bf16.msra.mxu1 %v8208_v17  ;;  %1972 = vmatpush.bf16.msra.mxu3 %v8209_v24  ;;  %v8219_v17 = vld [vmem:[#allocation42_spill] sm:$0xff]  ;;  %v8220_v24 = vld [vmem:[#allocation47_spill] sm:$0xff] }
 0x267   :  { %1979 = vmatpush.bf16.msrb.mxu0 %v8206_v50  ;;  %2005 = vmatpush.bf16.msrb.mxu2 %v8207_v34  ;;  %v8217_v50 = vld [vmem:[#allocation45_spill] sm:$0xff]  ;;  %v8218_v34 = vld [vmem:[#allocation40_spill] sm:$0xff] }
 0x269   :  { %1947 = vmatpush.bf16.msra.mxu1 %v8212_v7  ;;  %1973 = vmatpush.bf16.msra.mxu3 %v8213_v58  ;;  %v8223_v7 = vld [vmem:[#allocation46_spill] sm:$0xff]  ;;  %v8224_v58 = vld [vmem:[#allocation51_spill] sm:$0xff] }
 0x26b   :  { %1980 = vmatpush.bf16.msrb.mxu0 %v8210_v46  ;;  %2006 = vmatpush.bf16.msrb.mxu2 %v8211_v31  ;;  %v8221_v46 = vld [vmem:[#allocation49_spill] sm:$0xff]  ;;  %v8222_v31 = vld [vmem:[#allocation44_spill] sm:$0xff] }
 0x26d   :  { %1992 = vmatpush.bf16.msrb.mxu1 %v8214_v59  ;;  %2018 = vmatpush.bf16.msrb.mxu3 %v8215_v21  ;;  %v8225_v59 = vld [vmem:[#allocation53_spill] sm:$0xff]  ;;  %v8226_v21 = vld [vmem:[#allocation48_spill] sm:$0xff] }
 0x26f   :  { %1981 = vmatpush.bf16.msrb.mxu0 %v8216_v12  ;;  %2007 = vmatpush.bf16.msrb.mxu2 %v8217_v50  ;;  %v8227_v12 = vld [vmem:[#allocation50_spill] sm:$0xff]  ;;  %v8228_v50 = vld [vmem:[#allocation55_spill] sm:$0xff] }
 0x271   :  { %1993 = vmatpush.bf16.msrb.mxu1 %v8218_v34  ;;  %2019 = vmatpush.bf16.msrb.mxu3 %v8219_v17  ;;  %v8229_v34 = vld [vmem:[#allocation57_spill] sm:$0xff]  ;;  %v8230_v17 = vld [vmem:[#allocation52_spill] sm:$0xff] }
 0x273   :  { %1982 = vmatpush.bf16.msrb.mxu0 %v8220_v24  ;;  %2008 = vmatpush.bf16.msrb.mxu2 %v8221_v46  ;;  %v8231_v24 = vld [vmem:[#allocation54_spill] sm:$0xff]  ;;  %v8232_v46 = vld [vmem:[#allocation59_spill] sm:$0xff] }
 0x275   :  { %1994 = vmatpush.bf16.msrb.mxu1 %v8222_v31  ;;  %2020 = vmatpush.bf16.msrb.mxu3 %v8223_v7  ;;  %v8233_v31 = vld [vmem:[#allocation61_spill] sm:$0xff]  ;;  %v8234_v7 = vld [vmem:[#allocation56_spill] sm:$0xff] }
 0x277   :  { %1983 = vmatpush.bf16.msrb.mxu0 %v8224_v58  ;;  %2009 = vmatpush.bf16.msrb.mxu2 %v8225_v59  ;;  %v8235_v58 = vld [vmem:[#allocation58_spill] sm:$0xff]  ;;  %v8236_v59 = vld [vmem:[#allocation63_spill] sm:$0xff] }
 0x279   :  { %1995 = vmatpush.bf16.msrb.mxu1 %v8226_v21  ;;  %2021 = vmatpush.bf16.msrb.mxu3 %v8227_v12  ;;  %v8237_v21 = vld [vmem:[#allocation65_spill] sm:$0xff]  ;;  %v8238_v12 = vld [vmem:[#allocation60_spill] sm:$0xff] }
 0x27b   :  { %1984 = vmatpush.bf16.msrb.mxu0 %v8228_v50  ;;  %2010 = vmatpush.bf16.msrb.mxu2 %v8229_v34  ;;  %v8239_v50 = vld [vmem:[#allocation62_spill] sm:$0xff]  ;;  %v8240_v34 = vld [vmem:[#allocation64_spill] sm:$0xff] }
 0x27d   :  { %1996 = vmatpush.bf16.msrb.mxu1 %v8230_v17  ;;  %2022 = vmatpush.bf16.msrb.mxu3 %v8231_v24  ;;  %v8241_v17 = vld [vmem:[#allocation66_spill] sm:$0xff] }
 0x27f   :  { %1985 = vmatpush.bf16.msrb.mxu0 %v8232_v46  ;;  %2011 = vmatpush.bf16.msrb.mxu2 %v8233_v31  ;;  %v4072_v31 = vld [vmem:[%s7604_s1 + $0x28] sm:$0xff] }
 0x280   :  { %1550 = vst [vmem:[#allocation1 + $0x20] ss:$4 sm:$0xff] %v4072_v31  ;;  %v1554_v31 = vld.sshfl [vmem:[#allocation1 + $0x18] sm:$0xff pattern:$0x73625140] }
 0x281   :  { %1997 = vmatpush.bf16.msrb.mxu1 %v8234_v7  ;;  %2023 = vmatpush.bf16.msrb.mxu3 %v8235_v58 }
 0x283   :  { %1986 = vmatpush.bf16.msrb.mxu0 %v8236_v59  ;;  %2012 = vmatpush.bf16.msrb.mxu2 %v8237_v21  ;;  %v1576_v24 = vpop.f32.mrf.mxu0 }
 0x285   :  { %1998 = vmatpush.bf16.msrb.mxu1 %v8238_v12  ;;  %2024 = vmatpush.bf16.msrb.mxu3 %v8239_v50  ;;  %v1551_v12 = vld.sshfl [vmem:[#allocation1] sm:$0xff pattern:$0x73625140] }
 0x286   :  { %v1577_v50 = vadd.f32 %v1576_v24, %v1551_v12 }
 0x287   :  { %v1555_v24 = vld.sshfl [vmem:[#allocation1 + $0x20] sm:$0xff pattern:$0x73625140] }
 0x289   :  { %1999 = vmatpush.bf16.msrb.mxu1 %v8240_v34  ;;  %2025 = vmatpush.bf16.msrb.mxu3 %v8241_v17  ;;  %v1589_v7 = vpop.f32.mrf.mxu1  ;;  %v1602_v58 = vpop.f32.mrf.mxu2 }
 0x28a   :  { %v1590_v34 = vadd.f32 %v1589_v7, %v1577_v50  ;;  %v1603_v3 = vadd.f32 %v1602_v58, %v1552_v10 }
 0x28b   :  { %v1578_v46 = vpop.f32.mrf.mxu0 }
 0x28c   :  { %v4073_v33 = vmul.f32 -1.442695, %v1590_v34 }
 0x28e   :  { %4319 = vpow2.f32 %v4073_v33 }
 0x28f   :  { %v1615_v59 = vpop.f32.mrf.mxu3 }
 0x290   :  { %v1616_v0 = vadd.f32 %v1615_v59, %v1603_v3 }
 0x291   :  { %v1591_v29 = vpop.f32.mrf.mxu1  ;;  %v1604_v21 = vpop.f32.mrf.mxu2 }
 0x292   :  { %v4074_v47 = vmul.f32 -1.442695, %v1616_v0 }
 0x293   :  { %v1628_v51 = vpop.f32.mrf.mxu0 }
 0x294   :  { %4321 = vpow2.f32 %v4074_v47  ;;  %v1629_v50 = vadd.f32 %v1628_v51, %v1553_v28  ;;  %v1556_v47 = vld.sshfl [vmem:[#allocation1 + $0x28] sm:$0xff pattern:$0x73625140] }
 0x297   :  { %v1617_v20 = vpop.f32.mrf.mxu3 }
 0x298   :  { %v4320_v20 = vpop.eup %4319 }
 0x299   :  { %v1641_v17 = vpop.f32.mrf.mxu1  ;;  %v1654_v56 = vpop.f32.mrf.mxu2  ;;  %v6363_v0 = vadd.f32 1.0, %v4320_v20 }
 0x29a   :  { %v1655_v29 = vadd.f32 %v1654_v56, %v1554_v31  ;;  %v4322_v58 = vpop.eup %4321  ;;  %v1642_v3 = vadd.f32 %v1641_v17, %v1629_v50 }
 0x29b   :  { %v1630_v45 = vpop.f32.mrf.mxu0  ;;  %vm1804_vm4 = vweird.f32 %v6363_v0 }
 0x29c   :  { %v4075_v56 = vmul.f32 -1.442695, %v1642_v3 }
 0x29f   :  { %v1667_v32 = vpop.f32.mrf.mxu3 }
 0x2a0   :  { %v1668_v6 = vadd.f32 %v1667_v32, %v1655_v29 }
 0x2a1   :  { %v1643_v46 = vpop.f32.mrf.mxu1  ;;  %v1656_v18 = vpop.f32.mrf.mxu2 }
 0x2a2   :  { %v4076_v7 = vmul.f32 -1.442695, %v1668_v6  ;;  %v6365_v18 = vadd.f32 1.0, %v4322_v58 }
 0x2a3   :  { %v1680_v21 = vpop.f32.mrf.mxu0 }
 0x2a4   :  { %v1681_v45 = vadd.f32 %v1680_v21, %v1555_v24  ;;  %4323 = vpow2.f32 %v4076_v7  ;;  %vm1819_vm7 = vweird.f32 %v6365_v18  ;;  %v1823_v41 = vand.u32 2147483647, %v6365_v18 }
 0x2a5   :  { %4325 = vrcp.f32 %v6363_v0 }
 0x2a6   :  { %vm1824_vm12 = vcmp.eq.f32.partialorder %v1823_v41, 8.507059e+37 }
 0x2a7   :  { %v1669_v10 = vpop.f32.mrf.mxu3 }
 0x2a9   :  { %v1706_v59 = vpop.f32.mrf.mxu2  ;;  %v1693_v34 = vpop.f32.mrf.mxu1 }
 0x2aa   :  { %v1694_v33 = vadd.f32 %v1693_v34, %v1681_v45  ;;  %v1707_v28 = vadd.f32 %v1706_v59, %v1556_v47  ;;  %v4324_v31 = vpop.eup %4323 }
 0x2ab   :  { %v1682_v12 = vpop.f32.mrf.mxu0  ;;  %v6369_v21 = vpop.eup %4325  ;;  %v6371_v20 = vadd.f32 1.0, %v4324_v31 }
 0x2ac   :  { %v4077_v32 = vmul.f32 -1.442695, %v1694_v33  ;;  %v1800_v3 = vmul.f32 %v6369_v21, %v6363_v0  ;;  %vm1805_vm5 = vweird.f32 %v6369_v21 }
 0x2ad   :  { %vm6413_vm8 = vmor %vm1804_vm4, %vm1805_vm5  ;;  %vm1849_vm0 = vweird.f32 %v6371_v20 }
 0x2ae   :  { %4327 = vpow2.f32 %v4077_v32  ;;  %v1801_v33 = vsub.f32 1.0, %v1800_v3 }
 0x2af   :  { %4329 = vrcp.f32 %v6365_v18  ;;  %v1719_v6 = vpop.f32.mrf.mxu3 }
 0x2b0   :  { %4331 = vpow2.f32 %v4075_v56  ;;  %v1720_v51 = vadd.f32 %v1719_v6, %v1707_v28 }
 0x2b1   :  { %v1708_v17 = vpop.f32.mrf.mxu2  ;;  %v1695_v46 = vpop.f32.mrf.mxu1 }
 0x2b2   :  { %v4078_v29 = vmul.f32 -1.442695, %v1720_v51  ;;  %v1802_v51 = vmul.f32 %v6369_v21, %v1801_v33  ;;  %v1557_v46 = vld.sshfl [vmem:[#allocation1 + $0x30] sm:$0xff pattern:$0x73625140] }
 0x2b4   :  { %v4328_v24 = vpop.eup %4327  ;;  %4333 = vpow2.f32 %v4078_v29 }
 0x2b5   :  { %v6373_v50 = vpop.eup %4329  ;;  %v6375_v10 = vadd.f32 1.0, %v4328_v24 }
 0x2b6   :  { %v4332_v7 = vpop.eup %4331  ;;  %v1815_v45 = vmul.f32 %v6373_v50, %v6365_v18  ;;  %vm1820_vm6 = vweird.f32 %v6373_v50 }
 0x2b7   :  { %4335 = vrcp.f32 %v6375_v10  ;;  %v1721_v58 = vpop.f32.mrf.mxu3  ;;  %v6383_v59 = vadd.f32 1.0, %v4332_v7  ;;  %vm6420_vm9 = vmor %vm1819_vm7, %vm1820_vm6  ;;  %vm1864_vm13 = vweird.f32 %v6375_v10 }
 0x2b8   :  { %4337 = vrcp.f32 %v6371_v20  ;;  %v1816_v47 = vsub.f32 1.0, %v1815_v45  ;;  %v1803_v58 = vadd.f32 %v6369_v21, %v1802_v51  ;;  %v1808_v51 = vand.u32 2147483647, %v6363_v0 }
 0x2b9   :  { %4339 = vrcp.f32 %v6383_v59  ;;  %vm1834_vm5 = vweird.f32 %v6383_v59 }
 0x2ba   :  { %v4334_v34 = vpop.eup %4333  ;;  %v1817_v17 = vmul.f32 %v6373_v50, %v1816_v47  ;;  %vm1809_vm10 = vcmp.eq.f32.partialorder %v1808_v51, 8.507059e+37 }
 0x2bb   :  { %v6392_v28 = vadd.f32 1.0, %v4334_v34  ;;  %v1810_v34 = vand.u32 2147483648, %v6363_v0  ;;  %v1807_v0 = vsel %vm6413_vm8, %v6369_v21, %v1803_v58  ;;  %v1870_v58 = vand.u32 2147483648, %v6375_v10 }
 0x2bc   :  { %v1818_v33 = vadd.f32 %v6373_v50, %v1817_v17  ;;  %v1558_v17 = vld.sshfl [vmem:[#allocation1 + $0x38] sm:$0xff pattern:$0x73625140] }
 0x2bd   :  { %v6385_v12 = vpop.eup %4335  ;;  %4341 = vrcp.f32 %v6392_v28 }
 0x2be   :  { %v6388_v56 = vpop.eup %4337  ;;  %v1860_v32 = vmul.f32 %v6385_v12, %v6375_v10  ;;  %vm1865_vm11 = vweird.f32 %v6385_v12 }
 0x2bf   :  { %v1845_v31 = vmul.f32 %v6388_v56, %v6371_v20  ;;  %v6398_v29 = vpop.eup %4339  ;;  %vm1850_vm14 = vweird.f32 %v6388_v56  ;;  %vm6445_vm15 = vmor %vm1864_vm13, %vm1865_vm11 }
 0x2c0   :  { %v1861_v24 = vsub.f32 1.0, %v1860_v32  ;;  %v1825_v32 = vand.u32 2147483648, %v6365_v18  ;;  %v1822_v18 = vsel %vm6420_vm9, %v6373_v50, %v1818_v33  ;;  %v1868_v33 = vand.u32 2147483647, %v6375_v10  ;;  %vm6458_vm1 = vmor %vm1849_vm0, %vm1850_vm14 }
 0x2c1   :  { %v1846_v3 = vsub.f32 1.0, %v1845_v31  ;;  %v1853_v10 = vand.u32 2147483647, %v6371_v20  ;;  %vm1835_vm3 = vweird.f32 %v6398_v29  ;;  %vm1879_vm9 = vweird.f32 %v6392_v28 }
 0x2c2   :  { %v1862_v8 = vmul.f32 %v6385_v12, %v1861_v24  ;;  %vm1869_vm2 = vcmp.eq.f32.partialorder %v1868_v33, 8.507059e+37  ;;  %vm1836_vm6 = vmor %vm1834_vm5, %vm1835_vm3 }
 0x2c3   :  { %v1732_v6 = vpop.f32.mrf.mxu0  ;;  %v6427_v24 = vpop.eup %4341  ;;  %vm1854_vm4 = vcmp.eq.f32.partialorder %v1853_v10, 8.507059e+37 }
 0x2c4   :  { %v1733_v7 = vadd.f32 %v1732_v6, %v1557_v46  ;;  %v1830_v6 = vmul.f32 %v6398_v29, %v6383_v59  ;;  %v1863_v21 = vadd.f32 %v6385_v12, %v1862_v8  ;;  %vm1880_vm8 = vweird.f32 %v6427_v24 }
 0x2c6   :  { %v1831_v49 = vsub.f32 1.0, %v1830_v6 }
 0x2c8   :  { %v1832_v8 = vmul.f32 %v6398_v29, %v1831_v49  ;;  %v1867_v49 = vsel %vm6445_vm15, %v6385_v12, %v1863_v21  ;;  %v1838_v21 = vand.u32 2147483647, %v6383_v59 }
 0x2c9   :  { %v1745_v45 = vpop.f32.mrf.mxu1  ;;  %v1758_v47 = vpop.f32.mrf.mxu2 }
 0x2ca   :  { %v1746_v46 = vadd.f32 %v1745_v45, %v1733_v7  ;;  %v1811_v7 = vor.u32 1.1754944e-38, %v1810_v34  ;;  %v1826_v45 = vor.u32 1.1754944e-38, %v1825_v32  ;;  %v1759_v26 = vadd.f32 %v1758_v47, %v1558_v17 }
 0x2cb   :  { %v1734_v36 = vpop.f32.mrf.mxu0  ;;  %v1875_v34 = vmul.f32 %v6427_v24, %v6392_v28  ;;  %v1871_v17 = vor.u32 1.1754944e-38, %v1870_v58  ;;  %vm1839_vm7 = vcmp.eq.f32.partialorder %v1838_v21, 8.507059e+37  ;;  %v8261_v21 = vld [vmem:[#allocation99_spill] sm:$0xff] }
 0x2cc   :  { %4343 = vtanh.f32 %v1746_v46  ;;  %v1847_v36 = vmul.f32 %v6388_v56, %v1846_v3  ;;  %v1812_v63 = vsel %vm1809_vm10, %v1811_v7, %v1807_v0  ;;  %v1827_v15 = vsel %vm1824_vm12, %v1826_v45, %v1822_v18  ;;  %vm1881_vm10 = vmor %vm1879_vm9, %vm1880_vm8  ;;  %v8254_v7 = vld [vmem:[#allocation92_spill] sm:$0xff] }
 0x2cd   :  { %v1896_v46 = vmul.f32 %v1827_v15, %v6186_v38  ;;  %v1876_v0 = vsub.f32 1.0, %v1875_v34  ;;  %v1872_v12 = vsel %vm1869_vm2, %v1871_v17, %v1867_v49  ;;  %v8251_v49 = vld [vmem:[#allocation89_spill] sm:$0xff] }
 0x2ce   :  { %v1848_v3 = vadd.f32 %v6388_v56, %v1847_v36  ;;  %v1840_v36 = vand.u32 2147483648, %v6383_v59  ;;  %v1891_v34 = vmul.f32 %v1872_v12, %v6200_v54  ;;  %v1885_v59 = vand.u32 2147483648, %v6392_v28  ;;  %v8252_v17 = vld [vmem:[#allocation109_spill] sm:$0xff]  ;;  %v8257_v12 = vld [vmem:[#allocation95_spill] sm:$0xff] }
 0x2cf   :  { %v1771_v31 = vpop.f32.mrf.mxu3  ;;  %v1883_v54 = vand.u32 2147483647, %v6392_v28 }
 0x2d0   :  { %v1772_v50 = vadd.f32 %v1771_v31, %v1759_v26  ;;  %v1855_v26 = vand.u32 2147483648, %v6371_v20  ;;  %v1852_v38 = vsel %vm6458_vm1, %v6388_v56, %v1848_v3  ;;  %v1877_v56 = vmul.f32 %v6427_v24, %v1876_v0  ;;  %v8253_v0 = vld [vmem:[#allocation110_spill] sm:$0xff] }
 0x2d1   :  { %v1747_v47 = vpop.f32.mrf.mxu1  ;;  %v1760_v41 = vpop.f32.mrf.mxu2  ;;  %v1841_v3 = vor.u32 1.1754944e-38, %v1840_v36  ;;  %vm1884_vm11 = vcmp.eq.f32.partialorder %v1883_v54, 8.507059e+37  ;;  %v8258_v36 = vld [vmem:[#allocation113_spill] sm:$0xff]  ;;  %v8272_v54 = vld [vmem:[#allocation111_spill] sm:$0xff] }
 0x2d2   :  { %v4344_v32 = vpop.eup %4343  ;;  %4345 = vtanh.f32 %v1772_v50  ;;  %v1856_v20 = vor.u32 1.1754944e-38, %v1855_v26  ;;  %v1878_v47 = vadd.f32 %v6427_v24, %v1877_v56  ;;  %v1886_v26 = vor.u32 1.1754944e-38, %v1885_v59  ;;  %v8262_v56 = vld [vmem:[#allocation117_spill] sm:$0xff]  ;;  %v8271_v59 = vld [vmem:[#allocation126_spill] sm:$0xff] }
 0x2d3   :  { %v1897_v51 = vmul.f32 %v4344_v32, %v1812_v63  ;;  %v1833_v63 = vadd.f32 %v6398_v29, %v1832_v8 }
 0x2d4   :  { %v1857_v58 = vsel %vm1854_vm4, %v1856_v20, %v1852_v38  ;;  %v8255_v38 = vld [vmem:[#allocation93_spill] sm:$0xff]  ;;  %v8256_v20 = vld [vmem:[#allocation94_spill] sm:$0xff] }
 0x2d5   :  { %v6462_v18 = vadd.f32 %v1897_v51, %v1896_v46  ;;  %v1837_v50 = vsel %vm1836_vm6, %v6398_v29, %v1833_v63  ;;  %v1882_v29 = vsel %vm1881_vm10, %v6427_v24, %v1878_v47  ;;  %v8250_v24 = vld [vmem:[#allocation88_spill] sm:$0xff]  ;;  %v8268_v47 = vld [vmem:[#allocation107_spill] sm:$0xff] }
 0x2d6   :  { %v1842_v32 = vsel %vm1839_vm7, %v1841_v3, %v1837_v50  ;;  %v1887_v51 = vsel %vm1884_vm11, %v1886_v26, %v1882_v29  ;;  %v4079_v63 = vld [vmem:[%s7604_s1 + $0x30] sm:$0xff]  ;;  %v8266_v50 = vld [vmem:[#allocation121_spill] sm:$0xff]  ;;  %v8267_v3 = vld [vmem:[#allocation122_spill] sm:$0xff] }
 0x2d7   :  { %4347 = vtanh.f32 %v6462_v18  ;;  %v1773_v45 = vpop.f32.mrf.mxu3  ;;  %1908 = vst [vmem:[#allocation1] ss:$4 sm:$0xff] %v4079_v63  ;;  %v8274_v29 = vld [vmem:[#allocation127_spill] sm:$0xff]  ;;  %v8275_v26 = vld [vmem:[#allocation128_spill] sm:$0xff]  ;;  %v8279_v63 = vld [vmem:[#allocation130_spill] sm:$0xff] }
 0x2d8   :  { %v4346_v31 = vpop.eup %4345  ;;  %v8259_v45 = vld [vmem:[#allocation114_spill] sm:$0xff] }
 0x2d9   :  { %v1892_v15 = vmul.f32 %v4346_v31, %v1857_v58  ;;  %v8260_v31 = vld [vmem:[#allocation98_spill] sm:$0xff] }
 0x2da   :  { %v8263_v58 = vld [vmem:[#allocation118_spill] sm:$0xff] }
 0x2db   :  { %v6476_v33 = vadd.f32 %v1892_v15, %v1891_v34  ;;  %v8264_v34 = vld [vmem:[#allocation101_spill] sm:$0xff]  ;;  %v8265_v15 = vld [vmem:[#allocation102_spill] sm:$0xff] }
 0x2dd   :  { %v4348_v41 = vpop.eup %4347  ;;  %4349 = vtanh.f32 %v6476_v33 }
 0x2de   :  { %v1900_v8 = vmul.f32 %v4348_v41, %v1842_v32  ;;  %v8269_v41 = vld [vmem:[#allocation108_spill] sm:$0xff]  ;;  %v8270_v32 = vld [vmem:[#allocation125_spill] sm:$0xff] }
 0x2e0   :  { %v6485_v6 = vpack.c.bf16 %v1900_v8, %v1900_v8  ;;  %v8273_v8 = vld [vmem:[#allocation112_spill] sm:$0xff] }
 0x2e2   :  { %1935 = vmatmul.bf16.vlgmr.msra.gmra.mxu0 %v6485_v6  ;;  %1961 = vmatmul.bf16.vlgmr.msra.gmra.mxu2 %v6485_v6 }
 0x2e3   :  { %v4350_v46 = vpop.eup %4349  ;;  %2031 = vmatpush.bf16.msra.mxu0 %v8040_v22  ;;  %2057 = vmatpush.bf16.msra.mxu2 %v8041_v1 }
 0x2e4   :  { %v1895_v10 = vmul.f32 %v4350_v46, %v1887_v51  ;;  %v8276_v46 = vld [vmem:[#allocation115_spill] sm:$0xff]  ;;  %v8277_v51 = vld [vmem:[#allocation116_spill] sm:$0xff] }
 0x2e6   :  { %v6491_v28 = vpack.c.bf16 %v1895_v10, %v1895_v10  ;;  %v8278_v10 = vld [vmem:[#allocation129_spill] sm:$0xff] }
 0x2e7   :  { %2032 = vmatpush.bf16.msra.mxu0 %v8042_v2  ;;  %2058 = vmatpush.bf16.msra.mxu2 %v8043_v39 }
 0x2e8   :  { %1948 = vmatmul.bf16.vlgmr.msra.gmra.mxu1 %v6491_v28  ;;  %1974 = vmatmul.bf16.vlgmr.msra.gmra.mxu3 %v6491_v28 }
 0x2e9   :  { %2044 = vmatpush.bf16.msra.mxu1 %v8044_v52  ;;  %2070 = vmatpush.bf16.msra.mxu3 %v8045_v9 }
 0x2eb   :  { %2033 = vmatpush.bf16.msra.mxu0 %v8046_v61  ;;  %2059 = vmatpush.bf16.msra.mxu2 %v8047_v13 }
 0x2ed   :  { %2045 = vmatpush.bf16.msra.mxu1 %v8048_v57  ;;  %2071 = vmatpush.bf16.msra.mxu3 %v8049_v62 }
 0x2ef   :  { %2034 = vmatpush.bf16.msra.mxu0 %v8050_v30  ;;  %2060 = vmatpush.bf16.msra.mxu2 %v8051_v14 }
 0x2f1   :  { %2046 = vmatpush.bf16.msra.mxu1 %v8052_v48  ;;  %2072 = vmatpush.bf16.msra.mxu3 %v8053_v43 }
 0x2f2   :  { %1987 = vmatmul.bf16.vlgmr.msrb.gmra.mxu0 %v6485_v6  ;;  %2013 = vmatmul.bf16.vlgmr.msrb.gmra.mxu2 %v6485_v6 }
 0x2f3   :  { %2035 = vmatpush.bf16.msra.mxu0 %v8054_v55  ;;  %2061 = vmatpush.bf16.msra.mxu2 %v8055_v27 }
 0x2f5   :  { %2047 = vmatpush.bf16.msra.mxu1 %v8056_v5  ;;  %2073 = vmatpush.bf16.msra.mxu3 %v8057_v42 }
 0x2f7   :  { %2036 = vmatpush.bf16.msra.mxu0 %v8058_v11  ;;  %2062 = vmatpush.bf16.msra.mxu2 %v8059_v23 }
 0x2f8   :  { %2000 = vmatmul.bf16.vlgmr.msrb.gmra.mxu1 %v6491_v28  ;;  %2026 = vmatmul.bf16.vlgmr.msrb.gmra.mxu3 %v6491_v28 }
 0x2f9   :  { %2048 = vmatpush.bf16.msra.mxu1 %v8060_v35  ;;  %2074 = vmatpush.bf16.msra.mxu3 %v8061_v37 }
 0x2fb   :  { %2037 = vmatpush.bf16.msra.mxu0 %v5448_v40  ;;  %2063 = vmatpush.bf16.msra.mxu2 %v8062_v60 }
 0x2fd   :  { %2049 = vmatpush.bf16.msra.mxu1 %v8144_v25  ;;  %2075 = vmatpush.bf16.msra.mxu3 %v8145_v19 }
 0x2ff   :  { %2038 = vmatpush.bf16.msra.mxu0 %v8146_v4  ;;  %2064 = vmatpush.bf16.msra.mxu2 %v8147_v16 }
 0x301   :  { %2050 = vmatpush.bf16.msra.mxu1 %v8250_v24  ;;  %2076 = vmatpush.bf16.msra.mxu3 %v8251_v49 }
 0x302   :  { %2039 = vmatmul.bf16.vlgmr.msra.gmra.mxu0 %v6485_v6  ;;  %2065 = vmatmul.bf16.vlgmr.msra.gmra.mxu2 %v6485_v6 }
 0x303   :  { %2083 = vmatpush.bf16.msrb.mxu0 %v8148_v44  ;;  %2109 = vmatpush.bf16.msrb.mxu2 %v8149_v53 }
 0x305   :  { %2051 = vmatpush.bf16.msra.mxu1 %v8254_v7  ;;  %2077 = vmatpush.bf16.msra.mxu3 %v8255_v38 }
 0x307   :  { %2084 = vmatpush.bf16.msrb.mxu0 %v8252_v17  ;;  %2110 = vmatpush.bf16.msrb.mxu2 %v8253_v0 }
 0x308   :  { %2052 = vmatmul.bf16.vlgmr.msra.gmra.mxu1 %v6491_v28  ;;  %2078 = vmatmul.bf16.vlgmr.msra.gmra.mxu3 %v6491_v28 }
 0x309   :  { %2096 = vmatpush.bf16.msrb.mxu1 %v8256_v20  ;;  %2122 = vmatpush.bf16.msrb.mxu3 %v8257_v12 }
 0x30b   :  { %2085 = vmatpush.bf16.msrb.mxu0 %v8258_v36  ;;  %2111 = vmatpush.bf16.msrb.mxu2 %v8259_v45  ;;  %v1913_v36 = vld.sshfl [vmem:[#allocation1 + $0x10] sm:$0xff pattern:$0x73625140] }
 0x30d   :  { %2097 = vmatpush.bf16.msrb.mxu1 %v8260_v31  ;;  %2123 = vmatpush.bf16.msrb.mxu3 %v8261_v21 }
 0x30f   :  { %2086 = vmatpush.bf16.msrb.mxu0 %v8262_v56  ;;  %2112 = vmatpush.bf16.msrb.mxu2 %v8263_v58 }
 0x311   :  { %2098 = vmatpush.bf16.msrb.mxu1 %v8264_v34  ;;  %2124 = vmatpush.bf16.msrb.mxu3 %v8265_v15 }
 0x313   :  { %2087 = vmatpush.bf16.msrb.mxu0 %v8266_v50  ;;  %2113 = vmatpush.bf16.msrb.mxu2 %v8267_v3 }
 0x315   :  { %2099 = vmatpush.bf16.msrb.mxu1 %v8268_v47  ;;  %2125 = vmatpush.bf16.msrb.mxu3 %v8269_v41  ;;  %v8280_v41 = vld [vmem:[#allocation3_spill] sm:$0xff] }
 0x316   :  { %v1912_v47 = vld.sshfl [vmem:[#allocation1 + $0x8] sm:$0xff pattern:$0x73625140] }
 0x317   :  { %2088 = vmatpush.bf16.msrb.mxu0 %v8270_v32  ;;  %2114 = vmatpush.bf16.msrb.mxu2 %v8271_v59  ;;  %v8281_v32 = vld [vmem:[#allocation5_spill] sm:$0xff]  ;;  %v8282_v59 = vld [vmem:[#allocation119_spill] sm:$0xff] }
 0x319   :  { %2100 = vmatpush.bf16.msrb.mxu1 %v8272_v54  ;;  %2126 = vmatpush.bf16.msrb.mxu3 %v8273_v8  ;;  %v8283_v54 = vld [vmem:[#allocation120_spill] sm:$0xff] }
 0x31b   :  { %2089 = vmatpush.bf16.msrb.mxu0 %v8274_v29  ;;  %2115 = vmatpush.bf16.msrb.mxu2 %v8275_v26  ;;  %v8284_v26 = vld [vmem:[#allocation7_spill] sm:$0xff] }
 0x31d   :  { %2101 = vmatpush.bf16.msrb.mxu1 %v8276_v46  ;;  %2127 = vmatpush.bf16.msrb.mxu3 %v8277_v51  ;;  %v8285_v46 = vld [vmem:[#allocation9_spill] sm:$0xff]  ;;  %v8286_v51 = vld [vmem:[#allocation123_spill] sm:$0xff] }
 0x31f   :  { %2090 = vmatpush.bf16.msrb.mxu0 %v8278_v10  ;;  %2116 = vmatpush.bf16.msrb.mxu2 %v8279_v63  ;;  %v8287_v10 = vld [vmem:[#allocation124_spill] sm:$0xff] }
 0x320   :  { %v8288_v63 = vld [vmem:[#allocation4_spill] sm:$0xff] }
 0x321   :  { %2102 = vmatpush.bf16.msrb.mxu1 %v8282_v59  ;;  %2128 = vmatpush.bf16.msrb.mxu3 %v8283_v54  ;;  %v8290_v54 = vld [vmem:[#allocation11_spill] sm:$0xff]  ;;  %v8291_v59 = vld [vmem:[#allocation13_spill] sm:$0xff] }
 0x322   :  { %2091 = vmatmul.bf16.vlgmr.msrb.gmra.mxu0 %v6485_v6  ;;  %2117 = vmatmul.bf16.vlgmr.msrb.gmra.mxu2 %v6485_v6  ;;  %v8292_v6 = vld [vmem:[#allocation8_spill] sm:$0xff] }
 0x323   :  { %2287 = vmatpush.bf16.msra.mxu0 %v8280_v41  ;;  %2313 = vmatpush.bf16.msra.mxu2 %v8281_v32  ;;  %v8289_v41 = vld [vmem:[#allocation6_spill] sm:$0xff]  ;;  %v8299_v32 = vld [vmem:[#allocation21_spill] sm:$0xff] }
 0x325   :  { %2103 = vmatpush.bf16.msrb.mxu1 %v8286_v51  ;;  %2129 = vmatpush.bf16.msrb.mxu3 %v8287_v10  ;;  %v8295_v51 = vld [vmem:[#allocation17_spill] sm:$0xff]  ;;  %v8296_v10 = vld [vmem:[#allocation12_spill] sm:$0xff] }
 0x327   :  { %2288 = vmatpush.bf16.msra.mxu0 %v8284_v26  ;;  %2314 = vmatpush.bf16.msra.mxu2 %v8285_v46  ;;  %v8293_v26 = vld [vmem:[#allocation10_spill] sm:$0xff]  ;;  %v8294_v46 = vld [vmem:[#allocation15_spill] sm:$0xff] }
 0x328   :  { %2104 = vmatmul.bf16.vlgmr.msrb.gmra.mxu1 %v6491_v28  ;;  %2130 = vmatmul.bf16.vlgmr.msrb.gmra.mxu3 %v6491_v28  ;;  %v8300_v28 = vld [vmem:[#allocation16_spill] sm:$0xff] }
 0x329   :  { %2300 = vmatpush.bf16.msra.mxu1 %v8288_v63  ;;  %2326 = vmatpush.bf16.msra.mxu3 %v8289_v41  ;;  %v8297_v63 = vld [vmem:[#allocation14_spill] sm:$0xff]  ;;  %v8298_v41 = vld [vmem:[#allocation19_spill] sm:$0xff] }
 0x32b   :  { %2289 = vmatpush.bf16.msra.mxu0 %v8290_v54  ;;  %2315 = vmatpush.bf16.msra.mxu2 %v8291_v59  ;;  %v8301_v54 = vld [vmem:[#allocation18_spill] sm:$0xff]  ;;  %v8302_v59 = vld [vmem:[#allocation23_spill] sm:$0xff] }
 0x32d   :  { %2301 = vmatpush.bf16.msra.mxu1 %v8292_v6  ;;  %2327 = vmatpush.bf16.msra.mxu3 %v8293_v26  ;;  %v8303_v6 = vld [vmem:[#allocation25_spill] sm:$0xff]  ;;  %v8304_v26 = vld [vmem:[#allocation20_spill] sm:$0xff] }
 0x32f   :  { %2290 = vmatpush.bf16.msra.mxu0 %v8294_v46  ;;  %2316 = vmatpush.bf16.msra.mxu2 %v8295_v51  ;;  %v8305_v46 = vld [vmem:[#allocation22_spill] sm:$0xff]  ;;  %v8306_v51 = vld [vmem:[#allocation27_spill] sm:$0xff] }
 0x331   :  { %2302 = vmatpush.bf16.msra.mxu1 %v8296_v10  ;;  %2328 = vmatpush.bf16.msra.mxu3 %v8297_v63  ;;  %v8307_v10 = vld [vmem:[#allocation29_spill] sm:$0xff]  ;;  %v8308_v63 = vld [vmem:[#allocation24_spill] sm:$0xff] }
 0x333   :  { %2291 = vmatpush.bf16.msra.mxu0 %v8298_v41  ;;  %2317 = vmatpush.bf16.msra.mxu2 %v8299_v32  ;;  %v8309_v41 = vld [vmem:[#allocation26_spill] sm:$0xff]  ;;  %v8310_v32 = vld [vmem:[#allocation31_spill] sm:$0xff] }
 0x335   :  { %2303 = vmatpush.bf16.msra.mxu1 %v8300_v28  ;;  %2329 = vmatpush.bf16.msra.mxu3 %v8301_v54  ;;  %v8311_v28 = vld [vmem:[#allocation33_spill] sm:$0xff]  ;;  %v8312_v54 = vld [vmem:[#allocation35_spill] sm:$0xff] }
 0x337   :  { %2292 = vmatpush.bf16.msra.mxu0 %v8302_v59  ;;  %2318 = vmatpush.bf16.msra.mxu2 %v8303_v6  ;;  %v8313_v59 = vld [vmem:[#allocation37_spill] sm:$0xff]  ;;  %v8314_v6 = vld [vmem:[#allocation28_spill] sm:$0xff] }
 0x339   :  { %2304 = vmatpush.bf16.msra.mxu1 %v8304_v26  ;;  %2330 = vmatpush.bf16.msra.mxu3 %v8305_v46  ;;  %v8315_v26 = vld [vmem:[#allocation30_spill] sm:$0xff]  ;;  %v8316_v46 = vld [vmem:[#allocation39_spill] sm:$0xff] }
 0x33b   :  { %2293 = vmatpush.bf16.msra.mxu0 %v8306_v51  ;;  %2319 = vmatpush.bf16.msra.mxu2 %v8307_v10  ;;  %v8317_v51 = vld [vmem:[#allocation41_spill] sm:$0xff]  ;;  %v8318_v10 = vld [vmem:[#allocation32_spill] sm:$0xff] }
 0x33d   :  { %2305 = vmatpush.bf16.msra.mxu1 %v8308_v63  ;;  %2331 = vmatpush.bf16.msra.mxu3 %v8309_v41  ;;  %v8319_v63 = vld [vmem:[#allocation34_spill] sm:$0xff]  ;;  %v8320_v41 = vld [vmem:[#allocation36_spill] sm:$0xff] }
 0x33f   :  { %2294 = vmatpush.bf16.msra.mxu0 %v8310_v32  ;;  %2320 = vmatpush.bf16.msra.mxu2 %v8311_v28  ;;  %v8321_v32 = vld [vmem:[#allocation38_spill] sm:$0xff]  ;;  %v8322_v28 = vld [vmem:[#allocation43_spill] sm:$0xff] }
 0x341   :  { %2306 = vmatpush.bf16.msra.mxu1 %v8314_v6  ;;  %2332 = vmatpush.bf16.msra.mxu3 %v8315_v26  ;;  %v8325_v6 = vld [vmem:[#allocation42_spill] sm:$0xff]  ;;  %v8326_v26 = vld [vmem:[#allocation47_spill] sm:$0xff] }
 0x343   :  { %2339 = vmatpush.bf16.msrb.mxu0 %v8312_v54  ;;  %2365 = vmatpush.bf16.msrb.mxu2 %v8313_v59  ;;  %v8323_v54 = vld [vmem:[#allocation45_spill] sm:$0xff]  ;;  %v8324_v59 = vld [vmem:[#allocation40_spill] sm:$0xff] }
 0x345   :  { %2307 = vmatpush.bf16.msra.mxu1 %v8318_v10  ;;  %2333 = vmatpush.bf16.msra.mxu3 %v8319_v63  ;;  %v8329_v10 = vld [vmem:[#allocation46_spill] sm:$0xff]  ;;  %v8330_v63 = vld [vmem:[#allocation51_spill] sm:$0xff] }
 0x347   :  { %2340 = vmatpush.bf16.msrb.mxu0 %v8316_v46  ;;  %2366 = vmatpush.bf16.msrb.mxu2 %v8317_v51  ;;  %v8327_v46 = vld [vmem:[#allocation49_spill] sm:$0xff]  ;;  %v8328_v51 = vld [vmem:[#allocation44_spill] sm:$0xff] }
 0x349   :  { %2352 = vmatpush.bf16.msrb.mxu1 %v8320_v41  ;;  %2378 = vmatpush.bf16.msrb.mxu3 %v8321_v32  ;;  %v8331_v41 = vld [vmem:[#allocation53_spill] sm:$0xff]  ;;  %v8332_v32 = vld [vmem:[#allocation48_spill] sm:$0xff] }
 0x34b   :  { %2341 = vmatpush.bf16.msrb.mxu0 %v8322_v28  ;;  %2367 = vmatpush.bf16.msrb.mxu2 %v8323_v54  ;;  %v8333_v28 = vld [vmem:[#allocation50_spill] sm:$0xff]  ;;  %v8334_v54 = vld [vmem:[#allocation55_spill] sm:$0xff] }
 0x34d   :  { %2353 = vmatpush.bf16.msrb.mxu1 %v8324_v59  ;;  %2379 = vmatpush.bf16.msrb.mxu3 %v8325_v6  ;;  %v8335_v59 = vld [vmem:[#allocation57_spill] sm:$0xff]  ;;  %v8336_v6 = vld [vmem:[#allocation52_spill] sm:$0xff] }
 0x34f   :  { %2342 = vmatpush.bf16.msrb.mxu0 %v8326_v26  ;;  %2368 = vmatpush.bf16.msrb.mxu2 %v8327_v46  ;;  %v8337_v26 = vld [vmem:[#allocation54_spill] sm:$0xff]  ;;  %v8338_v46 = vld [vmem:[#allocation59_spill] sm:$0xff] }
 0x351   :  { %2354 = vmatpush.bf16.msrb.mxu1 %v8328_v51  ;;  %2380 = vmatpush.bf16.msrb.mxu3 %v8329_v10  ;;  %v8339_v51 = vld [vmem:[#allocation61_spill] sm:$0xff]  ;;  %v8340_v10 = vld [vmem:[#allocation56_spill] sm:$0xff] }
 0x353   :  { %2343 = vmatpush.bf16.msrb.mxu0 %v8330_v63  ;;  %2369 = vmatpush.bf16.msrb.mxu2 %v8331_v41  ;;  %v8341_v63 = vld [vmem:[#allocation58_spill] sm:$0xff]  ;;  %v8342_v41 = vld [vmem:[#allocation63_spill] sm:$0xff] }
 0x355   :  { %2355 = vmatpush.bf16.msrb.mxu1 %v8332_v32  ;;  %2381 = vmatpush.bf16.msrb.mxu3 %v8333_v28  ;;  %v8343_v32 = vld [vmem:[#allocation65_spill] sm:$0xff]  ;;  %v8344_v28 = vld [vmem:[#allocation60_spill] sm:$0xff] }
 0x357   :  { %2344 = vmatpush.bf16.msrb.mxu0 %v8334_v54  ;;  %2370 = vmatpush.bf16.msrb.mxu2 %v8335_v59  ;;  %v8345_v54 = vld [vmem:[#allocation62_spill] sm:$0xff]  ;;  %v8346_v59 = vld [vmem:[#allocation64_spill] sm:$0xff] }
 0x359   :  { %2356 = vmatpush.bf16.msrb.mxu1 %v8336_v6  ;;  %2382 = vmatpush.bf16.msrb.mxu3 %v8337_v26  ;;  %v8347_v6 = vld [vmem:[#allocation66_spill] sm:$0xff] }
 0x35b   :  { %2345 = vmatpush.bf16.msrb.mxu0 %v8338_v46  ;;  %2371 = vmatpush.bf16.msrb.mxu2 %v8339_v51  ;;  %v4080_v51 = vld [vmem:[%s7604_s1 + $0x38] sm:$0xff] }
 0x35c   :  { %1910 = vst [vmem:[#allocation1 + $0x20] ss:$4 sm:$0xff] %v4080_v51  ;;  %v1914_v51 = vld.sshfl [vmem:[#allocation1 + $0x18] sm:$0xff pattern:$0x73625140] }
 0x35d   :  { %2357 = vmatpush.bf16.msrb.mxu1 %v8340_v10  ;;  %2383 = vmatpush.bf16.msrb.mxu3 %v8341_v63 }
 0x35f   :  { %2346 = vmatpush.bf16.msrb.mxu0 %v8342_v41  ;;  %2372 = vmatpush.bf16.msrb.mxu2 %v8343_v32  ;;  %v1936_v26 = vpop.f32.mrf.mxu0 }
 0x361   :  { %2358 = vmatpush.bf16.msrb.mxu1 %v8344_v28  ;;  %2384 = vmatpush.bf16.msrb.mxu3 %v8345_v54  ;;  %v1911_v28 = vld.sshfl [vmem:[#allocation1] sm:$0xff pattern:$0x73625140] }
 0x362   :  { %v1937_v54 = vadd.f32 %v1936_v26, %v1911_v28 }
 0x363   :  { %v1915_v26 = vld.sshfl [vmem:[#allocation1 + $0x20] sm:$0xff pattern:$0x73625140] }
 0x365   :  { %2359 = vmatpush.bf16.msrb.mxu1 %v8346_v59  ;;  %2385 = vmatpush.bf16.msrb.mxu3 %v8347_v6  ;;  %v1949_v10 = vpop.f32.mrf.mxu1  ;;  %v1962_v63 = vpop.f32.mrf.mxu2 }
 0x366   :  { %v1950_v59 = vadd.f32 %v1949_v10, %v1937_v54  ;;  %v1963_v50 = vadd.f32 %v1962_v63, %v1912_v47 }
 0x367   :  { %v1938_v46 = vpop.f32.mrf.mxu0 }
 0x368   :  { %v4081_v56 = vmul.f32 -1.442695, %v1950_v59 }
 0x36a   :  { %4351 = vpow2.f32 %v4081_v56 }
 0x36b   :  { %v1975_v41 = vpop.f32.mrf.mxu3 }
 0x36c   :  { %v1976_v34 = vadd.f32 %v1975_v41, %v1963_v50 }
 0x36d   :  { %v1951_v29 = vpop.f32.mrf.mxu1  ;;  %v1964_v32 = vpop.f32.mrf.mxu2 }
 0x36e   :  { %v4082_v21 = vmul.f32 -1.442695, %v1976_v34 }
 0x36f   :  { %v1988_v8 = vpop.f32.mrf.mxu0 }
 0x370   :  { %4353 = vpow2.f32 %v4082_v21  ;;  %v1989_v54 = vadd.f32 %v1988_v8, %v1913_v36  ;;  %v1916_v21 = vld.sshfl [vmem:[#allocation1 + $0x28] sm:$0xff pattern:$0x73625140] }
 0x373   :  { %v1977_v3 = vpop.f32.mrf.mxu3 }
 0x374   :  { %v4352_v3 = vpop.eup %4351 }
 0x375   :  { %v2001_v6 = vpop.f32.mrf.mxu1  ;;  %v2014_v15 = vpop.f32.mrf.mxu2  ;;  %v6639_v34 = vadd.f32 1.0, %v4352_v3 }
 0x376   :  { %v2015_v29 = vadd.f32 %v2014_v15, %v1914_v51  ;;  %v4354_v63 = vpop.eup %4353  ;;  %v2002_v50 = vadd.f32 %v2001_v6, %v1989_v54 }
 0x377   :  { %v1990_v58 = vpop.f32.mrf.mxu0  ;;  %vm2164_vm12 = vweird.f32 %v6639_v34 }
 0x378   :  { %v4083_v15 = vmul.f32 -1.442695, %v2002_v50 }
 0x37b   :  { %v2027_v31 = vpop.f32.mrf.mxu3 }
 0x37c   :  { %v2028_v12 = vadd.f32 %v2027_v31, %v2015_v29 }
 0x37d   :  { %v2003_v46 = vpop.f32.mrf.mxu1  ;;  %v2016_v45 = vpop.f32.mrf.mxu2 }
 0x37e   :  { %v4084_v10 = vmul.f32 -1.442695, %v2028_v12  ;;  %v6641_v45 = vadd.f32 1.0, %v4354_v63 }
 0x37f   :  { %v2040_v32 = vpop.f32.mrf.mxu0 }
 0x380   :  { %v2041_v58 = vadd.f32 %v2040_v32, %v1915_v26  ;;  %4355 = vpow2.f32 %v4084_v10  ;;  %vm2179_vm15 = vweird.f32 %v6641_v45  ;;  %v2183_v38 = vand.u32 2147483647, %v6641_v45 }
 0x381   :  { %4357 = vrcp.f32 %v6639_v34 }
 0x382   :  { %vm2184_vm4 = vcmp.eq.f32.partialorder %v2183_v38, 8.507059e+37 }
 0x383   :  { %v2029_v47 = vpop.f32.mrf.mxu3 }
 0x385   :  { %v2066_v41 = vpop.f32.mrf.mxu2  ;;  %v2053_v59 = vpop.f32.mrf.mxu1 }
 0x386   :  { %v2054_v56 = vadd.f32 %v2053_v59, %v2041_v58  ;;  %v2067_v36 = vadd.f32 %v2066_v41, %v1916_v21  ;;  %v4356_v51 = vpop.eup %4355 }
 0x387   :  { %v2042_v28 = vpop.f32.mrf.mxu0  ;;  %v6645_v32 = vpop.eup %4357  ;;  %v6647_v3 = vadd.f32 1.0, %v4356_v51 }
 0x388   :  { %v4085_v31 = vmul.f32 -1.442695, %v2054_v56  ;;  %v2160_v50 = vmul.f32 %v6645_v32, %v6639_v34  ;;  %vm2165_vm13 = vweird.f32 %v6645_v32 }
 0x389   :  { %vm6689_vm0 = vmor %vm2164_vm12, %vm2165_vm13  ;;  %vm2209_vm8 = vweird.f32 %v6647_v3 }
 0x38a   :  { %4359 = vpow2.f32 %v4085_v31  ;;  %v2161_v56 = vsub.f32 1.0, %v2160_v50 }
 0x38b   :  { %4361 = vrcp.f32 %v6641_v45  ;;  %v2079_v12 = vpop.f32.mrf.mxu3 }
 0x38c   :  { %4363 = vpow2.f32 %v4083_v15  ;;  %v2080_v8 = vadd.f32 %v2079_v12, %v2067_v36 }
 0x38d   :  { %v2068_v6 = vpop.f32.mrf.mxu2  ;;  %v2055_v46 = vpop.f32.mrf.mxu1 }
 0x38e   :  { %v4086_v29 = vmul.f32 -1.442695, %v2080_v8  ;;  %v2162_v8 = vmul.f32 %v6645_v32, %v2161_v56  ;;  %v1917_v46 = vld.sshfl [vmem:[#allocation1 + $0x30] sm:$0xff pattern:$0x73625140] }
 0x390   :  { %v4360_v26 = vpop.eup %4359  ;;  %4365 = vpow2.f32 %v4086_v29 }
 0x391   :  { %v6649_v54 = vpop.eup %4361  ;;  %v6651_v47 = vadd.f32 1.0, %v4360_v26 }
 0x392   :  { %v4364_v10 = vpop.eup %4363  ;;  %v2175_v58 = vmul.f32 %v6649_v54, %v6641_v45  ;;  %vm2180_vm14 = vweird.f32 %v6649_v54 }
 0x393   :  { %4367 = vrcp.f32 %v6651_v47  ;;  %v2081_v63 = vpop.f32.mrf.mxu3  ;;  %v6659_v41 = vadd.f32 1.0, %v4364_v10  ;;  %vm6696_vm1 = vmor %vm2179_vm15, %vm2180_vm14  ;;  %vm2224_vm5 = vweird.f32 %v6651_v47 }
 0x394   :  { %4369 = vrcp.f32 %v6647_v3  ;;  %v2176_v21 = vsub.f32 1.0, %v2175_v58  ;;  %v2163_v63 = vadd.f32 %v6645_v32, %v2162_v8  ;;  %v2168_v8 = vand.u32 2147483647, %v6639_v34 }
 0x395   :  { %4371 = vrcp.f32 %v6659_v41  ;;  %vm2194_vm13 = vweird.f32 %v6659_v41 }
 0x396   :  { %v4366_v59 = vpop.eup %4365  ;;  %v2177_v6 = vmul.f32 %v6649_v54, %v2176_v21  ;;  %vm2169_vm2 = vcmp.eq.f32.partialorder %v2168_v8, 8.507059e+37 }
 0x397   :  { %v6668_v36 = vadd.f32 1.0, %v4366_v59  ;;  %v2170_v59 = vand.u32 2147483648, %v6639_v34  ;;  %v2167_v34 = vsel %vm6689_vm0, %v6645_v32, %v2163_v63  ;;  %v2230_v63 = vand.u32 2147483648, %v6651_v47 }
 0x398   :  { %v2178_v56 = vadd.f32 %v6649_v54, %v2177_v6  ;;  %v1918_v6 = vld.sshfl [vmem:[#allocation1 + $0x38] sm:$0xff pattern:$0x73625140] }
 0x399   :  { %v6661_v28 = vpop.eup %4367  ;;  %4373 = vrcp.f32 %v6668_v36 }
 0x39a   :  { %v6664_v15 = vpop.eup %4369  ;;  %v2220_v31 = vmul.f32 %v6661_v28, %v6651_v47  ;;  %vm2225_vm3 = vweird.f32 %v6661_v28 }
 0x39b   :  { %v2205_v51 = vmul.f32 %v6664_v15, %v6647_v3  ;;  %v6674_v29 = vpop.eup %4371  ;;  %vm2210_vm6 = vweird.f32 %v6664_v15  ;;  %vm6721_vm7 = vmor %vm2224_vm5, %vm2225_vm3 }
 0x39c   :  { %v2221_v26 = vsub.f32 1.0, %v2220_v31  ;;  %v2185_v31 = vand.u32 2147483648, %v6641_v45  ;;  %v2182_v45 = vsel %vm6696_vm1, %v6649_v54, %v2178_v56  ;;  %v2228_v56 = vand.u32 2147483647, %v6651_v47  ;;  %vm6734_vm9 = vmor %vm2209_vm8, %vm2210_vm6 }
 0x39d   :  { %v2206_v50 = vsub.f32 1.0, %v2205_v51  ;;  %v2213_v47 = vand.u32 2147483647, %v6647_v3  ;;  %vm2195_vm11 = vweird.f32 %v6674_v29  ;;  %vm2239_vm1 = vweird.f32 %v6668_v36 }
 0x39e   :  { %v2222_v20 = vmul.f32 %v6661_v28, %v2221_v26  ;;  %vm2229_vm10 = vcmp.eq.f32.partialorder %v2228_v56, 8.507059e+37  ;;  %vm2196_vm14 = vmor %vm2194_vm13, %vm2195_vm11 }
 0x39f   :  { %v2092_v12 = vpop.f32.mrf.mxu0  ;;  %v6703_v26 = vpop.eup %4373  ;;  %vm2214_vm12 = vcmp.eq.f32.partialorder %v2213_v47, 8.507059e+37 }
 0x3a0   :  { %v2093_v10 = vadd.f32 %v2092_v12, %v1917_v46  ;;  %v2190_v12 = vmul.f32 %v6674_v29, %v6659_v41  ;;  %v2223_v32 = vadd.f32 %v6661_v28, %v2222_v20  ;;  %vm2240_vm0 = vweird.f32 %v6703_v26 }
 0x3a2   :  { %v2191_v17 = vsub.f32 1.0, %v2190_v12 }
 0x3a4   :  { %v2192_v20 = vmul.f32 %v6674_v29, %v2191_v17  ;;  %v2227_v17 = vsel %vm6721_vm7, %v6661_v28, %v2223_v32  ;;  %v2198_v32 = vand.u32 2147483647, %v6659_v41 }
 0x3a5   :  { %v2105_v58 = vpop.f32.mrf.mxu1  ;;  %v2118_v21 = vpop.f32.mrf.mxu2 }
 0x3a6   :  { %v2106_v46 = vadd.f32 %v2105_v58, %v2093_v10  ;;  %v2171_v10 = vor.u32 1.1754944e-38, %v2170_v59  ;;  %v2186_v58 = vor.u32 1.1754944e-38, %v2185_v31  ;;  %v2119_v49 = vadd.f32 %v2118_v21, %v1918_v6 }
 0x3a7   :  { %v2094_v7 = vpop.f32.mrf.mxu0  ;;  %v2235_v59 = vmul.f32 %v6703_v26, %v6668_v36  ;;  %v2231_v6 = vor.u32 1.1754944e-38, %v2230_v63  ;;  %vm2199_vm15 = vcmp.eq.f32.partialorder %v2198_v32, 8.507059e+37  ;;  %v8367_v32 = vld [vmem:[#allocation99_spill] sm:$0xff] }
 0x3a8   :  { %4375 = vtanh.f32 %v2106_v46  ;;  %v2207_v7 = vmul.f32 %v6664_v15, %v2206_v50  ;;  %v2172_v24 = vsel %vm2169_vm2, %v2171_v10, %v2167_v34  ;;  %v2187_v0 = vsel %vm2184_vm4, %v2186_v58, %v2182_v45  ;;  %vm2241_vm2 = vmor %vm2239_vm1, %vm2240_vm0  ;;  %v8360_v10 = vld [vmem:[#allocation92_spill] sm:$0xff] }
 0x3a9   :  { %v2256_v46 = vmul.f32 %v2187_v0, %v6462_v18  ;;  %v2236_v34 = vsub.f32 1.0, %v2235_v59  ;;  %v2232_v28 = vsel %vm2229_vm10, %v2231_v6, %v2227_v17  ;;  %v8357_v17 = vld [vmem:[#allocation89_spill] sm:$0xff] }
 0x3aa   :  { %v2208_v50 = vadd.f32 %v6664_v15, %v2207_v7  ;;  %v2200_v7 = vand.u32 2147483648, %v6659_v41  ;;  %v2251_v59 = vmul.f32 %v2232_v28, %v6476_v33  ;;  %v2245_v41 = vand.u32 2147483648, %v6668_v36  ;;  %v8358_v6 = vld [vmem:[#allocation109_spill] sm:$0xff]  ;;  %v8363_v28 = vld [vmem:[#allocation95_spill] sm:$0xff] }
 0x3ab   :  { %v2131_v51 = vpop.f32.mrf.mxu3  ;;  %v2243_v33 = vand.u32 2147483647, %v6668_v36 }
 0x3ac   :  { %v2132_v54 = vadd.f32 %v2131_v51, %v2119_v49  ;;  %v2215_v49 = vand.u32 2147483648, %v6647_v3  ;;  %v2212_v18 = vsel %vm6734_vm9, %v6664_v15, %v2208_v50  ;;  %v2237_v15 = vmul.f32 %v6703_v26, %v2236_v34  ;;  %v8359_v34 = vld [vmem:[#allocation110_spill] sm:$0xff] }
 0x3ad   :  { %v2107_v21 = vpop.f32.mrf.mxu1  ;;  %v2120_v38 = vpop.f32.mrf.mxu2  ;;  %v2201_v50 = vor.u32 1.1754944e-38, %v2200_v7  ;;  %vm2244_vm3 = vcmp.eq.f32.partialorder %v2243_v33, 8.507059e+37  ;;  %v8364_v7 = vld [vmem:[#allocation113_spill] sm:$0xff]  ;;  %v8378_v33 = vld [vmem:[#allocation111_spill] sm:$0xff] }
 0x3ae   :  { %v4376_v31 = vpop.eup %4375  ;;  %4377 = vtanh.f32 %v2132_v54  ;;  %v2216_v3 = vor.u32 1.1754944e-38, %v2215_v49  ;;  %v2238_v21 = vadd.f32 %v6703_v26, %v2237_v15  ;;  %v2246_v49 = vor.u32 1.1754944e-38, %v2245_v41  ;;  %v8368_v15 = vld [vmem:[#allocation117_spill] sm:$0xff]  ;;  %v8377_v41 = vld [vmem:[#allocation126_spill] sm:$0xff] }
 0x3af   :  { %v2257_v8 = vmul.f32 %v4376_v31, %v2172_v24  ;;  %v2193_v24 = vadd.f32 %v6674_v29, %v2192_v20 }
 0x3b0   :  { %v2217_v63 = vsel %vm2214_vm12, %v2216_v3, %v2212_v18  ;;  %v8361_v18 = vld [vmem:[#allocation93_spill] sm:$0xff]  ;;  %v8362_v3 = vld [vmem:[#allocation94_spill] sm:$0xff] }
 0x3b1   :  { %v6738_v45 = vadd.f32 %v2257_v8, %v2256_v46  ;;  %v2197_v54 = vsel %vm2196_vm14, %v6674_v29, %v2193_v24  ;;  %v2242_v29 = vsel %vm2241_vm2, %v6703_v26, %v2238_v21  ;;  %v8356_v26 = vld [vmem:[#allocation88_spill] sm:$0xff]  ;;  %v4087_v24 = vld [vmem:[%s7604_s1 + $0x40] sm:$0xff]  ;;  %v8374_v21 = vld [vmem:[#allocation107_spill] sm:$0xff] }
 0x3b2   :  { %v2202_v31 = vsel %vm2199_vm15, %v2201_v50, %v2197_v54  ;;  %v2247_v8 = vsel %vm2244_vm3, %v2246_v49, %v2242_v29  ;;  %2268 = vst [vmem:[#allocation1] ss:$4 sm:$0xff] %v4087_v24  ;;  %v8372_v54 = vld [vmem:[#allocation121_spill] sm:$0xff]  ;;  %v8373_v50 = vld [vmem:[#allocation122_spill] sm:$0xff]  ;;  %v8380_v29 = vld [vmem:[#allocation127_spill] sm:$0xff] }
 0x3b3   :  { %4379 = vtanh.f32 %v6738_v45  ;;  %v2133_v58 = vpop.f32.mrf.mxu3  ;;  %v8381_v49 = vld [vmem:[#allocation128_spill] sm:$0xff]  ;;  %v8385_v24 = vld [vmem:[#allocation130_spill] sm:$0xff] }
 0x3b4   :  { %v4378_v51 = vpop.eup %4377  ;;  %v8365_v58 = vld [vmem:[#allocation114_spill] sm:$0xff] }
 0x3b5   :  { %v2252_v0 = vmul.f32 %v4378_v51, %v2217_v63  ;;  %v8366_v51 = vld [vmem:[#allocation98_spill] sm:$0xff] }
 0x3b6   :  { %v8369_v63 = vld [vmem:[#allocation118_spill] sm:$0xff] }
 0x3b7   :  { %v6752_v56 = vadd.f32 %v2252_v0, %v2251_v59  ;;  %v8370_v59 = vld [vmem:[#allocation101_spill] sm:$0xff]  ;;  %v8371_v0 = vld [vmem:[#allocation102_spill] sm:$0xff] }
 0x3b9   :  { %v4380_v38 = vpop.eup %4379  ;;  %4381 = vtanh.f32 %v6752_v56 }
 0x3ba   :  { %v2260_v20 = vmul.f32 %v4380_v38, %v2202_v31  ;;  %v8375_v38 = vld [vmem:[#allocation108_spill] sm:$0xff]  ;;  %v8376_v31 = vld [vmem:[#allocation125_spill] sm:$0xff] }
 0x3bc   :  { %v6761_v12 = vpack.c.bf16 %v2260_v20, %v2260_v20  ;;  %v8379_v20 = vld [vmem:[#allocation112_spill] sm:$0xff] }
 0x3be   :  { %2295 = vmatmul.bf16.vlgmr.msra.gmra.mxu0 %v6761_v12  ;;  %2321 = vmatmul.bf16.vlgmr.msra.gmra.mxu2 %v6761_v12 }
 0x3bf   :  { %v4382_v46 = vpop.eup %4381  ;;  %2391 = vmatpush.bf16.msra.mxu0 %v8040_v22  ;;  %2417 = vmatpush.bf16.msra.mxu2 %v8041_v1 }
 0x3c0   :  { %v2255_v47 = vmul.f32 %v4382_v46, %v2247_v8  ;;  %v8382_v46 = vld [vmem:[#allocation115_spill] sm:$0xff]  ;;  %v8383_v8 = vld [vmem:[#allocation116_spill] sm:$0xff] }
 0x3c2   :  { %v6767_v36 = vpack.c.bf16 %v2255_v47, %v2255_v47  ;;  %v8384_v47 = vld [vmem:[#allocation129_spill] sm:$0xff] }
 0x3c3   :  { %2392 = vmatpush.bf16.msra.mxu0 %v8042_v2  ;;  %2418 = vmatpush.bf16.msra.mxu2 %v8043_v39 }
 0x3c4   :  { %2308 = vmatmul.bf16.vlgmr.msra.gmra.mxu1 %v6767_v36  ;;  %2334 = vmatmul.bf16.vlgmr.msra.gmra.mxu3 %v6767_v36 }
 0x3c5   :  { %2404 = vmatpush.bf16.msra.mxu1 %v8044_v52  ;;  %2430 = vmatpush.bf16.msra.mxu3 %v8045_v9 }
 0x3c7   :  { %2393 = vmatpush.bf16.msra.mxu0 %v8046_v61  ;;  %2419 = vmatpush.bf16.msra.mxu2 %v8047_v13 }
 0x3c9   :  { %2405 = vmatpush.bf16.msra.mxu1 %v8048_v57  ;;  %2431 = vmatpush.bf16.msra.mxu3 %v8049_v62 }
 0x3cb   :  { %2394 = vmatpush.bf16.msra.mxu0 %v8050_v30  ;;  %2420 = vmatpush.bf16.msra.mxu2 %v8051_v14 }
 0x3cd   :  { %2406 = vmatpush.bf16.msra.mxu1 %v8052_v48  ;;  %2432 = vmatpush.bf16.msra.mxu3 %v8053_v43 }
 0x3ce   :  { %2347 = vmatmul.bf16.vlgmr.msrb.gmra.mxu0 %v6761_v12  ;;  %2373 = vmatmul.bf16.vlgmr.msrb.gmra.mxu2 %v6761_v12 }
 0x3cf   :  { %2395 = vmatpush.bf16.msra.mxu0 %v8054_v55  ;;  %2421 = vmatpush.bf16.msra.mxu2 %v8055_v27 }
 0x3d1   :  { %2407 = vmatpush.bf16.msra.mxu1 %v8056_v5  ;;  %2433 = vmatpush.bf16.msra.mxu3 %v8057_v42 }
 0x3d3   :  { %2396 = vmatpush.bf16.msra.mxu0 %v8058_v11  ;;  %2422 = vmatpush.bf16.msra.mxu2 %v8059_v23 }
 0x3d4   :  { %2360 = vmatmul.bf16.vlgmr.msrb.gmra.mxu1 %v6767_v36  ;;  %2386 = vmatmul.bf16.vlgmr.msrb.gmra.mxu3 %v6767_v36 }
 0x3d5   :  { %2408 = vmatpush.bf16.msra.mxu1 %v8060_v35  ;;  %2434 = vmatpush.bf16.msra.mxu3 %v8061_v37 }
 0x3d7   :  { %2397 = vmatpush.bf16.msra.mxu0 %v5448_v40  ;;  %2423 = vmatpush.bf16.msra.mxu2 %v8062_v60 }
 0x3d9   :  { %2409 = vmatpush.bf16.msra.mxu1 %v8144_v25  ;;  %2435 = vmatpush.bf16.msra.mxu3 %v8145_v19 }
 0x3db   :  { %2398 = vmatpush.bf16.msra.mxu0 %v8146_v4  ;;  %2424 = vmatpush.bf16.msra.mxu2 %v8147_v16 }
 0x3dd   :  { %2410 = vmatpush.bf16.msra.mxu1 %v8356_v26  ;;  %2436 = vmatpush.bf16.msra.mxu3 %v8357_v17 }
 0x3de   :  { %2399 = vmatmul.bf16.vlgmr.msra.gmra.mxu0 %v6761_v12  ;;  %2425 = vmatmul.bf16.vlgmr.msra.gmra.mxu2 %v6761_v12 }
 0x3df   :  { %2443 = vmatpush.bf16.msrb.mxu0 %v8148_v44  ;;  %2469 = vmatpush.bf16.msrb.mxu2 %v8149_v53 }
 0x3e1   :  { %2411 = vmatpush.bf16.msra.mxu1 %v8360_v10  ;;  %2437 = vmatpush.bf16.msra.mxu3 %v8361_v18 }
 0x3e3   :  { %2444 = vmatpush.bf16.msrb.mxu0 %v8358_v6  ;;  %2470 = vmatpush.bf16.msrb.mxu2 %v8359_v34 }
 0x3e4   :  { %2412 = vmatmul.bf16.vlgmr.msra.gmra.mxu1 %v6767_v36  ;;  %2438 = vmatmul.bf16.vlgmr.msra.gmra.mxu3 %v6767_v36 }
 0x3e5   :  { %2456 = vmatpush.bf16.msrb.mxu1 %v8362_v3  ;;  %2482 = vmatpush.bf16.msrb.mxu3 %v8363_v28 }
 0x3e7   :  { %2445 = vmatpush.bf16.msrb.mxu0 %v8364_v7  ;;  %2471 = vmatpush.bf16.msrb.mxu2 %v8365_v58  ;;  %v2273_v7 = vld.sshfl [vmem:[#allocation1 + $0x10] sm:$0xff pattern:$0x73625140] }
 0x3e9   :  { %2457 = vmatpush.bf16.msrb.mxu1 %v8366_v51  ;;  %2483 = vmatpush.bf16.msrb.mxu3 %v8367_v32 }
 0x3eb   :  { %2446 = vmatpush.bf16.msrb.mxu0 %v8368_v15  ;;  %2472 = vmatpush.bf16.msrb.mxu2 %v8369_v63 }
 0x3ed   :  { %2458 = vmatpush.bf16.msrb.mxu1 %v8370_v59  ;;  %2484 = vmatpush.bf16.msrb.mxu3 %v8371_v0 }
 0x3ef   :  { %2447 = vmatpush.bf16.msrb.mxu0 %v8372_v54  ;;  %2473 = vmatpush.bf16.msrb.mxu2 %v8373_v50 }
 0x3f1   :  { %2459 = vmatpush.bf16.msrb.mxu1 %v8374_v21  ;;  %2485 = vmatpush.bf16.msrb.mxu3 %v8375_v38  ;;  %v8386_v38 = vld [vmem:[#allocation3_spill] sm:$0xff] }
 0x3f2   :  { %v2272_v21 = vld.sshfl [vmem:[#allocation1 + $0x8] sm:$0xff pattern:$0x73625140] }
 0x3f3   :  { %2448 = vmatpush.bf16.msrb.mxu0 %v8376_v31  ;;  %2474 = vmatpush.bf16.msrb.mxu2 %v8377_v41  ;;  %v8387_v31 = vld [vmem:[#allocation5_spill] sm:$0xff]  ;;  %v8388_v41 = vld [vmem:[#allocation119_spill] sm:$0xff] }
 0x3f5   :  { %2460 = vmatpush.bf16.msrb.mxu1 %v8378_v33  ;;  %2486 = vmatpush.bf16.msrb.mxu3 %v8379_v20  ;;  %v8389_v33 = vld [vmem:[#allocation120_spill] sm:$0xff] }
 0x3f7   :  { %2449 = vmatpush.bf16.msrb.mxu0 %v8380_v29  ;;  %2475 = vmatpush.bf16.msrb.mxu2 %v8381_v49  ;;  %v8390_v49 = vld [vmem:[#allocation7_spill] sm:$0xff] }
 0x3f9   :  { %2461 = vmatpush.bf16.msrb.mxu1 %v8382_v46  ;;  %2487 = vmatpush.bf16.msrb.mxu3 %v8383_v8  ;;  %v8391_v46 = vld [vmem:[#allocation9_spill] sm:$0xff]  ;;  %v8392_v8 = vld [vmem:[#allocation123_spill] sm:$0xff] }
 0x3fb   :  { %2450 = vmatpush.bf16.msrb.mxu0 %v8384_v47  ;;  %2476 = vmatpush.bf16.msrb.mxu2 %v8385_v24  ;;  %v8393_v47 = vld [vmem:[#allocation124_spill] sm:$0xff] }
 0x3fc   :  { %v8394_v24 = vld [vmem:[#allocation4_spill] sm:$0xff] }
 0x3fd   :  { %2462 = vmatpush.bf16.msrb.mxu1 %v8388_v41  ;;  %2488 = vmatpush.bf16.msrb.mxu3 %v8389_v33  ;;  %v8396_v33 = vld [vmem:[#allocation11_spill] sm:$0xff]  ;;  %v8397_v41 = vld [vmem:[#allocation13_spill] sm:$0xff] }
 0x3fe   :  { %2451 = vmatmul.bf16.vlgmr.msrb.gmra.mxu0 %v6761_v12  ;;  %2477 = vmatmul.bf16.vlgmr.msrb.gmra.mxu2 %v6761_v12  ;;  %v8398_v12 = vld [vmem:[#allocation8_spill] sm:$0xff] }
 0x3ff   :  { %2647 = vmatpush.bf16.msra.mxu0 %v8386_v38  ;;  %2673 = vmatpush.bf16.msra.mxu2 %v8387_v31  ;;  %v8395_v38 = vld [vmem:[#allocation6_spill] sm:$0xff]  ;;  %v8405_v31 = vld [vmem:[#allocation21_spill] sm:$0xff] }
 0x401   :  { %2463 = vmatpush.bf16.msrb.mxu1 %v8392_v8  ;;  %2489 = vmatpush.bf16.msrb.mxu3 %v8393_v47  ;;  %v8401_v8 = vld [vmem:[#allocation17_spill] sm:$0xff]  ;;  %v8402_v47 = vld [vmem:[#allocation12_spill] sm:$0xff] }
 0x403   :  { %2648 = vmatpush.bf16.msra.mxu0 %v8390_v49  ;;  %2674 = vmatpush.bf16.msra.mxu2 %v8391_v46  ;;  %v8399_v49 = vld [vmem:[#allocation10_spill] sm:$0xff]  ;;  %v8400_v46 = vld [vmem:[#allocation15_spill] sm:$0xff] }
 0x404   :  { %2464 = vmatmul.bf16.vlgmr.msrb.gmra.mxu1 %v6767_v36  ;;  %2490 = vmatmul.bf16.vlgmr.msrb.gmra.mxu3 %v6767_v36  ;;  %v8406_v36 = vld [vmem:[#allocation16_spill] sm:$0xff] }
 0x405   :  { %2660 = vmatpush.bf16.msra.mxu1 %v8394_v24  ;;  %2686 = vmatpush.bf16.msra.mxu3 %v8395_v38  ;;  %v8403_v24 = vld [vmem:[#allocation14_spill] sm:$0xff]  ;;  %v8404_v38 = vld [vmem:[#allocation19_spill] sm:$0xff] }
 0x407   :  { %2649 = vmatpush.bf16.msra.mxu0 %v8396_v33  ;;  %2675 = vmatpush.bf16.msra.mxu2 %v8397_v41  ;;  %v8407_v33 = vld [vmem:[#allocation18_spill] sm:$0xff]  ;;  %v8408_v41 = vld [vmem:[#allocation23_spill] sm:$0xff] }
 0x409   :  { %2661 = vmatpush.bf16.msra.mxu1 %v8398_v12  ;;  %2687 = vmatpush.bf16.msra.mxu3 %v8399_v49  ;;  %v8409_v12 = vld [vmem:[#allocation25_spill] sm:$0xff]  ;;  %v8410_v49 = vld [vmem:[#allocation20_spill] sm:$0xff] }
 0x40b   :  { %2650 = vmatpush.bf16.msra.mxu0 %v8400_v46  ;;  %2676 = vmatpush.bf16.msra.mxu2 %v8401_v8  ;;  %v8411_v46 = vld [vmem:[#allocation22_spill] sm:$0xff]  ;;  %v8412_v8 = vld [vmem:[#allocation27_spill] sm:$0xff] }
 0x40d   :  { %2662 = vmatpush.bf16.msra.mxu1 %v8402_v47  ;;  %2688 = vmatpush.bf16.msra.mxu3 %v8403_v24  ;;  %v8413_v47 = vld [vmem:[#allocation29_spill] sm:$0xff]  ;;  %v8414_v24 = vld [vmem:[#allocation24_spill] sm:$0xff] }
 0x40f   :  { %2651 = vmatpush.bf16.msra.mxu0 %v8404_v38  ;;  %2677 = vmatpush.bf16.msra.mxu2 %v8405_v31  ;;  %v8415_v38 = vld [vmem:[#allocation26_spill] sm:$0xff]  ;;  %v8416_v31 = vld [vmem:[#allocation31_spill] sm:$0xff] }
 0x411   :  { %2663 = vmatpush.bf16.msra.mxu1 %v8406_v36  ;;  %2689 = vmatpush.bf16.msra.mxu3 %v8407_v33  ;;  %v8417_v36 = vld [vmem:[#allocation33_spill] sm:$0xff]  ;;  %v8418_v33 = vld [vmem:[#allocation35_spill] sm:$0xff] }
 0x413   :  { %2652 = vmatpush.bf16.msra.mxu0 %v8408_v41  ;;  %2678 = vmatpush.bf16.msra.mxu2 %v8409_v12  ;;  %v8419_v41 = vld [vmem:[#allocation37_spill] sm:$0xff]  ;;  %v8420_v12 = vld [vmem:[#allocation28_spill] sm:$0xff] }
 0x415   :  { %2664 = vmatpush.bf16.msra.mxu1 %v8410_v49  ;;  %2690 = vmatpush.bf16.msra.mxu3 %v8411_v46  ;;  %v8421_v49 = vld [vmem:[#allocation30_spill] sm:$0xff]  ;;  %v8422_v46 = vld [vmem:[#allocation39_spill] sm:$0xff] }
 0x417   :  { %2653 = vmatpush.bf16.msra.mxu0 %v8412_v8  ;;  %2679 = vmatpush.bf16.msra.mxu2 %v8413_v47  ;;  %v8423_v8 = vld [vmem:[#allocation41_spill] sm:$0xff]  ;;  %v8424_v47 = vld [vmem:[#allocation32_spill] sm:$0xff] }
 0x419   :  { %2665 = vmatpush.bf16.msra.mxu1 %v8414_v24  ;;  %2691 = vmatpush.bf16.msra.mxu3 %v8415_v38  ;;  %v8425_v24 = vld [vmem:[#allocation34_spill] sm:$0xff]  ;;  %v8426_v38 = vld [vmem:[#allocation36_spill] sm:$0xff] }
 0x41b   :  { %2654 = vmatpush.bf16.msra.mxu0 %v8416_v31  ;;  %2680 = vmatpush.bf16.msra.mxu2 %v8417_v36  ;;  %v8427_v31 = vld [vmem:[#allocation38_spill] sm:$0xff]  ;;  %v8428_v36 = vld [vmem:[#allocation43_spill] sm:$0xff] }
 0x41d   :  { %2666 = vmatpush.bf16.msra.mxu1 %v8420_v12  ;;  %2692 = vmatpush.bf16.msra.mxu3 %v8421_v49  ;;  %v8431_v12 = vld [vmem:[#allocation42_spill] sm:$0xff]  ;;  %v8432_v49 = vld [vmem:[#allocation47_spill] sm:$0xff] }
 0x41f   :  { %2699 = vmatpush.bf16.msrb.mxu0 %v8418_v33  ;;  %2725 = vmatpush.bf16.msrb.mxu2 %v8419_v41  ;;  %v8429_v33 = vld [vmem:[#allocation45_spill] sm:$0xff]  ;;  %v8430_v41 = vld [vmem:[#allocation40_spill] sm:$0xff] }
 0x421   :  { %2667 = vmatpush.bf16.msra.mxu1 %v8424_v47  ;;  %2693 = vmatpush.bf16.msra.mxu3 %v8425_v24  ;;  %v8435_v47 = vld [vmem:[#allocation46_spill] sm:$0xff]  ;;  %v8436_v24 = vld [vmem:[#allocation51_spill] sm:$0xff] }
 0x423   :  { %2700 = vmatpush.bf16.msrb.mxu0 %v8422_v46  ;;  %2726 = vmatpush.bf16.msrb.mxu2 %v8423_v8  ;;  %v8433_v46 = vld [vmem:[#allocation49_spill] sm:$0xff]  ;;  %v8434_v8 = vld [vmem:[#allocation44_spill] sm:$0xff] }
 0x425   :  { %2712 = vmatpush.bf16.msrb.mxu1 %v8426_v38  ;;  %2738 = vmatpush.bf16.msrb.mxu3 %v8427_v31  ;;  %v8437_v38 = vld [vmem:[#allocation53_spill] sm:$0xff]  ;;  %v8438_v31 = vld [vmem:[#allocation48_spill] sm:$0xff] }
 0x427   :  { %2701 = vmatpush.bf16.msrb.mxu0 %v8428_v36  ;;  %2727 = vmatpush.bf16.msrb.mxu2 %v8429_v33  ;;  %v8439_v36 = vld [vmem:[#allocation50_spill] sm:$0xff]  ;;  %v8440_v33 = vld [vmem:[#allocation55_spill] sm:$0xff] }
 0x429   :  { %2713 = vmatpush.bf16.msrb.mxu1 %v8430_v41  ;;  %2739 = vmatpush.bf16.msrb.mxu3 %v8431_v12  ;;  %v8441_v41 = vld [vmem:[#allocation57_spill] sm:$0xff]  ;;  %v8442_v12 = vld [vmem:[#allocation52_spill] sm:$0xff] }
 0x42b   :  { %2702 = vmatpush.bf16.msrb.mxu0 %v8432_v49  ;;  %2728 = vmatpush.bf16.msrb.mxu2 %v8433_v46  ;;  %v8443_v49 = vld [vmem:[#allocation54_spill] sm:$0xff]  ;;  %v8444_v46 = vld [vmem:[#allocation59_spill] sm:$0xff] }
 0x42d   :  { %2714 = vmatpush.bf16.msrb.mxu1 %v8434_v8  ;;  %2740 = vmatpush.bf16.msrb.mxu3 %v8435_v47  ;;  %v8445_v8 = vld [vmem:[#allocation61_spill] sm:$0xff]  ;;  %v8446_v47 = vld [vmem:[#allocation56_spill] sm:$0xff] }
 0x42f   :  { %2703 = vmatpush.bf16.msrb.mxu0 %v8436_v24  ;;  %2729 = vmatpush.bf16.msrb.mxu2 %v8437_v38  ;;  %v8447_v24 = vld [vmem:[#allocation58_spill] sm:$0xff]  ;;  %v8448_v38 = vld [vmem:[#allocation63_spill] sm:$0xff] }
 0x431   :  { %2715 = vmatpush.bf16.msrb.mxu1 %v8438_v31  ;;  %2741 = vmatpush.bf16.msrb.mxu3 %v8439_v36  ;;  %v8449_v31 = vld [vmem:[#allocation65_spill] sm:$0xff]  ;;  %v8450_v36 = vld [vmem:[#allocation60_spill] sm:$0xff] }
 0x433   :  { %2704 = vmatpush.bf16.msrb.mxu0 %v8440_v33  ;;  %2730 = vmatpush.bf16.msrb.mxu2 %v8441_v41  ;;  %v8451_v33 = vld [vmem:[#allocation62_spill] sm:$0xff]  ;;  %v8452_v41 = vld [vmem:[#allocation64_spill] sm:$0xff] }
 0x435   :  { %2716 = vmatpush.bf16.msrb.mxu1 %v8442_v12  ;;  %2742 = vmatpush.bf16.msrb.mxu3 %v8443_v49  ;;  %v8453_v12 = vld [vmem:[#allocation66_spill] sm:$0xff] }
 0x437   :  { %2705 = vmatpush.bf16.msrb.mxu0 %v8444_v46  ;;  %2731 = vmatpush.bf16.msrb.mxu2 %v8445_v8  ;;  %v4088_v8 = vld [vmem:[%s7604_s1 + $0x48] sm:$0xff] }
 0x438   :  { %2270 = vst [vmem:[#allocation1 + $0x20] ss:$4 sm:$0xff] %v4088_v8  ;;  %v2274_v8 = vld.sshfl [vmem:[#allocation1 + $0x18] sm:$0xff pattern:$0x73625140] }
 0x439   :  { %2717 = vmatpush.bf16.msrb.mxu1 %v8446_v47  ;;  %2743 = vmatpush.bf16.msrb.mxu3 %v8447_v24 }
 0x43b   :  { %2706 = vmatpush.bf16.msrb.mxu0 %v8448_v38  ;;  %2732 = vmatpush.bf16.msrb.mxu2 %v8449_v31  ;;  %v2296_v49 = vpop.f32.mrf.mxu0 }
 0x43d   :  { %2718 = vmatpush.bf16.msrb.mxu1 %v8450_v36  ;;  %2744 = vmatpush.bf16.msrb.mxu3 %v8451_v33  ;;  %v2271_v36 = vld.sshfl [vmem:[#allocation1] sm:$0xff pattern:$0x73625140] }
 0x43e   :  { %v2297_v33 = vadd.f32 %v2296_v49, %v2271_v36 }
 0x43f   :  { %v2275_v49 = vld.sshfl [vmem:[#allocation1 + $0x20] sm:$0xff pattern:$0x73625140] }
 0x441   :  { %2719 = vmatpush.bf16.msrb.mxu1 %v8452_v41  ;;  %2745 = vmatpush.bf16.msrb.mxu3 %v8453_v12  ;;  %v2309_v47 = vpop.f32.mrf.mxu1  ;;  %v2322_v24 = vpop.f32.mrf.mxu2 }
 0x442   :  { %v2310_v41 = vadd.f32 %v2309_v47, %v2297_v33  ;;  %v2323_v54 = vadd.f32 %v2322_v24, %v2272_v21 }
 0x443   :  { %v2298_v46 = vpop.f32.mrf.mxu0 }
 0x444   :  { %v4089_v15 = vmul.f32 -1.442695, %v2310_v41 }
 0x446   :  { %4383 = vpow2.f32 %v4089_v15 }
 0x447   :  { %v2335_v38 = vpop.f32.mrf.mxu3 }
 0x448   :  { %v2336_v59 = vadd.f32 %v2335_v38, %v2323_v54 }
 0x449   :  { %v2311_v29 = vpop.f32.mrf.mxu1  ;;  %v2324_v31 = vpop.f32.mrf.mxu2 }
 0x44a   :  { %v4090_v32 = vmul.f32 -1.442695, %v2336_v59 }
 0x44b   :  { %v2348_v20 = vpop.f32.mrf.mxu0 }
 0x44c   :  { %4385 = vpow2.f32 %v4090_v32  ;;  %v2349_v33 = vadd.f32 %v2348_v20, %v2273_v7  ;;  %v2276_v32 = vld.sshfl [vmem:[#allocation1 + $0x28] sm:$0xff pattern:$0x73625140] }
 0x44f   :  { %v2337_v50 = vpop.f32.mrf.mxu3 }
 0x450   :  { %v4384_v50 = vpop.eup %4383 }
 0x451   :  { %v2361_v12 = vpop.f32.mrf.mxu1  ;;  %v2374_v0 = vpop.f32.mrf.mxu2  ;;  %v6915_v59 = vadd.f32 1.0, %v4384_v50 }
 0x452   :  { %v2375_v29 = vadd.f32 %v2374_v0, %v2274_v8  ;;  %v4386_v24 = vpop.eup %4385  ;;  %v2362_v54 = vadd.f32 %v2361_v12, %v2349_v33 }
 0x453   :  { %v2350_v63 = vpop.f32.mrf.mxu0  ;;  %vm2524_vm4 = vweird.f32 %v6915_v59 }
 0x454   :  { %v4091_v0 = vmul.f32 -1.442695, %v2362_v54 }
 0x457   :  { %v2387_v51 = vpop.f32.mrf.mxu3 }
 0x458   :  { %v2388_v28 = vadd.f32 %v2387_v51, %v2375_v29 }
 0x459   :  { %v2363_v46 = vpop.f32.mrf.mxu1  ;;  %v2376_v58 = vpop.f32.mrf.mxu2 }
 0x45a   :  { %v4092_v47 = vmul.f32 -1.442695, %v2388_v28  ;;  %v6917_v58 = vadd.f32 1.0, %v4386_v24 }
 0x45b   :  { %v2400_v31 = vpop.f32.mrf.mxu0 }
 0x45c   :  { %v2401_v63 = vadd.f32 %v2400_v31, %v2275_v49  ;;  %4387 = vpow2.f32 %v4092_v47  ;;  %vm2539_vm7 = vweird.f32 %v6917_v58  ;;  %v2543_v18 = vand.u32 2147483647, %v6917_v58 }
 0x45d   :  { %4389 = vrcp.f32 %v6915_v59 }
 0x45e   :  { %vm2544_vm12 = vcmp.eq.f32.partialorder %v2543_v18, 8.507059e+37 }
 0x45f   :  { %v2389_v21 = vpop.f32.mrf.mxu3 }
 0x461   :  { %v2426_v38 = vpop.f32.mrf.mxu2  ;;  %v2413_v41 = vpop.f32.mrf.mxu1 }
 0x462   :  { %v2414_v15 = vadd.f32 %v2413_v41, %v2401_v63  ;;  %v2427_v7 = vadd.f32 %v2426_v38, %v2276_v32  ;;  %v4388_v8 = vpop.eup %4387 }
 0x463   :  { %v2402_v36 = vpop.f32.mrf.mxu0  ;;  %v6921_v31 = vpop.eup %4389  ;;  %v6923_v50 = vadd.f32 1.0, %v4388_v8 }
 0x464   :  { %v4093_v51 = vmul.f32 -1.442695, %v2414_v15  ;;  %v2520_v54 = vmul.f32 %v6921_v31, %v6915_v59  ;;  %vm2525_vm5 = vweird.f32 %v6921_v31 }
 0x465   :  { %vm6965_vm8 = vmor %vm2524_vm4, %vm2525_vm5  ;;  %vm2569_vm0 = vweird.f32 %v6923_v50 }
 0x466   :  { %4391 = vpow2.f32 %v4093_v51  ;;  %v2521_v15 = vsub.f32 1.0, %v2520_v54 }
 0x467   :  { %4393 = vrcp.f32 %v6917_v58  ;;  %v2439_v28 = vpop.f32.mrf.mxu3 }
 0x468   :  { %4395 = vpow2.f32 %v4091_v0  ;;  %v2440_v20 = vadd.f32 %v2439_v28, %v2427_v7 }
 0x469   :  { %v2428_v12 = vpop.f32.mrf.mxu2  ;;  %v2415_v46 = vpop.f32.mrf.mxu1 }
 0x46a   :  { %v4094_v29 = vmul.f32 -1.442695, %v2440_v20  ;;  %v2522_v20 = vmul.f32 %v6921_v31, %v2521_v15  ;;  %v2277_v46 = vld.sshfl [vmem:[#allocation1 + $0x30] sm:$0xff pattern:$0x73625140] }
 0x46c   :  { %v4392_v49 = vpop.eup %4391  ;;  %4397 = vpow2.f32 %v4094_v29 }
 0x46d   :  { %v6925_v33 = vpop.eup %4393  ;;  %v6927_v21 = vadd.f32 1.0, %v4392_v49 }
 0x46e   :  { %v4396_v47 = vpop.eup %4395  ;;  %v2535_v63 = vmul.f32 %v6925_v33, %v6917_v58  ;;  %vm2540_vm6 = vweird.f32 %v6925_v33 }
 0x46f   :  { %4399 = vrcp.f32 %v6927_v21  ;;  %v2441_v24 = vpop.f32.mrf.mxu3  ;;  %v6935_v38 = vadd.f32 1.0, %v4396_v47  ;;  %vm6972_vm9 = vmor %vm2539_vm7, %vm2540_vm6  ;;  %vm2584_vm13 = vweird.f32 %v6927_v21 }
 0x470   :  { %4401 = vrcp.f32 %v6923_v50  ;;  %v2536_v32 = vsub.f32 1.0, %v2535_v63  ;;  %v2523_v24 = vadd.f32 %v6921_v31, %v2522_v20  ;;  %v2528_v20 = vand.u32 2147483647, %v6915_v59 }
 0x471   :  { %4403 = vrcp.f32 %v6935_v38  ;;  %vm2554_vm5 = vweird.f32 %v6935_v38 }
 0x472   :  { %v4398_v41 = vpop.eup %4397  ;;  %v2537_v12 = vmul.f32 %v6925_v33, %v2536_v32  ;;  %vm2529_vm10 = vcmp.eq.f32.partialorder %v2528_v20, 8.507059e+37 }
 0x473   :  { %v6944_v7 = vadd.f32 1.0, %v4398_v41  ;;  %v2530_v41 = vand.u32 2147483648, %v6915_v59  ;;  %v2527_v59 = vsel %vm6965_vm8, %v6921_v31, %v2523_v24  ;;  %v2590_v24 = vand.u32 2147483648, %v6927_v21 }
 0x474   :  { %v2538_v15 = vadd.f32 %v6925_v33, %v2537_v12  ;;  %v2278_v12 = vld.sshfl [vmem:[#allocation1 + $0x38] sm:$0xff pattern:$0x73625140] }
 0x475   :  { %v6937_v36 = vpop.eup %4399  ;;  %4405 = vrcp.f32 %v6944_v7 }
 0x476   :  { %v6940_v0 = vpop.eup %4401  ;;  %v2580_v51 = vmul.f32 %v6937_v36, %v6927_v21  ;;  %vm2585_vm11 = vweird.f32 %v6937_v36 }
 0x477   :  { %v2565_v8 = vmul.f32 %v6940_v0, %v6923_v50  ;;  %v6950_v29 = vpop.eup %4403  ;;  %vm2570_vm14 = vweird.f32 %v6940_v0  ;;  %vm6997_vm15 = vmor %vm2584_vm13, %vm2585_vm11 }
 0x478   :  { %v2581_v49 = vsub.f32 1.0, %v2580_v51  ;;  %v2545_v51 = vand.u32 2147483648, %v6917_v58  ;;  %v2542_v58 = vsel %vm6972_vm9, %v6925_v33, %v2538_v15  ;;  %v2588_v15 = vand.u32 2147483647, %v6927_v21  ;;  %vm7010_vm1 = vmor %vm2569_vm0, %vm2570_vm14 }
 0x479   :  { %v2566_v54 = vsub.f32 1.0, %v2565_v8  ;;  %v2573_v21 = vand.u32 2147483647, %v6923_v50  ;;  %vm2555_vm3 = vweird.f32 %v6950_v29  ;;  %vm2599_vm9 = vweird.f32 %v6944_v7 }
 0x47a   :  { %v2582_v3 = vmul.f32 %v6937_v36, %v2581_v49  ;;  %vm2589_vm2 = vcmp.eq.f32.partialorder %v2588_v15, 8.507059e+37  ;;  %vm2556_vm6 = vmor %vm2554_vm5, %vm2555_vm3 }
 0x47b   :  { %v2452_v28 = vpop.f32.mrf.mxu0  ;;  %v6979_v49 = vpop.eup %4405  ;;  %vm2574_vm4 = vcmp.eq.f32.partialorder %v2573_v21, 8.507059e+37 }
 0x47c   :  { %v2453_v47 = vadd.f32 %v2452_v28, %v2277_v46  ;;  %v2550_v28 = vmul.f32 %v6950_v29, %v6935_v38  ;;  %v2583_v31 = vadd.f32 %v6937_v36, %v2582_v3  ;;  %vm2600_vm8 = vweird.f32 %v6979_v49 }
 0x47e   :  { %v2551_v6 = vsub.f32 1.0, %v2550_v28 }
 0x480   :  { %v2552_v3 = vmul.f32 %v6950_v29, %v2551_v6  ;;  %v2587_v6 = vsel %vm6997_vm15, %v6937_v36, %v2583_v31  ;;  %v2558_v31 = vand.u32 2147483647, %v6935_v38 }
 0x481   :  { %v2465_v63 = vpop.f32.mrf.mxu1  ;;  %v2478_v32 = vpop.f32.mrf.mxu2 }
 0x482   :  { %v2466_v46 = vadd.f32 %v2465_v63, %v2453_v47  ;;  %v2531_v47 = vor.u32 1.1754944e-38, %v2530_v41  ;;  %v2546_v63 = vor.u32 1.1754944e-38, %v2545_v51  ;;  %v2479_v17 = vadd.f32 %v2478_v32, %v2278_v12 }
 0x483   :  { %v2454_v10 = vpop.f32.mrf.mxu0  ;;  %v2595_v41 = vmul.f32 %v6979_v49, %v6944_v7  ;;  %v2591_v12 = vor.u32 1.1754944e-38, %v2590_v24  ;;  %vm2559_vm7 = vcmp.eq.f32.partialorder %v2558_v31, 8.507059e+37  ;;  %v8473_v31 = vld [vmem:[#allocation99_spill] sm:$0xff] }
 0x484   :  { %4407 = vtanh.f32 %v2466_v46  ;;  %v2567_v10 = vmul.f32 %v6940_v0, %v2566_v54  ;;  %v2532_v26 = vsel %vm2529_vm10, %v2531_v47, %v2527_v59  ;;  %v2547_v34 = vsel %vm2544_vm12, %v2546_v63, %v2542_v58  ;;  %vm2601_vm10 = vmor %vm2599_vm9, %vm2600_vm8  ;;  %v8466_v47 = vld [vmem:[#allocation92_spill] sm:$0xff] }
 0x485   :  { %v2616_v46 = vmul.f32 %v2547_v34, %v6738_v45  ;;  %v2596_v59 = vsub.f32 1.0, %v2595_v41  ;;  %v2592_v36 = vsel %vm2589_vm2, %v2591_v12, %v2587_v6  ;;  %v8463_v6 = vld [vmem:[#allocation89_spill] sm:$0xff] }
 0x486   :  { %v2568_v54 = vadd.f32 %v6940_v0, %v2567_v10  ;;  %v2560_v10 = vand.u32 2147483648, %v6935_v38  ;;  %v2611_v41 = vmul.f32 %v2592_v36, %v6752_v56  ;;  %v2605_v38 = vand.u32 2147483648, %v6944_v7  ;;  %v8464_v12 = vld [vmem:[#allocation109_spill] sm:$0xff]  ;;  %v8469_v36 = vld [vmem:[#allocation95_spill] sm:$0xff] }
 0x487   :  { %v2491_v8 = vpop.f32.mrf.mxu3  ;;  %v2603_v56 = vand.u32 2147483647, %v6944_v7 }
 0x488   :  { %v2492_v33 = vadd.f32 %v2491_v8, %v2479_v17  ;;  %v2575_v17 = vand.u32 2147483648, %v6923_v50  ;;  %v2572_v45 = vsel %vm7010_vm1, %v6940_v0, %v2568_v54  ;;  %v2597_v0 = vmul.f32 %v6979_v49, %v2596_v59  ;;  %v8465_v59 = vld [vmem:[#allocation110_spill] sm:$0xff] }
 0x489   :  { %v2467_v32 = vpop.f32.mrf.mxu1  ;;  %v2480_v18 = vpop.f32.mrf.mxu2  ;;  %v2561_v54 = vor.u32 1.1754944e-38, %v2560_v10  ;;  %vm2604_vm11 = vcmp.eq.f32.partialorder %v2603_v56, 8.507059e+37  ;;  %v8470_v10 = vld [vmem:[#allocation113_spill] sm:$0xff]  ;;  %v8484_v56 = vld [vmem:[#allocation111_spill] sm:$0xff] }
 0x48a   :  { %v4408_v51 = vpop.eup %4407  ;;  %4409 = vtanh.f32 %v2492_v33  ;;  %v2576_v50 = vor.u32 1.1754944e-38, %v2575_v17  ;;  %v2598_v32 = vadd.f32 %v6979_v49, %v2597_v0  ;;  %v2606_v17 = vor.u32 1.1754944e-38, %v2605_v38  ;;  %v8474_v0 = vld [vmem:[#allocation117_spill] sm:$0xff]  ;;  %v8483_v38 = vld [vmem:[#allocation126_spill] sm:$0xff] }
 0x48b   :  { %v2617_v20 = vmul.f32 %v4408_v51, %v2532_v26  ;;  %v2553_v26 = vadd.f32 %v6950_v29, %v2552_v3 }
 0x48c   :  { %v2577_v24 = vsel %vm2574_vm4, %v2576_v50, %v2572_v45  ;;  %v8467_v45 = vld [vmem:[#allocation93_spill] sm:$0xff]  ;;  %v8468_v50 = vld [vmem:[#allocation94_spill] sm:$0xff] }
 0x48d   :  { %v7014_v58 = vadd.f32 %v2617_v20, %v2616_v46  ;;  %v2557_v33 = vsel %vm2556_vm6, %v6950_v29, %v2553_v26  ;;  %v2602_v29 = vsel %vm2601_vm10, %v6979_v49, %v2598_v32  ;;  %v8462_v49 = vld [vmem:[#allocation88_spill] sm:$0xff]  ;;  %v8480_v32 = vld [vmem:[#allocation107_spill] sm:$0xff] }
 0x48e   :  { %v2562_v51 = vsel %vm2559_vm7, %v2561_v54, %v2557_v33  ;;  %v2607_v20 = vsel %vm2604_vm11, %v2606_v17, %v2602_v29  ;;  %v4095_v26 = vld [vmem:[%s7604_s1 + $0x50] sm:$0xff]  ;;  %v8478_v33 = vld [vmem:[#allocation121_spill] sm:$0xff]  ;;  %v8479_v54 = vld [vmem:[#allocation122_spill] sm:$0xff] }
 0x48f   :  { %4411 = vtanh.f32 %v7014_v58  ;;  %v2493_v63 = vpop.f32.mrf.mxu3  ;;  %2628 = vst [vmem:[#allocation1] ss:$4 sm:$0xff] %v4095_v26  ;;  %v8486_v29 = vld [vmem:[#allocation127_spill] sm:$0xff]  ;;  %v8487_v17 = vld [vmem:[#allocation128_spill] sm:$0xff]  ;;  %v8491_v26 = vld [vmem:[#allocation130_spill] sm:$0xff] }
 0x490   :  { %v4410_v8 = vpop.eup %4409  ;;  %v8471_v63 = vld [vmem:[#allocation114_spill] sm:$0xff] }
 0x491   :  { %v2612_v34 = vmul.f32 %v4410_v8, %v2577_v24  ;;  %v8472_v8 = vld [vmem:[#allocation98_spill] sm:$0xff] }
 0x492   :  { %v8475_v24 = vld [vmem:[#allocation118_spill] sm:$0xff] }
 0x493   :  { %v7028_v15 = vadd.f32 %v2612_v34, %v2611_v41  ;;  %v8476_v41 = vld [vmem:[#allocation101_spill] sm:$0xff]  ;;  %v8477_v34 = vld [vmem:[#allocation102_spill] sm:$0xff] }
 0x495   :  { %v4412_v18 = vpop.eup %4411  ;;  %4413 = vtanh.f32 %v7028_v15 }
 0x496   :  { %v2620_v3 = vmul.f32 %v4412_v18, %v2562_v51  ;;  %v8481_v18 = vld [vmem:[#allocation108_spill] sm:$0xff]  ;;  %v8482_v51 = vld [vmem:[#allocation125_spill] sm:$0xff] }
 0x498   :  { %v7037_v28 = vpack.c.bf16 %v2620_v3, %v2620_v3  ;;  %v8485_v3 = vld [vmem:[#allocation112_spill] sm:$0xff] }
 0x49a   :  { %2655 = vmatmul.bf16.vlgmr.msra.gmra.mxu0 %v7037_v28  ;;  %2681 = vmatmul.bf16.vlgmr.msra.gmra.mxu2 %v7037_v28 }
 0x49b   :  { %v4414_v46 = vpop.eup %4413  ;;  %2751 = vmatpush.bf16.msra.mxu0 %v8040_v22  ;;  %2777 = vmatpush.bf16.msra.mxu2 %v8041_v1 }
 0x49c   :  { %v2615_v21 = vmul.f32 %v4414_v46, %v2607_v20  ;;  %v8488_v46 = vld [vmem:[#allocation115_spill] sm:$0xff]  ;;  %v8489_v20 = vld [vmem:[#allocation116_spill] sm:$0xff] }
 0x49e   :  { %v7043_v7 = vpack.c.bf16 %v2615_v21, %v2615_v21  ;;  %v8490_v21 = vld [vmem:[#allocation129_spill] sm:$0xff] }
 0x49f   :  { %2752 = vmatpush.bf16.msra.mxu0 %v8042_v2  ;;  %2778 = vmatpush.bf16.msra.mxu2 %v8043_v39 }
 0x4a0   :  { %2668 = vmatmul.bf16.vlgmr.msra.gmra.mxu1 %v7043_v7  ;;  %2694 = vmatmul.bf16.vlgmr.msra.gmra.mxu3 %v7043_v7 }
 0x4a1   :  { %2764 = vmatpush.bf16.msra.mxu1 %v8044_v52  ;;  %2790 = vmatpush.bf16.msra.mxu3 %v8045_v9 }
 0x4a3   :  { %2753 = vmatpush.bf16.msra.mxu0 %v8046_v61  ;;  %2779 = vmatpush.bf16.msra.mxu2 %v8047_v13 }
 0x4a5   :  { %2765 = vmatpush.bf16.msra.mxu1 %v8048_v57  ;;  %2791 = vmatpush.bf16.msra.mxu3 %v8049_v62 }
 0x4a7   :  { %2754 = vmatpush.bf16.msra.mxu0 %v8050_v30  ;;  %2780 = vmatpush.bf16.msra.mxu2 %v8051_v14 }
 0x4a9   :  { %2766 = vmatpush.bf16.msra.mxu1 %v8052_v48  ;;  %2792 = vmatpush.bf16.msra.mxu3 %v8053_v43 }
 0x4aa   :  { %2707 = vmatmul.bf16.vlgmr.msrb.gmra.mxu0 %v7037_v28  ;;  %2733 = vmatmul.bf16.vlgmr.msrb.gmra.mxu2 %v7037_v28 }
 0x4ab   :  { %2755 = vmatpush.bf16.msra.mxu0 %v8054_v55  ;;  %2781 = vmatpush.bf16.msra.mxu2 %v8055_v27 }
 0x4ad   :  { %2767 = vmatpush.bf16.msra.mxu1 %v8056_v5  ;;  %2793 = vmatpush.bf16.msra.mxu3 %v8057_v42 }
 0x4af   :  { %2756 = vmatpush.bf16.msra.mxu0 %v8058_v11  ;;  %2782 = vmatpush.bf16.msra.mxu2 %v8059_v23 }
 0x4b0   :  { %2720 = vmatmul.bf16.vlgmr.msrb.gmra.mxu1 %v7043_v7  ;;  %2746 = vmatmul.bf16.vlgmr.msrb.gmra.mxu3 %v7043_v7 }
 0x4b1   :  { %2768 = vmatpush.bf16.msra.mxu1 %v8060_v35  ;;  %2794 = vmatpush.bf16.msra.mxu3 %v8061_v37 }
 0x4b3   :  { %2757 = vmatpush.bf16.msra.mxu0 %v5448_v40  ;;  %2783 = vmatpush.bf16.msra.mxu2 %v8062_v60 }
 0x4b5   :  { %2769 = vmatpush.bf16.msra.mxu1 %v8144_v25  ;;  %2795 = vmatpush.bf16.msra.mxu3 %v8145_v19 }
 0x4b7   :  { %2758 = vmatpush.bf16.msra.mxu0 %v8146_v4  ;;  %2784 = vmatpush.bf16.msra.mxu2 %v8147_v16 }
 0x4b9   :  { %2770 = vmatpush.bf16.msra.mxu1 %v8462_v49  ;;  %2796 = vmatpush.bf16.msra.mxu3 %v8463_v6 }
 0x4ba   :  { %2759 = vmatmul.bf16.vlgmr.msra.gmra.mxu0 %v7037_v28  ;;  %2785 = vmatmul.bf16.vlgmr.msra.gmra.mxu2 %v7037_v28 }
 0x4bb   :  { %2803 = vmatpush.bf16.msrb.mxu0 %v8148_v44  ;;  %2829 = vmatpush.bf16.msrb.mxu2 %v8149_v53 }
 0x4bd   :  { %2771 = vmatpush.bf16.msra.mxu1 %v8466_v47  ;;  %2797 = vmatpush.bf16.msra.mxu3 %v8467_v45 }
 0x4bf   :  { %2804 = vmatpush.bf16.msrb.mxu0 %v8464_v12  ;;  %2830 = vmatpush.bf16.msrb.mxu2 %v8465_v59 }
 0x4c0   :  { %2772 = vmatmul.bf16.vlgmr.msra.gmra.mxu1 %v7043_v7  ;;  %2798 = vmatmul.bf16.vlgmr.msra.gmra.mxu3 %v7043_v7 }
 0x4c1   :  { %2816 = vmatpush.bf16.msrb.mxu1 %v8468_v50  ;;  %2842 = vmatpush.bf16.msrb.mxu3 %v8469_v36 }
 0x4c3   :  { %2805 = vmatpush.bf16.msrb.mxu0 %v8470_v10  ;;  %2831 = vmatpush.bf16.msrb.mxu2 %v8471_v63  ;;  %v2633_v10 = vld.sshfl [vmem:[#allocation1 + $0x10] sm:$0xff pattern:$0x73625140] }
 0x4c5   :  { %2817 = vmatpush.bf16.msrb.mxu1 %v8472_v8  ;;  %2843 = vmatpush.bf16.msrb.mxu3 %v8473_v31 }
 0x4c7   :  { %2806 = vmatpush.bf16.msrb.mxu0 %v8474_v0  ;;  %2832 = vmatpush.bf16.msrb.mxu2 %v8475_v24 }
 0x4c9   :  { %2818 = vmatpush.bf16.msrb.mxu1 %v8476_v41  ;;  %2844 = vmatpush.bf16.msrb.mxu3 %v8477_v34 }
 0x4cb   :  { %2807 = vmatpush.bf16.msrb.mxu0 %v8478_v33  ;;  %2833 = vmatpush.bf16.msrb.mxu2 %v8479_v54 }
 0x4cd   :  { %2819 = vmatpush.bf16.msrb.mxu1 %v8480_v32  ;;  %2845 = vmatpush.bf16.msrb.mxu3 %v8481_v18  ;;  %v8492_v18 = vld [vmem:[#allocation3_spill] sm:$0xff] }
 0x4ce   :  { %v2632_v32 = vld.sshfl [vmem:[#allocation1 + $0x8] sm:$0xff pattern:$0x73625140] }
 0x4cf   :  { %2808 = vmatpush.bf16.msrb.mxu0 %v8482_v51  ;;  %2834 = vmatpush.bf16.msrb.mxu2 %v8483_v38  ;;  %v8493_v51 = vld [vmem:[#allocation5_spill] sm:$0xff]  ;;  %v8494_v38 = vld [vmem:[#allocation119_spill] sm:$0xff] }
 0x4d1   :  { %2820 = vmatpush.bf16.msrb.mxu1 %v8484_v56  ;;  %2846 = vmatpush.bf16.msrb.mxu3 %v8485_v3  ;;  %v8495_v56 = vld [vmem:[#allocation120_spill] sm:$0xff] }
 0x4d3   :  { %2809 = vmatpush.bf16.msrb.mxu0 %v8486_v29  ;;  %2835 = vmatpush.bf16.msrb.mxu2 %v8487_v17  ;;  %v8496_v17 = vld [vmem:[#allocation7_spill] sm:$0xff] }
 0x4d5   :  { %2821 = vmatpush.bf16.msrb.mxu1 %v8488_v46  ;;  %2847 = vmatpush.bf16.msrb.mxu3 %v8489_v20  ;;  %v8497_v46 = vld [vmem:[#allocation9_spill] sm:$0xff]  ;;  %v8498_v20 = vld [vmem:[#allocation123_spill] sm:$0xff] }
 0x4d7   :  { %2810 = vmatpush.bf16.msrb.mxu0 %v8490_v21  ;;  %2836 = vmatpush.bf16.msrb.mxu2 %v8491_v26  ;;  %v8499_v21 = vld [vmem:[#allocation124_spill] sm:$0xff] }
 0x4d8   :  { %v8500_v26 = vld [vmem:[#allocation4_spill] sm:$0xff] }
 0x4d9   :  { %2822 = vmatpush.bf16.msrb.mxu1 %v8494_v38  ;;  %2848 = vmatpush.bf16.msrb.mxu3 %v8495_v56  ;;  %v8503_v56 = vld [vmem:[#allocation13_spill] sm:$0xff] }
 0x4da   :  { %2811 = vmatmul.bf16.vlgmr.msrb.gmra.mxu0 %v7037_v28  ;;  %2837 = vmatmul.bf16.vlgmr.msrb.gmra.mxu2 %v7037_v28  ;;  %v8504_v28 = vld [vmem:[#allocation8_spill] sm:$0xff]  ;;  %v8511_v38 = vld [vmem:[#allocation21_spill] sm:$0xff] }
 0x4db   :  { %3007 = vmatpush.bf16.msra.mxu0 %v8492_v18  ;;  %3033 = vmatpush.bf16.msra.mxu2 %v8493_v51  ;;  %v8501_v18 = vld [vmem:[#allocation6_spill] sm:$0xff]  ;;  %v8502_v51 = vld [vmem:[#allocation11_spill] sm:$0xff] }
 0x4dd   :  { %2823 = vmatpush.bf16.msrb.mxu1 %v8498_v20  ;;  %2849 = vmatpush.bf16.msrb.mxu3 %v8499_v21  ;;  %v8507_v20 = vld [vmem:[#allocation17_spill] sm:$0xff]  ;;  %v8508_v21 = vld [vmem:[#allocation12_spill] sm:$0xff] }
 0x4df   :  { %3008 = vmatpush.bf16.msra.mxu0 %v8496_v17  ;;  %3034 = vmatpush.bf16.msra.mxu2 %v8497_v46  ;;  %v8505_v17 = vld [vmem:[#allocation10_spill] sm:$0xff]  ;;  %v8506_v46 = vld [vmem:[#allocation15_spill] sm:$0xff] }
 0x4e0   :  { %2824 = vmatmul.bf16.vlgmr.msrb.gmra.mxu1 %v7043_v7  ;;  %2850 = vmatmul.bf16.vlgmr.msrb.gmra.mxu3 %v7043_v7  ;;  %v8512_v7 = vld [vmem:[#allocation16_spill] sm:$0xff] }
 0x4e1   :  { %3020 = vmatpush.bf16.msra.mxu1 %v8500_v26  ;;  %3046 = vmatpush.bf16.msra.mxu3 %v8501_v18  ;;  %v8509_v26 = vld [vmem:[#allocation14_spill] sm:$0xff]  ;;  %v8510_v18 = vld [vmem:[#allocation19_spill] sm:$0xff] }
 0x4e3   :  { %3009 = vmatpush.bf16.msra.mxu0 %v8502_v51  ;;  %3035 = vmatpush.bf16.msra.mxu2 %v8503_v56  ;;  %v8513_v51 = vld [vmem:[#allocation18_spill] sm:$0xff]  ;;  %v8514_v56 = vld [vmem:[#allocation23_spill] sm:$0xff] }
 0x4e5   :  { %3021 = vmatpush.bf16.msra.mxu1 %v8504_v28  ;;  %3047 = vmatpush.bf16.msra.mxu3 %v8505_v17  ;;  %v8515_v28 = vld [vmem:[#allocation25_spill] sm:$0xff]  ;;  %v8516_v17 = vld [vmem:[#allocation20_spill] sm:$0xff] }
 0x4e7   :  { %3010 = vmatpush.bf16.msra.mxu0 %v8506_v46  ;;  %3036 = vmatpush.bf16.msra.mxu2 %v8507_v20  ;;  %v8517_v46 = vld [vmem:[#allocation22_spill] sm:$0xff]  ;;  %v8518_v20 = vld [vmem:[#allocation27_spill] sm:$0xff] }
 0x4e9   :  { %3022 = vmatpush.bf16.msra.mxu1 %v8508_v21  ;;  %3048 = vmatpush.bf16.msra.mxu3 %v8509_v26  ;;  %v8519_v21 = vld [vmem:[#allocation29_spill] sm:$0xff]  ;;  %v8520_v26 = vld [vmem:[#allocation24_spill] sm:$0xff] }
 0x4eb   :  { %3011 = vmatpush.bf16.msra.mxu0 %v8510_v18  ;;  %3037 = vmatpush.bf16.msra.mxu2 %v8511_v38  ;;  %v8521_v18 = vld [vmem:[#allocation26_spill] sm:$0xff]  ;;  %v8522_v38 = vld [vmem:[#allocation31_spill] sm:$0xff] }
 0x4ed   :  { %3023 = vmatpush.bf16.msra.mxu1 %v8512_v7  ;;  %3049 = vmatpush.bf16.msra.mxu3 %v8513_v51  ;;  %v8523_v7 = vld [vmem:[#allocation33_spill] sm:$0xff]  ;;  %v8524_v51 = vld [vmem:[#allocation35_spill] sm:$0xff] }
 0x4ef   :  { %3012 = vmatpush.bf16.msra.mxu0 %v8514_v56  ;;  %3038 = vmatpush.bf16.msra.mxu2 %v8515_v28  ;;  %v8525_v56 = vld [vmem:[#allocation37_spill] sm:$0xff]  ;;  %v8526_v28 = vld [vmem:[#allocation28_spill] sm:$0xff] }
 0x4f1   :  { %3024 = vmatpush.bf16.msra.mxu1 %v8516_v17  ;;  %3050 = vmatpush.bf16.msra.mxu3 %v8517_v46  ;;  %v8527_v17 = vld [vmem:[#allocation30_spill] sm:$0xff]  ;;  %v8528_v46 = vld [vmem:[#allocation39_spill] sm:$0xff] }
 0x4f3   :  { %3013 = vmatpush.bf16.msra.mxu0 %v8518_v20  ;;  %3039 = vmatpush.bf16.msra.mxu2 %v8519_v21  ;;  %v8529_v20 = vld [vmem:[#allocation41_spill] sm:$0xff]  ;;  %v8530_v21 = vld [vmem:[#allocation32_spill] sm:$0xff] }
 0x4f5   :  { %3025 = vmatpush.bf16.msra.mxu1 %v8520_v26  ;;  %3051 = vmatpush.bf16.msra.mxu3 %v8521_v18  ;;  %v8531_v26 = vld [vmem:[#allocation34_spill] sm:$0xff]  ;;  %v8532_v18 = vld [vmem:[#allocation36_spill] sm:$0xff] }
 0x4f7   :  { %3014 = vmatpush.bf16.msra.mxu0 %v8522_v38  ;;  %3040 = vmatpush.bf16.msra.mxu2 %v8523_v7  ;;  %v8533_v38 = vld [vmem:[#allocation38_spill] sm:$0xff]  ;;  %v8534_v7 = vld [vmem:[#allocation43_spill] sm:$0xff] }
 0x4f9   :  { %3026 = vmatpush.bf16.msra.mxu1 %v8526_v28  ;;  %3052 = vmatpush.bf16.msra.mxu3 %v8527_v17  ;;  %v8537_v28 = vld [vmem:[#allocation42_spill] sm:$0xff]  ;;  %v8538_v17 = vld [vmem:[#allocation47_spill] sm:$0xff] }
 0x4fb   :  { %3059 = vmatpush.bf16.msrb.mxu0 %v8524_v51  ;;  %3085 = vmatpush.bf16.msrb.mxu2 %v8525_v56  ;;  %v8535_v51 = vld [vmem:[#allocation45_spill] sm:$0xff]  ;;  %v8536_v56 = vld [vmem:[#allocation40_spill] sm:$0xff] }
 0x4fd   :  { %3027 = vmatpush.bf16.msra.mxu1 %v8530_v21  ;;  %3053 = vmatpush.bf16.msra.mxu3 %v8531_v26  ;;  %v8541_v21 = vld [vmem:[#allocation46_spill] sm:$0xff]  ;;  %v8542_v26 = vld [vmem:[#allocation51_spill] sm:$0xff] }
 0x4ff   :  { %3060 = vmatpush.bf16.msrb.mxu0 %v8528_v46  ;;  %3086 = vmatpush.bf16.msrb.mxu2 %v8529_v20  ;;  %v8539_v46 = vld [vmem:[#allocation49_spill] sm:$0xff]  ;;  %v8540_v20 = vld [vmem:[#allocation44_spill] sm:$0xff] }
 0x501   :  { %3072 = vmatpush.bf16.msrb.mxu1 %v8532_v18  ;;  %3098 = vmatpush.bf16.msrb.mxu3 %v8533_v38  ;;  %v8543_v18 = vld [vmem:[#allocation53_spill] sm:$0xff]  ;;  %v8544_v38 = vld [vmem:[#allocation48_spill] sm:$0xff] }
 0x503   :  { %3061 = vmatpush.bf16.msrb.mxu0 %v8534_v7  ;;  %3087 = vmatpush.bf16.msrb.mxu2 %v8535_v51  ;;  %v8545_v7 = vld [vmem:[#allocation50_spill] sm:$0xff]  ;;  %v8546_v51 = vld [vmem:[#allocation55_spill] sm:$0xff] }
 0x505   :  { %3073 = vmatpush.bf16.msrb.mxu1 %v8536_v56  ;;  %3099 = vmatpush.bf16.msrb.mxu3 %v8537_v28  ;;  %v8547_v56 = vld [vmem:[#allocation57_spill] sm:$0xff]  ;;  %v8548_v28 = vld [vmem:[#allocation52_spill] sm:$0xff] }
 0x507   :  { %3062 = vmatpush.bf16.msrb.mxu0 %v8538_v17  ;;  %3088 = vmatpush.bf16.msrb.mxu2 %v8539_v46  ;;  %v8549_v17 = vld [vmem:[#allocation54_spill] sm:$0xff]  ;;  %v8550_v46 = vld [vmem:[#allocation59_spill] sm:$0xff] }
 0x509   :  { %3074 = vmatpush.bf16.msrb.mxu1 %v8540_v20  ;;  %3100 = vmatpush.bf16.msrb.mxu3 %v8541_v21  ;;  %v8551_v20 = vld [vmem:[#allocation61_spill] sm:$0xff]  ;;  %v8552_v21 = vld [vmem:[#allocation56_spill] sm:$0xff] }
 0x50b   :  { %3063 = vmatpush.bf16.msrb.mxu0 %v8542_v26  ;;  %3089 = vmatpush.bf16.msrb.mxu2 %v8543_v18  ;;  %v8553_v26 = vld [vmem:[#allocation58_spill] sm:$0xff]  ;;  %v8554_v18 = vld [vmem:[#allocation63_spill] sm:$0xff] }
 0x50d   :  { %3075 = vmatpush.bf16.msrb.mxu1 %v8544_v38  ;;  %3101 = vmatpush.bf16.msrb.mxu3 %v8545_v7  ;;  %v8555_v38 = vld [vmem:[#allocation65_spill] sm:$0xff]  ;;  %v8556_v7 = vld [vmem:[#allocation60_spill] sm:$0xff] }
 0x50f   :  { %3064 = vmatpush.bf16.msrb.mxu0 %v8546_v51  ;;  %3090 = vmatpush.bf16.msrb.mxu2 %v8547_v56  ;;  %v8557_v51 = vld [vmem:[#allocation62_spill] sm:$0xff]  ;;  %v8558_v56 = vld [vmem:[#allocation64_spill] sm:$0xff] }
 0x511   :  { %3076 = vmatpush.bf16.msrb.mxu1 %v8548_v28  ;;  %3102 = vmatpush.bf16.msrb.mxu3 %v8549_v17  ;;  %v8559_v28 = vld [vmem:[#allocation66_spill] sm:$0xff] }
 0x513   :  { %3065 = vmatpush.bf16.msrb.mxu0 %v8550_v46  ;;  %3091 = vmatpush.bf16.msrb.mxu2 %v8551_v20  ;;  %v4096_v46 = vld [vmem:[%s7604_s1 + $0x58] sm:$0xff] }
 0x514   :  { %2630 = vst [vmem:[#allocation1 + $0x20] ss:$4 sm:$0xff] %v4096_v46  ;;  %v2634_v46 = vld.sshfl [vmem:[#allocation1 + $0x18] sm:$0xff pattern:$0x73625140] }
 0x515   :  { %3077 = vmatpush.bf16.msrb.mxu1 %v8552_v21  ;;  %3103 = vmatpush.bf16.msrb.mxu3 %v8553_v26 }
 0x517   :  { %3066 = vmatpush.bf16.msrb.mxu0 %v8554_v18  ;;  %3092 = vmatpush.bf16.msrb.mxu2 %v8555_v38  ;;  %v2656_v17 = vpop.f32.mrf.mxu0 }
 0x519   :  { %3078 = vmatpush.bf16.msrb.mxu1 %v8556_v7  ;;  %3104 = vmatpush.bf16.msrb.mxu3 %v8557_v51  ;;  %v2631_v7 = vld.sshfl [vmem:[#allocation1] sm:$0xff pattern:$0x73625140] }
 0x51a   :  { %v2657_v51 = vadd.f32 %v2656_v17, %v2631_v7 }
 0x51b   :  { %v2635_v17 = vld.sshfl [vmem:[#allocation1 + $0x20] sm:$0xff pattern:$0x73625140] }
 0x51d   :  { %3079 = vmatpush.bf16.msrb.mxu1 %v8558_v56  ;;  %3105 = vmatpush.bf16.msrb.mxu3 %v8559_v28  ;;  %v2669_v21 = vpop.f32.mrf.mxu1  ;;  %v2682_v26 = vpop.f32.mrf.mxu2 }
 0x51e   :  { %v2670_v56 = vadd.f32 %v2669_v21, %v2657_v51  ;;  %v2683_v33 = vadd.f32 %v2682_v26, %v2632_v32 }
 0x51f   :  { %v2658_v20 = vpop.f32.mrf.mxu0 }
 0x520   :  { %v4097_v0 = vmul.f32 -1.442695, %v2670_v56 }
 0x522   :  { %4415 = vpow2.f32 %v4097_v0 }
 0x523   :  { %v2695_v18 = vpop.f32.mrf.mxu3 }
 0x524   :  { %v2696_v41 = vadd.f32 %v2695_v18, %v2683_v33 }
 0x525   :  { %v2671_v29 = vpop.f32.mrf.mxu1  ;;  %v2684_v38 = vpop.f32.mrf.mxu2 }
 0x526   :  { %v4098_v31 = vmul.f32 -1.442695, %v2696_v41 }
 0x527   :  { %v2708_v3 = vpop.f32.mrf.mxu0 }
 0x528   :  { %4417 = vpow2.f32 %v4098_v31  ;;  %v2709_v51 = vadd.f32 %v2708_v3, %v2633_v10  ;;  %v2636_v31 = vld.sshfl [vmem:[#allocation1 + $0x28] sm:$0xff pattern:$0x73625140] }
 0x52b   :  { %v2697_v54 = vpop.f32.mrf.mxu3 }
 0x52c   :  { %v4416_v54 = vpop.eup %4415 }
 0x52d   :  { %v2721_v28 = vpop.f32.mrf.mxu1  ;;  %v2734_v34 = vpop.f32.mrf.mxu2  ;;  %v7191_v41 = vadd.f32 1.0, %v4416_v54 }
 0x52e   :  { %v2735_v29 = vadd.f32 %v2734_v34, %v2634_v46  ;;  %v4418_v21 = vpop.eup %4417  ;;  %v2722_v33 = vadd.f32 %v2721_v28, %v2709_v51 }
 0x52f   :  { %v2710_v24 = vpop.f32.mrf.mxu0  ;;  %vm2884_vm12 = vweird.f32 %v7191_v41 }
 0x530   :  { %v4099_v34 = vmul.f32 -1.442695, %v2722_v33 }
 0x533   :  { %v2747_v8 = vpop.f32.mrf.mxu3 }
 0x534   :  { %v2748_v36 = vadd.f32 %v2747_v8, %v2735_v29 }
 0x535   :  { %v2723_v20 = vpop.f32.mrf.mxu1  ;;  %v2736_v63 = vpop.f32.mrf.mxu2 }
 0x536   :  { %v4100_v26 = vmul.f32 -1.442695, %v2748_v36  ;;  %v7193_v63 = vadd.f32 1.0, %v4418_v21 }
 0x537   :  { %v2760_v38 = vpop.f32.mrf.mxu0 }
 0x538   :  { %v2761_v24 = vadd.f32 %v2760_v38, %v2635_v17  ;;  %4419 = vpow2.f32 %v4100_v26  ;;  %vm2899_vm15 = vweird.f32 %v7193_v63  ;;  %v2903_v45 = vand.u32 2147483647, %v7193_v63 }
 0x539   :  { %4421 = vrcp.f32 %v7191_v41 }
 0x53a   :  { %vm2904_vm4 = vcmp.eq.f32.partialorder %v2903_v45, 8.507059e+37 }
 0x53b   :  { %v2749_v32 = vpop.f32.mrf.mxu3 }
 0x53d   :  { %v2786_v18 = vpop.f32.mrf.mxu2  ;;  %v2773_v7 = vpop.f32.mrf.mxu1 }
 0x53e   :  { %v2774_v0 = vadd.f32 %v2773_v7, %v2761_v24  ;;  %v2787_v10 = vadd.f32 %v2786_v18, %v2636_v31  ;;  %v4420_v46 = vpop.eup %4419 }
 0x53f   :  { %v2762_v56 = vpop.f32.mrf.mxu0  ;;  %v7197_v38 = vpop.eup %4421  ;;  %v7199_v54 = vadd.f32 1.0, %v4420_v46 }
 0x540   :  { %v4101_v8 = vmul.f32 -1.442695, %v2774_v0  ;;  %v2880_v33 = vmul.f32 %v7197_v38, %v7191_v41  ;;  %vm2885_vm13 = vweird.f32 %v7197_v38 }
 0x541   :  { %vm7241_vm0 = vmor %vm2884_vm12, %vm2885_vm13  ;;  %vm2929_vm8 = vweird.f32 %v7199_v54 }
 0x542   :  { %4423 = vpow2.f32 %v4101_v8  ;;  %v2881_v0 = vsub.f32 1.0, %v2880_v33 }
 0x543   :  { %4425 = vrcp.f32 %v7193_v63  ;;  %v2799_v36 = vpop.f32.mrf.mxu3 }
 0x544   :  { %4427 = vpow2.f32 %v4099_v34  ;;  %v2800_v3 = vadd.f32 %v2799_v36, %v2787_v10 }
 0x545   :  { %v2788_v28 = vpop.f32.mrf.mxu2  ;;  %v2775_v20 = vpop.f32.mrf.mxu1 }
 0x546   :  { %v4102_v29 = vmul.f32 -1.442695, %v2800_v3  ;;  %v2882_v3 = vmul.f32 %v7197_v38, %v2881_v0  ;;  %v2637_v20 = vld.sshfl [vmem:[#allocation1 + $0x30] sm:$0xff pattern:$0x73625140] }
 0x548   :  { %v4424_v17 = vpop.eup %4423  ;;  %4429 = vpow2.f32 %v4102_v29 }
 0x549   :  { %v7201_v51 = vpop.eup %4425  ;;  %v7203_v32 = vadd.f32 1.0, %v4424_v17 }
 0x54a   :  { %v4428_v26 = vpop.eup %4427  ;;  %v2895_v24 = vmul.f32 %v7201_v51, %v7193_v63  ;;  %vm2900_vm14 = vweird.f32 %v7201_v51 }
 0x54b   :  { %4431 = vrcp.f32 %v7203_v32  ;;  %v2801_v21 = vpop.f32.mrf.mxu3  ;;  %v7211_v18 = vadd.f32 1.0, %v4428_v26  ;;  %vm7248_vm1 = vmor %vm2899_vm15, %vm2900_vm14  ;;  %vm2944_vm5 = vweird.f32 %v7203_v32 }
 0x54c   :  { %4433 = vrcp.f32 %v7199_v54  ;;  %v2896_v31 = vsub.f32 1.0, %v2895_v24  ;;  %v2883_v21 = vadd.f32 %v7197_v38, %v2882_v3  ;;  %v2888_v3 = vand.u32 2147483647, %v7191_v41 }
 0x54d   :  { %4435 = vrcp.f32 %v7211_v18  ;;  %vm2914_vm13 = vweird.f32 %v7211_v18 }
 0x54e   :  { %v4430_v7 = vpop.eup %4429  ;;  %v2897_v28 = vmul.f32 %v7201_v51, %v2896_v31  ;;  %vm2889_vm2 = vcmp.eq.f32.partialorder %v2888_v3, 8.507059e+37 }
 0x54f   :  { %v7220_v10 = vadd.f32 1.0, %v4430_v7  ;;  %v2890_v7 = vand.u32 2147483648, %v7191_v41  ;;  %v2887_v41 = vsel %vm7241_vm0, %v7197_v38, %v2883_v21  ;;  %v2950_v21 = vand.u32 2147483648, %v7203_v32 }
 0x550   :  { %v2898_v0 = vadd.f32 %v7201_v51, %v2897_v28  ;;  %v2638_v28 = vld.sshfl [vmem:[#allocation1 + $0x38] sm:$0xff pattern:$0x73625140] }
 0x551   :  { %v7213_v56 = vpop.eup %4431  ;;  %4437 = vrcp.f32 %v7220_v10 }
 0x552   :  { %v7216_v34 = vpop.eup %4433  ;;  %v2940_v8 = vmul.f32 %v7213_v56, %v7203_v32  ;;  %vm2945_vm3 = vweird.f32 %v7213_v56 }
 0x553   :  { %v2925_v46 = vmul.f32 %v7216_v34, %v7199_v54  ;;  %v7226_v29 = vpop.eup %4435  ;;  %vm2930_vm6 = vweird.f32 %v7216_v34  ;;  %vm7273_vm7 = vmor %vm2944_vm5, %vm2945_vm3 }
 0x554   :  { %v2941_v17 = vsub.f32 1.0, %v2940_v8  ;;  %v2905_v8 = vand.u32 2147483648, %v7193_v63  ;;  %v2902_v63 = vsel %vm7248_vm1, %v7201_v51, %v2898_v0  ;;  %v2948_v0 = vand.u32 2147483647, %v7203_v32  ;;  %vm7286_vm9 = vmor %vm2929_vm8, %vm2930_vm6 }
 0x555   :  { %v2926_v33 = vsub.f32 1.0, %v2925_v46  ;;  %v2933_v32 = vand.u32 2147483647, %v7199_v54  ;;  %vm2915_vm11 = vweird.f32 %v7226_v29  ;;  %vm2959_vm1 = vweird.f32 %v7220_v10 }
 0x556   :  { %v2942_v50 = vmul.f32 %v7213_v56, %v2941_v17  ;;  %vm2949_vm10 = vcmp.eq.f32.partialorder %v2948_v0, 8.507059e+37  ;;  %vm2916_vm14 = vmor %vm2914_vm13, %vm2915_vm11 }
 0x557   :  { %v2812_v36 = vpop.f32.mrf.mxu0  ;;  %v7255_v17 = vpop.eup %4437  ;;  %vm2934_vm12 = vcmp.eq.f32.partialorder %v2933_v32, 8.507059e+37 }
 0x558   :  { %v2813_v26 = vadd.f32 %v2812_v36, %v2637_v20  ;;  %v2910_v36 = vmul.f32 %v7226_v29, %v7211_v18  ;;  %v2943_v38 = vadd.f32 %v7213_v56, %v2942_v50  ;;  %vm2960_vm0 = vweird.f32 %v7255_v17 }
 0x55a   :  { %v2911_v12 = vsub.f32 1.0, %v2910_v36 }
 0x55c   :  { %v2912_v50 = vmul.f32 %v7226_v29, %v2911_v12  ;;  %v2947_v12 = vsel %vm7273_vm7, %v7213_v56, %v2943_v38  ;;  %v2918_v38 = vand.u32 2147483647, %v7211_v18 }
 0x55d   :  { %v2825_v24 = vpop.f32.mrf.mxu1  ;;  %v2838_v31 = vpop.f32.mrf.mxu2 }
 0x55e   :  { %v2826_v20 = vadd.f32 %v2825_v24, %v2813_v26  ;;  %v2891_v26 = vor.u32 1.1754944e-38, %v2890_v7  ;;  %v2906_v24 = vor.u32 1.1754944e-38, %v2905_v8  ;;  %v2839_v6 = vadd.f32 %v2838_v31, %v2638_v28 }
 0x55f   :  { %v2814_v47 = vpop.f32.mrf.mxu0  ;;  %v2955_v7 = vmul.f32 %v7255_v17, %v7220_v10  ;;  %v2951_v28 = vor.u32 1.1754944e-38, %v2950_v21  ;;  %vm2919_vm15 = vcmp.eq.f32.partialorder %v2918_v38, 8.507059e+37  ;;  %v8580_v38 = vld [vmem:[#allocation117_spill] sm:$0xff] }
 0x560   :  { %4439 = vtanh.f32 %v2826_v20  ;;  %v2927_v47 = vmul.f32 %v7216_v34, %v2926_v33  ;;  %v2892_v49 = vsel %vm2889_vm2, %v2891_v26, %v2887_v41  ;;  %v2907_v59 = vsel %vm2904_vm4, %v2906_v24, %v2902_v63  ;;  %vm2961_vm2 = vmor %vm2959_vm1, %vm2960_vm0  ;;  %v8572_v26 = vld [vmem:[#allocation92_spill] sm:$0xff] }
 0x561   :  { %v2976_v20 = vmul.f32 %v2907_v59, %v7014_v58  ;;  %v2956_v41 = vsub.f32 1.0, %v2955_v7  ;;  %v2952_v56 = vsel %vm2949_vm10, %v2951_v28, %v2947_v12  ;;  %v8569_v12 = vld [vmem:[#allocation89_spill] sm:$0xff] }
 0x562   :  { %v2928_v33 = vadd.f32 %v7216_v34, %v2927_v47  ;;  %v2920_v47 = vand.u32 2147483648, %v7211_v18  ;;  %v2971_v7 = vmul.f32 %v2952_v56, %v7028_v15  ;;  %v2965_v18 = vand.u32 2147483648, %v7220_v10  ;;  %v8570_v28 = vld [vmem:[#allocation109_spill] sm:$0xff] }
 0x563   :  { %v2851_v46 = vpop.f32.mrf.mxu3  ;;  %v2963_v15 = vand.u32 2147483647, %v7220_v10  ;;  %v8576_v56 = vld [vmem:[#allocation113_spill] sm:$0xff] }
 0x564   :  { %v2852_v51 = vadd.f32 %v2851_v46, %v2839_v6  ;;  %v2935_v6 = vand.u32 2147483648, %v7199_v54  ;;  %v2932_v58 = vsel %vm7286_vm9, %v7216_v34, %v2928_v33  ;;  %v2957_v34 = vmul.f32 %v7255_v17, %v2956_v41  ;;  %v8571_v41 = vld [vmem:[#allocation110_spill] sm:$0xff] }
 0x565   :  { %v2827_v31 = vpop.f32.mrf.mxu1  ;;  %v2840_v45 = vpop.f32.mrf.mxu2  ;;  %v2921_v33 = vor.u32 1.1754944e-38, %v2920_v47  ;;  %vm2964_vm3 = vcmp.eq.f32.partialorder %v2963_v15, 8.507059e+37  ;;  %v8577_v47 = vld [vmem:[#allocation114_spill] sm:$0xff]  ;;  %v8591_v15 = vld [vmem:[#allocation112_spill] sm:$0xff] }
 0x566   :  { %v4440_v8 = vpop.eup %4439  ;;  %4441 = vtanh.f32 %v2852_v51  ;;  %v2936_v54 = vor.u32 1.1754944e-38, %v2935_v6  ;;  %v2958_v31 = vadd.f32 %v7255_v17, %v2957_v34  ;;  %v2966_v6 = vor.u32 1.1754944e-38, %v2965_v18  ;;  %v8581_v34 = vld [vmem:[#allocation118_spill] sm:$0xff]  ;;  %v8590_v18 = vld [vmem:[#allocation111_spill] sm:$0xff] }
 0x567   :  { %v2977_v3 = vmul.f32 %v4440_v8, %v2892_v49  ;;  %v2913_v49 = vadd.f32 %v7226_v29, %v2912_v50 }
 0x568   :  { %v2937_v21 = vsel %vm2934_vm12, %v2936_v54, %v2932_v58  ;;  %v8573_v58 = vld [vmem:[#allocation93_spill] sm:$0xff]  ;;  %v8575_v54 = vld [vmem:[#allocation95_spill] sm:$0xff] }
 0x569   :  { %v7290_v63 = vadd.f32 %v2977_v3, %v2976_v20  ;;  %v2917_v51 = vsel %vm2916_vm14, %v7226_v29, %v2913_v49  ;;  %v2962_v29 = vsel %vm2961_vm2, %v7255_v17, %v2958_v31  ;;  %v8568_v17 = vld [vmem:[#allocation88_spill] sm:$0xff]  ;;  %v8574_v49 = vld [vmem:[#allocation94_spill] sm:$0xff] }
 0x56a   :  { %v2922_v8 = vsel %vm2919_vm15, %v2921_v33, %v2917_v51  ;;  %v2967_v3 = vsel %vm2964_vm3, %v2966_v6, %v2962_v29  ;;  %v8585_v51 = vld [vmem:[#allocation122_spill] sm:$0xff]  ;;  %v8586_v33 = vld [vmem:[#allocation107_spill] sm:$0xff]  ;;  %v8587_v31 = vld [vmem:[#allocation108_spill] sm:$0xff] }
 0x56b   :  { %4443 = vtanh.f32 %v7290_v63  ;;  %v2853_v24 = vpop.f32.mrf.mxu3  ;;  %v8593_v29 = vld [vmem:[#allocation128_spill] sm:$0xff]  ;;  %v8594_v6 = vld [vmem:[#allocation115_spill] sm:$0xff] }
 0x56c   :  { %v4442_v46 = vpop.eup %4441  ;;  %v8578_v24 = vld [vmem:[#allocation98_spill] sm:$0xff] }
 0x56d   :  { %v2972_v59 = vmul.f32 %v4442_v46, %v2937_v21  ;;  %v8579_v46 = vld [vmem:[#allocation99_spill] sm:$0xff]  ;;  %v8582_v21 = vld [vmem:[#allocation101_spill] sm:$0xff] }
 0x56f   :  { %v7304_v0 = vadd.f32 %v2972_v59, %v2971_v7  ;;  %v8583_v7 = vld [vmem:[#allocation102_spill] sm:$0xff]  ;;  %v8584_v59 = vld [vmem:[#allocation121_spill] sm:$0xff] }
 0x571   :  { %v4444_v45 = vpop.eup %4443  ;;  %4445 = vtanh.f32 %v7304_v0 }
 0x572   :  { %v2980_v50 = vmul.f32 %v4444_v45, %v2922_v8  ;;  %v8588_v45 = vld [vmem:[#allocation125_spill] sm:$0xff]  ;;  %v8589_v8 = vld [vmem:[#allocation126_spill] sm:$0xff] }
 0x574   :  { %v7313_v36 = vpack.c.bf16 %v2980_v50, %v2980_v50  ;;  %v8592_v50 = vld [vmem:[#allocation127_spill] sm:$0xff] }
 0x576   :  { %3015 = vmatmul.bf16.vlgmr.msra.gmra.mxu0 %v7313_v36  ;;  %3041 = vmatmul.bf16.vlgmr.msra.gmra.mxu2 %v7313_v36 }
 0x577   :  { %v4446_v20 = vpop.eup %4445  ;;  %3111 = vmatpush.bf16.msra.mxu0 %v8040_v22  ;;  %3137 = vmatpush.bf16.msra.mxu2 %v8041_v1 }
 0x578   :  { %v2975_v32 = vmul.f32 %v4446_v20, %v2967_v3  ;;  %v8595_v20 = vld [vmem:[#allocation116_spill] sm:$0xff]  ;;  %v8596_v3 = vld [vmem:[#allocation129_spill] sm:$0xff] }
 0x57a   :  { %v7319_v10 = vpack.c.bf16 %v2975_v32, %v2975_v32  ;;  %v8597_v32 = vld [vmem:[#allocation130_spill] sm:$0xff] }
 0x57b   :  { %3112 = vmatpush.bf16.msra.mxu0 %v8042_v2  ;;  %3138 = vmatpush.bf16.msra.mxu2 %v8043_v39 }
 0x57c   :  { %3028 = vmatmul.bf16.vlgmr.msra.gmra.mxu1 %v7319_v10  ;;  %3054 = vmatmul.bf16.vlgmr.msra.gmra.mxu3 %v7319_v10 }
 0x57d   :  { %3124 = vmatpush.bf16.msra.mxu1 %v8044_v52  ;;  %3150 = vmatpush.bf16.msra.mxu3 %v8045_v9 }
 0x57f   :  { %3113 = vmatpush.bf16.msra.mxu0 %v8046_v61  ;;  %3139 = vmatpush.bf16.msra.mxu2 %v8047_v13 }
 0x581   :  { %3125 = vmatpush.bf16.msra.mxu1 %v8048_v57  ;;  %3151 = vmatpush.bf16.msra.mxu3 %v8049_v62 }
 0x583   :  { %3114 = vmatpush.bf16.msra.mxu0 %v8050_v30  ;;  %3140 = vmatpush.bf16.msra.mxu2 %v8051_v14 }
 0x585   :  { %3126 = vmatpush.bf16.msra.mxu1 %v8052_v48  ;;  %3152 = vmatpush.bf16.msra.mxu3 %v8053_v43 }
 0x586   :  { %3067 = vmatmul.bf16.vlgmr.msrb.gmra.mxu0 %v7313_v36  ;;  %3093 = vmatmul.bf16.vlgmr.msrb.gmra.mxu2 %v7313_v36 }
 0x587   :  { %3115 = vmatpush.bf16.msra.mxu0 %v8054_v55  ;;  %3141 = vmatpush.bf16.msra.mxu2 %v8055_v27 }
 0x589   :  { %3127 = vmatpush.bf16.msra.mxu1 %v8056_v5  ;;  %3153 = vmatpush.bf16.msra.mxu3 %v8057_v42 }
 0x58b   :  { %3116 = vmatpush.bf16.msra.mxu0 %v8058_v11  ;;  %3142 = vmatpush.bf16.msra.mxu2 %v8059_v23 }
 0x58c   :  { %3080 = vmatmul.bf16.vlgmr.msrb.gmra.mxu1 %v7319_v10  ;;  %3106 = vmatmul.bf16.vlgmr.msrb.gmra.mxu3 %v7319_v10 }
 0x58d   :  { %3128 = vmatpush.bf16.msra.mxu1 %v8060_v35  ;;  %3154 = vmatpush.bf16.msra.mxu3 %v8061_v37 }
 0x58f   :  { %3117 = vmatpush.bf16.msra.mxu0 %v5448_v40  ;;  %3143 = vmatpush.bf16.msra.mxu2 %v8062_v60 }
 0x591   :  { %3129 = vmatpush.bf16.msra.mxu1 %v8144_v25  ;;  %3155 = vmatpush.bf16.msra.mxu3 %v8145_v19 }
 0x593   :  { %3118 = vmatpush.bf16.msra.mxu0 %v8146_v4  ;;  %3144 = vmatpush.bf16.msra.mxu2 %v8147_v16 }
 0x595   :  { %3130 = vmatpush.bf16.msra.mxu1 %v8568_v17  ;;  %3156 = vmatpush.bf16.msra.mxu3 %v8569_v12 }
 0x596   :  { %3119 = vmatmul.bf16.vlgmr.msra.gmra.mxu0 %v7313_v36  ;;  %3145 = vmatmul.bf16.vlgmr.msra.gmra.mxu2 %v7313_v36 }
 0x597   :  { %3163 = vmatpush.bf16.msrb.mxu0 %v8148_v44  ;;  %3189 = vmatpush.bf16.msrb.mxu2 %v8149_v53  ;;  %v4103_v44 = vld [vmem:[%s7604_s1 + $0x60] sm:$0xff] }
 0x598   :  { %2988 = vst [vmem:[#allocation1] ss:$4 sm:$0xff] %v4103_v44  ;;  %v8599_v44 = vld [vmem:[#allocation119_spill] sm:$0xff] }
 0x599   :  { %3131 = vmatpush.bf16.msra.mxu1 %v8572_v26  ;;  %3157 = vmatpush.bf16.msra.mxu3 %v8573_v58 }
 0x59b   :  { %3164 = vmatpush.bf16.msrb.mxu0 %v8570_v28  ;;  %3190 = vmatpush.bf16.msrb.mxu2 %v8571_v41  ;;  %v8598_v28 = vld [vmem:[#allocation37_spill] sm:$0xff] }
 0x59c   :  { %3132 = vmatmul.bf16.vlgmr.msra.gmra.mxu1 %v7319_v10  ;;  %3158 = vmatmul.bf16.vlgmr.msra.gmra.mxu3 %v7319_v10 }
 0x59d   :  { %3176 = vmatpush.bf16.msrb.mxu1 %v8574_v49  ;;  %3202 = vmatpush.bf16.msrb.mxu3 %v8575_v54  ;;  %v8600_v49 = vld [vmem:[#allocation120_spill] sm:$0xff] }
 0x59f   :  { %3165 = vmatpush.bf16.msrb.mxu0 %v8576_v56  ;;  %3191 = vmatpush.bf16.msrb.mxu2 %v8577_v47  ;;  %v8601_v56 = vld [vmem:[#allocation41_spill] sm:$0xff] }
 0x5a1   :  { %3177 = vmatpush.bf16.msrb.mxu1 %v8578_v24  ;;  %3203 = vmatpush.bf16.msrb.mxu3 %v8579_v46  ;;  %v8602_v24 = vld [vmem:[#allocation123_spill] sm:$0xff] }
 0x5a3   :  { %3166 = vmatpush.bf16.msrb.mxu0 %v8580_v38  ;;  %3192 = vmatpush.bf16.msrb.mxu2 %v8581_v34  ;;  %v8603_v38 = vld [vmem:[#allocation124_spill] sm:$0xff] }
 0x5a5   :  { %3178 = vmatpush.bf16.msrb.mxu1 %v8582_v21  ;;  %3204 = vmatpush.bf16.msrb.mxu3 %v8583_v7  ;;  %v8604_v21 = vld [vmem:[#allocation38_spill] sm:$0xff] }
 0x5a7   :  { %3167 = vmatpush.bf16.msrb.mxu0 %v8584_v59  ;;  %3193 = vmatpush.bf16.msrb.mxu2 %v8585_v51  ;;  %v8608_v59 = vld [vmem:[#allocation46_spill] sm:$0xff] }
 0x5a9   :  { %3179 = vmatpush.bf16.msrb.mxu1 %v8586_v33  ;;  %3205 = vmatpush.bf16.msrb.mxu3 %v8587_v31 }
 0x5ab   :  { %3168 = vmatpush.bf16.msrb.mxu0 %v8588_v45  ;;  %3194 = vmatpush.bf16.msrb.mxu2 %v8589_v8 }
 0x5ad   :  { %3180 = vmatpush.bf16.msrb.mxu1 %v8590_v18  ;;  %3206 = vmatpush.bf16.msrb.mxu3 %v8591_v15 }
 0x5af   :  { %3169 = vmatpush.bf16.msrb.mxu0 %v8592_v50  ;;  %3195 = vmatpush.bf16.msrb.mxu2 %v8593_v29 }
 0x5b1   :  { %3181 = vmatpush.bf16.msrb.mxu1 %v8594_v6  ;;  %3207 = vmatpush.bf16.msrb.mxu3 %v8595_v20 }
 0x5b3   :  { %3170 = vmatpush.bf16.msrb.mxu0 %v8596_v3  ;;  %3196 = vmatpush.bf16.msrb.mxu2 %v8597_v32 }
 0x5b5   :  { %3182 = vmatpush.bf16.msrb.mxu1 %v8599_v44  ;;  %3208 = vmatpush.bf16.msrb.mxu3 %v8600_v49 }
 0x5b6   :  { %3171 = vmatmul.bf16.vlgmr.msrb.gmra.mxu0 %v7313_v36  ;;  %3197 = vmatmul.bf16.vlgmr.msrb.gmra.mxu2 %v7313_v36  ;;  %v8606_v36 = vld [vmem:[#allocation42_spill] sm:$0xff] }
 0x5b7   :  { %3359 = vmatpush.bf16.msra.mxu0 %v8598_v28  ;;  %3385 = vmatpush.bf16.msra.mxu2 %v8040_v22  ;;  %v8605_v22 = vld [vmem:[#allocation45_spill] sm:$0xff] }
 0x5b9   :  { %3183 = vmatpush.bf16.msrb.mxu1 %v8602_v24  ;;  %3209 = vmatpush.bf16.msrb.mxu3 %v8603_v38 }
 0x5bb   :  { %3360 = vmatpush.bf16.msra.mxu0 %v8601_v56  ;;  %3386 = vmatpush.bf16.msra.mxu2 %v8042_v2  ;;  %v8607_v2 = vld [vmem:[#allocation49_spill] sm:$0xff] }
 0x5bc   :  { %3184 = vmatmul.bf16.vlgmr.msrb.gmra.mxu1 %v7319_v10  ;;  %3210 = vmatmul.bf16.vlgmr.msrb.gmra.mxu3 %v7319_v10  ;;  %v8610_v10 = vld [vmem:[#allocation50_spill] sm:$0xff] }
 0x5bd   :  { %3372 = vmatpush.bf16.msra.mxu1 %v8604_v21  ;;  %3398 = vmatpush.bf16.msra.mxu3 %v8044_v52  ;;  %v8609_v52 = vld [vmem:[#allocation53_spill] sm:$0xff] }
 0x5bf   :  { %3361 = vmatpush.bf16.msra.mxu0 %v8605_v22  ;;  %3387 = vmatpush.bf16.msra.mxu2 %v8046_v61  ;;  %v8611_v61 = vld [vmem:[#allocation57_spill] sm:$0xff] }
 0x5c1   :  { %3373 = vmatpush.bf16.msra.mxu1 %v8606_v36  ;;  %3399 = vmatpush.bf16.msra.mxu3 %v8048_v57  ;;  %v8612_v57 = vld [vmem:[#allocation54_spill] sm:$0xff] }
 0x5c3   :  { %3362 = vmatpush.bf16.msra.mxu0 %v8607_v2  ;;  %3388 = vmatpush.bf16.msra.mxu2 %v8050_v30  ;;  %v8613_v30 = vld [vmem:[#allocation61_spill] sm:$0xff] }
 0x5c5   :  { %3374 = vmatpush.bf16.msra.mxu1 %v8608_v59  ;;  %3400 = vmatpush.bf16.msra.mxu3 %v8052_v48  ;;  %v8614_v48 = vld [vmem:[#allocation58_spill] sm:$0xff] }
 0x5c7   :  { %3363 = vmatpush.bf16.msra.mxu0 %v8609_v52  ;;  %3389 = vmatpush.bf16.msra.mxu2 %v8054_v55  ;;  %v8615_v55 = vld [vmem:[#allocation65_spill] sm:$0xff] }
 0x5c9   :  { %3375 = vmatpush.bf16.msra.mxu1 %v8610_v10  ;;  %3401 = vmatpush.bf16.msra.mxu3 %v8056_v5  ;;  %v8616_v5 = vld [vmem:[#allocation62_spill] sm:$0xff] }
 0x5cb   :  { %3364 = vmatpush.bf16.msra.mxu0 %v8611_v61  ;;  %3390 = vmatpush.bf16.msra.mxu2 %v8058_v11  ;;  %v2991_v11 = vld.sshfl [vmem:[#allocation1] sm:$0xff pattern:$0x73625140] }
 0x5cd   :  { %3376 = vmatpush.bf16.msra.mxu1 %v8612_v57  ;;  %3402 = vmatpush.bf16.msra.mxu3 %v8060_v35 }
 0x5cf   :  { %3365 = vmatpush.bf16.msra.mxu0 %v8613_v30  ;;  %3391 = vmatpush.bf16.msra.mxu2 %v5448_v40  ;;  %v8617_v40 = vld [vmem:[#allocation66_spill] sm:$0xff] }
 0x5d1   :  { %3377 = vmatpush.bf16.msra.mxu1 %v8614_v48  ;;  %3403 = vmatpush.bf16.msra.mxu3 %v8144_v25 }
 0x5d3   :  { %3366 = vmatpush.bf16.msra.mxu0 %v8615_v55  ;;  %3392 = vmatpush.bf16.msra.mxu2 %v8146_v4 }
 0x5d5   :  { %3378 = vmatpush.bf16.msra.mxu1 %v8616_v5  ;;  %3404 = vmatpush.bf16.msra.mxu3 %v8568_v17 }
 0x5d7   :  { %3411 = vmatpush.bf16.msrb.mxu0 %v8041_v1  ;;  %3437 = vmatpush.bf16.msrb.mxu2 %v8149_v53 }
 0x5d9   :  { %3379 = vmatpush.bf16.msra.mxu1 %v8617_v40  ;;  %3405 = vmatpush.bf16.msra.mxu3 %v8572_v26 }
 0x5db   :  { %3412 = vmatpush.bf16.msrb.mxu0 %v8043_v39  ;;  %3438 = vmatpush.bf16.msrb.mxu2 %v8571_v41  ;;  %v4104_v39 = vld [vmem:[%s7604_s1 + $0x68] sm:$0xff]  ;;  %v2994_v41 = vld.sshfl [vmem:[#allocation1 + $0x18] sm:$0xff pattern:$0x73625140] }
 0x5dc   :  { %2990 = vst [vmem:[#allocation1 + $0x20] ss:$4 sm:$0xff] %v4104_v39 }
 0x5dd   :  { %3424 = vmatpush.bf16.msrb.mxu1 %v8045_v9  ;;  %3450 = vmatpush.bf16.msrb.mxu3 %v8575_v54 }
 0x5df   :  { %3413 = vmatpush.bf16.msrb.mxu0 %v8047_v13  ;;  %3439 = vmatpush.bf16.msrb.mxu2 %v8577_v47 }
 0x5e1   :  { %3425 = vmatpush.bf16.msrb.mxu1 %v8049_v62  ;;  %3451 = vmatpush.bf16.msrb.mxu3 %v8579_v46 }
 0x5e3   :  { %3414 = vmatpush.bf16.msrb.mxu0 %v8051_v14  ;;  %3440 = vmatpush.bf16.msrb.mxu2 %v8581_v34  ;;  %v2993_v34 = vld.sshfl [vmem:[#allocation1 + $0x10] sm:$0xff pattern:$0x73625140]  ;;  %v2996_v44 = vld.sshfl [vmem:[#allocation1 + $0x28] sm:$0xff pattern:$0x73625140] }
 0x5e5   :  { %3426 = vmatpush.bf16.msrb.mxu1 %v8053_v43  ;;  %3452 = vmatpush.bf16.msrb.mxu3 %v8583_v7 }
 0x5e7   :  { %3415 = vmatpush.bf16.msrb.mxu0 %v8055_v27  ;;  %3441 = vmatpush.bf16.msrb.mxu2 %v8585_v51  ;;  %v2995_v51 = vld.sshfl [vmem:[#allocation1 + $0x20] sm:$0xff pattern:$0x73625140] }
 0x5e9   :  { %3427 = vmatpush.bf16.msrb.mxu1 %v8057_v42  ;;  %3453 = vmatpush.bf16.msrb.mxu3 %v8587_v31 }
 0x5eb   :  { %3416 = vmatpush.bf16.msrb.mxu0 %v8059_v23  ;;  %3442 = vmatpush.bf16.msrb.mxu2 %v8589_v8  ;;  %v2992_v23 = vld.sshfl [vmem:[#allocation1 + $0x8] sm:$0xff pattern:$0x73625140] }
 0x5ed   :  { %3428 = vmatpush.bf16.msrb.mxu1 %v8061_v37  ;;  %3454 = vmatpush.bf16.msrb.mxu3 %v8591_v15 }
 0x5ef   :  { %3417 = vmatpush.bf16.msrb.mxu0 %v8062_v60  ;;  %3443 = vmatpush.bf16.msrb.mxu2 %v8593_v29 }
 0x5f1   :  { %3429 = vmatpush.bf16.msrb.mxu1 %v8145_v19  ;;  %3455 = vmatpush.bf16.msrb.mxu3 %v8595_v20 }
 0x5f3   :  { %3418 = vmatpush.bf16.msrb.mxu0 %v8147_v16  ;;  %3444 = vmatpush.bf16.msrb.mxu2 %v8597_v32  ;;  %v3016_v1 = vpop.f32.mrf.mxu0 }
 0x5f4   :  { %v3017_v35 = vadd.f32 %v3016_v1, %v2991_v11 }
 0x5f5   :  { %3430 = vmatpush.bf16.msrb.mxu1 %v8569_v12  ;;  %3456 = vmatpush.bf16.msrb.mxu3 %v8600_v49 }
 0x5f9   :  { %3431 = vmatpush.bf16.msrb.mxu1 %v8573_v58  ;;  %3457 = vmatpush.bf16.msrb.mxu3 %v8603_v38  ;;  %v3029_v9 = vpop.f32.mrf.mxu1  ;;  %v3042_v13 = vpop.f32.mrf.mxu2 }
 0x5fa   :  { %v3030_v60 = vadd.f32 %v3029_v9, %v3017_v35  ;;  %v3043_v25 = vadd.f32 %v3042_v13, %v2992_v23 }
 0x5fb   :  { %v3018_v62 = vpop.f32.mrf.mxu0 }
 0x5fc   :  { %v4105_v17 = vmul.f32 -1.442695, %v3030_v60 }
 0x5fe   :  { %4447 = vpow2.f32 %v4105_v17 }
 0x5ff   :  { %v3055_v14 = vpop.f32.mrf.mxu3 }
 0x600   :  { %v3056_v16 = vadd.f32 %v3055_v14, %v3043_v25 }
 0x601   :  { %v3031_v43 = vpop.f32.mrf.mxu1  ;;  %v3044_v27 = vpop.f32.mrf.mxu2 }
 0x602   :  { %v4106_v12 = vmul.f32 -1.442695, %v3056_v16 }
 0x603   :  { %v3068_v42 = vpop.f32.mrf.mxu0 }
 0x604   :  { %4449 = vpow2.f32 %v4106_v12  ;;  %v4448_v33 = vpop.eup %4447  ;;  %v3069_v31 = vadd.f32 %v3068_v42, %v2993_v34 }
 0x605   :  { %v7467_v6 = vadd.f32 1.0, %v4448_v33 }
 0x607   :  { %v3057_v37 = vpop.f32.mrf.mxu3  ;;  %vm3244_vm4 = vweird.f32 %v7467_v6  ;;  %v3250_v17 = vand.u32 2147483648, %v7467_v6 }
 0x608   :  { %v2997_v37 = vld.sshfl [vmem:[#allocation1 + $0x30] sm:$0xff pattern:$0x73625140] }
 0x609   :  { %v3081_v19 = vpop.f32.mrf.mxu1  ;;  %v3094_v4 = vpop.f32.mrf.mxu2 }
 0x60a   :  { %v3095_v47 = vadd.f32 %v3094_v4, %v2994_v41  ;;  %v4450_v18 = vpop.eup %4449  ;;  %v3082_v15 = vadd.f32 %v3081_v19, %v3069_v31 }
 0x60b   :  { %v3070_v53 = vpop.f32.mrf.mxu0  ;;  %v7469_v28 = vadd.f32 1.0, %v4450_v18  ;;  %v3251_v18 = vor.u32 1.1754944e-38, %v3250_v17 }
 0x60c   :  { %v4107_v49 = vmul.f32 -1.442695, %v3082_v15 }
 0x60d   :  { %vm3259_vm7 = vweird.f32 %v7469_v28 }
 0x60f   :  { %v3107_v26 = vpop.f32.mrf.mxu3 }
 0x610   :  { %v3108_v7 = vadd.f32 %v3107_v26, %v3095_v47  ;;  %v3265_v26 = vand.u32 2147483648, %v7469_v28  ;;  %v3248_v47 = vand.u32 2147483647, %v7467_v6 }
 0x611   :  { %v3083_v58 = vpop.f32.mrf.mxu1  ;;  %v3096_v54 = vpop.f32.mrf.mxu2 }
 0x612   :  { %v4108_v8 = vmul.f32 -1.442695, %v3108_v7  ;;  %v3263_v7 = vand.u32 2147483647, %v7469_v28  ;;  %vm3249_vm10 = vcmp.eq.f32.partialorder %v3248_v47, 8.507059e+37 }
 0x613   :  { %v3120_v46 = vpop.f32.mrf.mxu0 }
 0x614   :  { %v3121_v50 = vadd.f32 %v3120_v46, %v2995_v51  ;;  %4451 = vpow2.f32 %v4108_v8  ;;  %v2998_v51 = vld.sshfl [vmem:[#allocation1 + $0x38] sm:$0xff pattern:$0x73625140]  ;;  %vm3264_vm12 = vcmp.eq.f32.partialorder %v3263_v7, 8.507059e+37 }
 0x615   :  { %4453 = vrcp.f32 %v7467_v6 }
 0x617   :  { %v3109_v45 = vpop.f32.mrf.mxu3 }
 0x619   :  { %v3146_v29 = vpop.f32.mrf.mxu2  ;;  %v3133_v20 = vpop.f32.mrf.mxu1 }
 0x61a   :  { %v3134_v3 = vadd.f32 %v3133_v20, %v3121_v50  ;;  %v3147_v24 = vadd.f32 %v3146_v29, %v2996_v44  ;;  %v4452_v36 = vpop.eup %4451  ;;  %v3266_v29 = vor.u32 1.1754944e-38, %v3265_v26 }
 0x61b   :  { %v3122_v32 = vpop.f32.mrf.mxu0  ;;  %v7473_v52 = vpop.eup %4453  ;;  %v7475_v61 = vadd.f32 1.0, %v4452_v36 }
 0x61c   :  { %v4109_v56 = vmul.f32 -1.442695, %v3134_v3  ;;  %v3240_v5 = vmul.f32 %v7473_v52, %v7467_v6  ;;  %vm3245_vm5 = vweird.f32 %v7473_v52 }
 0x61d   :  { %vm7517_vm8 = vmor %vm3244_vm4, %vm3245_vm5  ;;  %vm3289_vm0 = vweird.f32 %v7475_v61 }
 0x61e   :  { %4455 = vpow2.f32 %v4109_v56  ;;  %v3241_v9 = vsub.f32 1.0, %v3240_v5 }
 0x61f   :  { %4457 = vrcp.f32 %v7469_v28  ;;  %v3159_v38 = vpop.f32.mrf.mxu3 }
 0x620   :  { %4459 = vpow2.f32 %v4107_v49  ;;  %v3160_v21 = vadd.f32 %v3159_v38, %v3147_v24  ;;  %v3242_v11 = vmul.f32 %v7473_v52, %v3241_v9 }
 0x621   :  { %v3148_v22 = vpop.f32.mrf.mxu2  ;;  %v3135_v2 = vpop.f32.mrf.mxu1 }
 0x622   :  { %v4110_v59 = vmul.f32 -1.442695, %v3160_v21  ;;  %v3243_v4 = vadd.f32 %v7473_v52, %v3242_v11 }
 0x624   :  { %v4456_v10 = vpop.eup %4455  ;;  %4461 = vpow2.f32 %v4110_v59  ;;  %v3247_v45 = vsel %vm7517_vm8, %v7473_v52, %v3243_v4 }
 0x625   :  { %v7477_v57 = vpop.eup %4457  ;;  %v7479_v30 = vadd.f32 1.0, %v4456_v10  ;;  %v3252_v3 = vsel %vm3249_vm10, %v3251_v18, %v3247_v45  ;;  %v3295_v10 = vand.u32 2147483648, %v7475_v61 }
 0x626   :  { %v4460_v48 = vpop.eup %4459  ;;  %v3255_v40 = vmul.f32 %v7477_v57, %v7469_v28  ;;  %vm3260_vm6 = vweird.f32 %v7477_v57 }
 0x627   :  { %4463 = vrcp.f32 %v7479_v30  ;;  %v3161_v55 = vpop.f32.mrf.mxu3  ;;  %v7487_v1 = vadd.f32 1.0, %v4460_v48  ;;  %vm7524_vm9 = vmor %vm3259_vm7, %vm3260_vm6  ;;  %v3310_v44 = vand.u32 2147483648, %v7479_v30  ;;  %vm3304_vm13 = vweird.f32 %v7479_v30 }
 0x628   :  { %4465 = vrcp.f32 %v7475_v61  ;;  %v3256_v62 = vsub.f32 1.0, %v3255_v40  ;;  %v3308_v21 = vand.u32 2147483647, %v7479_v30 }
 0x629   :  { %4467 = vrcp.f32 %v7487_v1  ;;  %v3311_v5 = vor.u32 1.1754944e-38, %v3310_v44  ;;  %vm3274_vm5 = vweird.f32 %v7487_v1 }
 0x62a   :  { %v4462_v39 = vpop.eup %4461  ;;  %v3257_v23 = vmul.f32 %v7477_v57, %v3256_v62  ;;  %vm3309_vm2 = vcmp.eq.f32.partialorder %v3308_v21, 8.507059e+37 }
 0x62b   :  { %v7496_v27 = vadd.f32 1.0, %v4462_v39 }
 0x62c   :  { %v3258_v12 = vadd.f32 %v7477_v57, %v3257_v23  ;;  %v3278_v23 = vand.u32 2147483647, %v7487_v1 }
 0x62d   :  { %v7489_v13 = vpop.eup %4463  ;;  %4469 = vrcp.f32 %v7496_v27 }
 0x62e   :  { %v7492_v14 = vpop.eup %4465  ;;  %v3300_v43 = vmul.f32 %v7489_v13, %v7479_v30  ;;  %v3262_v15 = vsel %vm7524_vm9, %v7477_v57, %v3258_v12  ;;  %vm3305_vm11 = vweird.f32 %v7489_v13  ;;  %v3293_v30 = vand.u32 2147483647, %v7475_v61 }
 0x62f   :  { %v3285_v35 = vmul.f32 %v7492_v14, %v7475_v61  ;;  %v7502_v60 = vpop.eup %4467  ;;  %v3267_v56 = vsel %vm3264_vm12, %v3266_v29, %v3262_v15  ;;  %vm3290_vm14 = vweird.f32 %v7492_v14  ;;  %vm7549_vm15 = vmor %vm3304_vm13, %vm3305_vm11  ;;  %v3296_v61 = vor.u32 1.1754944e-38, %v3295_v10 }
 0x630   :  { %v3301_v25 = vsub.f32 1.0, %v3300_v43  ;;  %v3270_v58 = vmul.f32 %v7502_v60, %v7487_v1  ;;  %v3336_v57 = vmul.f32 %v3267_v56, %v7290_v63  ;;  %vm7562_vm1 = vmor %vm3289_vm0, %vm3290_vm14  ;;  %vm3275_vm3 = vweird.f32 %v7502_v60 }
 0x631   :  { %v3286_v16 = vsub.f32 1.0, %v3285_v35  ;;  %v3280_v43 = vand.u32 2147483648, %v7487_v1  ;;  %vm3294_vm4 = vcmp.eq.f32.partialorder %v3293_v30, 8.507059e+37  ;;  %vm3276_vm6 = vmor %vm3274_vm5, %vm3275_vm3  ;;  %vm3279_vm8 = vcmp.eq.f32.partialorder %v3278_v23, 8.507059e+37 }
 0x632   :  { %v3302_v46 = vmul.f32 %v7489_v13, %v3301_v25  ;;  %v3271_v6 = vsub.f32 1.0, %v3270_v58  ;;  %v3325_v12 = vand.u32 2147483648, %v7496_v27  ;;  %vm3319_vm9 = vweird.f32 %v7496_v27 }
 0x633   :  { %v3172_v42 = vpop.f32.mrf.mxu0  ;;  %v7531_v8 = vpop.eup %4469  ;;  %v3287_v50 = vmul.f32 %v7492_v14, %v3286_v16  ;;  %v3281_v16 = vor.u32 1.1754944e-38, %v3280_v43 }
 0x634   :  { %v3173_v19 = vadd.f32 %v3172_v42, %v2997_v37  ;;  %v3303_v28 = vadd.f32 %v7489_v13, %v3302_v46  ;;  %v3315_v49 = vmul.f32 %v7531_v8, %v7496_v27  ;;  %v3272_v59 = vmul.f32 %v7502_v60, %v3271_v6  ;;  %v4111_v37 = vld [vmem:[%s7604_s1 + $0x70] sm:$0xff] }
 0x635   :  { %v3288_v38 = vadd.f32 %v7492_v14, %v3287_v50  ;;  %3348 = vst [vmem:[#allocation1] ss:$4 sm:$0xff] %v4111_v37  ;;  %vm3320_vm7 = vweird.f32 %v7531_v8 }
 0x636   :  { %v3307_v55 = vsel %vm7549_vm15, %v7489_v13, %v3303_v28  ;;  %v3316_v40 = vsub.f32 1.0, %v3315_v49  ;;  %v3273_v13 = vadd.f32 %v7502_v60, %v3272_v59  ;;  %vm3321_vm10 = vmor %vm3319_vm9, %vm3320_vm7  ;;  %vm3538_vm9 = vcmask 1024  }
 0x637   :  { %v3292_v63 = vsel %vm7562_vm1, %v7492_v14, %v3288_v38  ;;  %v3312_v62 = vsel %vm3309_vm2, %v3311_v5, %v3307_v55 }
 0x638   :  { %v3317_v35 = vmul.f32 %v7531_v8, %v3316_v40  ;;  %v3297_v14 = vsel %vm3294_vm4, %v3296_v61, %v3292_v63  ;;  %v3331_v25 = vmul.f32 %v3312_v62, %v7304_v0  ;;  %v3277_v4 = vsel %vm3276_vm6, %v7502_v60, %v3273_v13 }
 0x639   :  { %v3185_v53 = vpop.f32.mrf.mxu1  ;;  %v3198_v41 = vpop.f32.mrf.mxu2  ;;  %v3323_v0 = vand.u32 2147483647, %v7496_v27  ;;  %v4112_v27 = vld [vmem:[%s7604_s1 + $0x78] sm:$0xff]  ;;  %v10_v40 = vstv %s7606_s4 }
 0x63a   :  { %v3186_v54 = vadd.f32 %v3185_v53, %v3173_v19  ;;  %v3199_v20 = vadd.f32 %v3198_v41, %v2998_v51  ;;  %v3318_v1 = vadd.f32 %v7531_v8, %v3317_v35  ;;  %v3282_v41 = vsel %vm3279_vm8, %v3281_v16, %v3277_v4  ;;  %3350 = vst [vmem:[#allocation1 + $0x20] ss:$4 sm:$0xff] %v4112_v27 }
 0x63b   :  { %v3174_v33 = vpop.f32.mrf.mxu0  ;;  %vm3324_vm11 = vcmp.eq.f32.partialorder %v3323_v0, 8.507059e+37  ;;  %11 = vst [vmem:[#allocation2] sm:$0x1] %v10_v40  ;;  %vm3530_vm8 = vcmask 1041408  }
 0x63c   :  { %4471 = vtanh.f32 %v3186_v54  ;;  %v3322_v58 = vsel %vm3321_vm10, %v7531_v8, %v3318_v1  ;;  %v3326_v54 = vor.u32 1.1754944e-38, %v3325_v12  ;;  %v3351_v33 = vld.sshfl [vmem:[#allocation1 + $0x18] sm:$0xff pattern:$0x73625140] }
 0x63e   :  { %v3327_v46 = vsel %vm3324_vm11, %v3326_v54, %v3322_v58 }
 0x63f   :  { %v3211_v32 = vpop.f32.mrf.mxu3 }
 0x640   :  { %v3212_v24 = vadd.f32 %v3211_v32, %v3199_v20 }
 0x641   :  { %v3187_v22 = vpop.f32.mrf.mxu1  ;;  %v3200_v36 = vpop.f32.mrf.mxu2  ;;  %v3352_v15 = vld.sshfl [vmem:[#allocation1 + $0x20] sm:$0xff pattern:$0x73625140]  ;;  %v3353_v38 = vld.sshfl [vmem:[#allocation1 + $0x28] sm:$0xff pattern:$0x73625140] }
 0x642   :  { %v4472_v2 = vpop.eup %4471  ;;  %4473 = vtanh.f32 %v3212_v24  ;;  %v3354_v30 = vld.sshfl [vmem:[#allocation1 + $0x38] sm:$0xff pattern:$0x73625140] }
 0x643   :  { %v3337_v48 = vmul.f32 %v4472_v2, %v3252_v3 }
 0x645   :  { %v3338_v9 = vadd.f32 %v3337_v48, %v3336_v57 }
 0x647   :  { %4475 = vtanh.f32 %v3338_v9  ;;  %v3213_v42 = vpop.f32.mrf.mxu3 }
 0x648   :  { %v4474_v11 = vpop.eup %4473 }
 0x649   :  { %v3332_v19 = vmul.f32 %v4474_v11, %v3297_v14 }
 0x64b   :  { %v7580_v53 = vadd.f32 %v3332_v19, %v3331_v25 }
 0x64d   :  { %v4476_v17 = vpop.eup %4475  ;;  %4477 = vtanh.f32 %v7580_v53 }
 0x64e   :  { %v3340_v26 = vmul.f32 %v4476_v17, %v3282_v41 }
 0x650   :  { %v3341_v60 = vpack.c.bf16 %v3340_v26, %v3340_v26 }
 0x652   :  { %3367 = vmatmul.bf16.vlgmr.msra.gmra.mxu0 %v3341_v60  ;;  %3393 = vmatmul.bf16.vlgmr.msra.gmra.mxu2 %v3341_v60 }
 0x653   :  { %v4478_v47 = vpop.eup %4477 }
 0x654   :  { %v3335_v34 = vmul.f32 %v4478_v47, %v3327_v46 }
 0x656   :  { %v3342_v7 = vpack.c.bf16 %v3335_v34, %v3335_v34 }
 0x658   :  { %3380 = vmatmul.bf16.vlgmr.msra.gmra.mxu1 %v3342_v7  ;;  %3406 = vmatmul.bf16.vlgmr.msra.gmra.mxu3 %v3342_v7 }
 0x662   :  { %3419 = vmatmul.bf16.vlgmr.msrb.gmra.mxu0 %v3341_v60  ;;  %3445 = vmatmul.bf16.vlgmr.msrb.gmra.mxu2 %v3341_v60 }
 0x668   :  { %3432 = vmatmul.bf16.vlgmr.msrb.gmra.mxu1 %v3342_v7  ;;  %3458 = vmatmul.bf16.vlgmr.msrb.gmra.mxu3 %v3342_v7 }
 0x6cf   :  { %v3368_v51 = vpop.f32.mrf.mxu0 }
 0x6d0   :  { %v3369_v31 = vadd.f32 %v3368_v51, %v3351_v33 }
 0x6d5   :  { %v3381_v45 = vpop.f32.mrf.mxu1  ;;  %v3394_v8 = vpop.f32.mrf.mxu2 }
 0x6d6   :  { %v3382_v18 = vadd.f32 %v3381_v45, %v3369_v31  ;;  %v3395_v6 = vadd.f32 %v3394_v8, %v3352_v15 }
 0x6d7   :  { %v3370_v50 = vpop.f32.mrf.mxu0 }
 0x6d8   :  { %v4113_v29 = vmul.f32 -1.442695, %v3382_v18 }
 0x6da   :  { %4479 = vpow2.f32 %v4113_v29 }
 0x6db   :  { %v3407_v20 = vpop.f32.mrf.mxu3 }
 0x6dc   :  { %v3408_v3 = vadd.f32 %v3407_v20, %v3395_v6  ;;  %v4245_v6 = vld [vmem:[%s7605_s3] ss:$0 sm:$0xff] }
 0x6dd   :  { %v3383_v32 = vpop.f32.mrf.mxu1  ;;  %v3396_v28 = vpop.f32.mrf.mxu2 }
 0x6de   :  { %v4114_v44 = vmul.f32 -1.442695, %v3408_v3  ;;  %v4246_v28 = vld [vmem:[#allocation2] ss:$0 sm:$0xff] }
 0x6df   :  { %v3420_v49 = vpop.f32.mrf.mxu0 }
 0x6e0   :  { %v4480_v56 = vpop.eup %4479  ;;  %4481 = vpow2.f32 %v4114_v44  ;;  %v3421_v22 = vadd.f32 %v3420_v49, %v3353_v38 }
 0x6e1   :  { %v3472_v24 = vadd.f32 1.0, %v4480_v56 }
 0x6e3   :  { %4483 = vrcp.f32 %v3472_v24  ;;  %v3409_v21 = vpop.f32.mrf.mxu3  ;;  %v3486_v37 = vand.u32 2147483648, %v3472_v24  ;;  %vm3480_vm13 = vweird.f32 %v3472_v24  ;;  %v3484_v19 = vand.u32 2147483647, %v3472_v24 }
 0x6e5   :  { %v3433_v36 = vpop.f32.mrf.mxu1  ;;  %v3446_v2 = vpop.f32.mrf.mxu2  ;;  %v3487_v41 = vor.u32 1.1754944e-38, %v3486_v37  ;;  %vm3485_vm1 = vcmp.eq.f32.partialorder %v3484_v19, 8.507059e+37 }
 0x6e6   :  { %v4482_v59 = vpop.eup %4481  ;;  %v3434_v52 = vadd.f32 %v3433_v36, %v3421_v22  ;;  %v3447_v39 = vadd.f32 %v3446_v2, %v3354_v30 }
 0x6e7   :  { %v3473_v10 = vadd.f32 1.0, %v4482_v59  ;;  %v3422_v57 = vpop.f32.mrf.mxu0 }
 0x6e8   :  { %v4115_v48 = vmul.f32 -1.442695, %v3434_v52 }
 0x6e9   :  { %v4484_v55 = vpop.eup %4483  ;;  %4485 = vrcp.f32 %v3473_v10  ;;  %v3501_v4 = vand.u32 2147483648, %v3473_v10  ;;  %v3499_v12 = vand.u32 2147483647, %v3473_v10  ;;  %vm3495_vm0 = vweird.f32 %v3473_v10 }
 0x6ea   :  { %v3476_v5 = vmul.f32 %v4484_v55, %v3472_v24  ;;  %4487 = vpow2.f32 %v4115_v48  ;;  %vm3481_vm12 = vweird.f32 %v4484_v55 }
 0x6eb   :  { %v3459_v9 = vpop.f32.mrf.mxu3  ;;  %vm3482_vm14 = vmor %vm3480_vm13, %vm3481_vm12  ;;  %v3502_v60 = vor.u32 1.1754944e-38, %v3501_v4  ;;  %vm3500_vm3 = vcmp.eq.f32.partialorder %v3499_v12, 8.507059e+37 }
 0x6ec   :  { %v3477_v63 = vsub.f32 1.0, %v3476_v5  ;;  %v3460_v61 = vadd.f32 %v3459_v9, %v3447_v39 }
 0x6ed   :  { %v3435_v62 = vpop.f32.mrf.mxu1  ;;  %v3448_v13 = vpop.f32.mrf.mxu2 }
 0x6ee   :  { %v3478_v43 = vmul.f32 %v4484_v55, %v3477_v63  ;;  %4489 = vtanh.f32 %v3460_v61 }
 0x6ef   :  { %v4486_v42 = vpop.eup %4485 }
 0x6f0   :  { %v4488_v11 = vpop.eup %4487  ;;  %v3491_v23 = vmul.f32 %v4486_v42, %v3473_v10  ;;  %v3479_v35 = vadd.f32 %v4484_v55, %v3478_v43  ;;  %vm3496_vm15 = vweird.f32 %v4486_v42 }
 0x6f1   :  { %v3474_v14 = vadd.f32 1.0, %v4488_v11  ;;  %vm3497_vm2 = vmor %vm3495_vm0, %vm3496_vm15 }
 0x6f2   :  { %v3492_v25 = vsub.f32 1.0, %v3491_v23  ;;  %v3483_v17 = vsel %vm3482_vm14, %v4484_v55, %v3479_v35 }
 0x6f3   :  { %4491 = vrcp.f32 %v3474_v14  ;;  %v3461_v16 = vpop.f32.mrf.mxu3  ;;  %v3488_v58 = vsel %vm3485_vm1, %v3487_v41, %v3483_v17  ;;  %v3516_v31 = vand.u32 2147483648, %v3474_v14  ;;  %v3514_v8 = vand.u32 2147483647, %v3474_v14 }
 0x6f4   :  { %v3493_v1 = vmul.f32 %v4486_v42, %v3492_v25  ;;  %v4490_v26 = vpop.eup %4489  ;;  %vm3510_vm5 = vweird.f32 %v3474_v14 }
 0x6f5   :  { %v3522_v27 = vmul.f32 %v4490_v26, %v3488_v58  ;;  %v3517_v15 = vor.u32 1.1754944e-38, %v3516_v31  ;;  %vm3515_vm7 = vcmp.eq.f32.partialorder %v3514_v8, 8.507059e+37 }
 0x6f6   :  { %v3494_v0 = vadd.f32 %v4486_v42, %v3493_v1 }
 0x6f8   :  { %v3498_v54 = vsel %vm3497_vm2, %v4486_v42, %v3494_v0 }
 0x6f9   :  { %v4492_v47 = vpop.eup %4491  ;;  %v3503_v46 = vsel %vm3500_vm3, %v3502_v60, %v3498_v54 }
 0x6fa   :  { %v3506_v34 = vmul.f32 %v4492_v47, %v3474_v14  ;;  %v3521_v7 = vmul.f32 %v3503_v46, %v7580_v53  ;;  %vm3511_vm4 = vweird.f32 %v4492_v47 }
 0x6fb   :  { %vm3512_vm6 = vmor %vm3510_vm5, %vm3511_vm4 }
 0x6fc   :  { %v3523_v51 = vadd.f32 %v3522_v27, %v3521_v7  ;;  %v3507_v33 = vsub.f32 1.0, %v3506_v34 }
 0x6fe   :  { %4493 = vtanh.f32 %v3523_v51  ;;  %v3508_v45 = vmul.f32 %v4492_v47, %v3507_v33 }
 0x700   :  { %v3509_v18 = vadd.f32 %v4492_v47, %v3508_v45 }
 0x702   :  { %v3513_v50 = vsel %vm3512_vm6, %v4492_v47, %v3509_v18 }
 0x703   :  { %v3518_v29 = vsel %vm3515_vm7, %v3517_v15, %v3513_v50 }
 0x704   :  { %v4494_v53 = vpop.eup %4493 }
 0x705   :  { %v3525_v20 = vmul.f32 %v4494_v53, %v3518_v29 }
 0x707   :  { %v3529_v3 = vmul.f32 %v4245_v6, %v3525_v20 }
 0x709   :  { %v3531_v32 = vsel %vm3530_vm8, %v3529_v3, 0.0 }
 0x70a   :  { %3532 = vadd.xlane.f32.xlu0 %v3531_v32 }
 0x77d   :  { %v3533_v44 = vpop.xlane.xlu0 %3532 }
 0x77e   :  { %v3537_v49 = vadd.f32 %v4246_v28, %v3533_v44 }
 0x780   :  { %3539 = vst.msk [vmem:[%s7607_s5] sm:$0x3] %vm3538_vm9, %v3537_v49 }

</bundles_post_ra>
